<compile_context>
chip_gen: v6e
topology: v6e:2x2x1
jax: 0.10.0
libtpu: 0.0.40
codegen_flags: <defaults>
</compile_context>

<pallas_src>
import functools

import jax
import jax.numpy as jnp
from jax.experimental import pallas as pl
from jax.experimental.pallas import tpu as pltpu


def _round_up(x, m):
    return ((x + m - 1) // m) * m


def _mlp_kernel(x_ref, w1_ref, b1_ref, w2_ref, b2_ref, w3_ref, b3_ref, o_ref):
    # layer1 + ReLU  (bf16 operands, f32 accumulate)
    x = x_ref[...].astype(jnp.bfloat16)
    h = jnp.dot(x, w1_ref[...], preferred_element_type=jnp.float32)
    h = jnp.maximum(h + b1_ref[...], 0.0)
    # dropout (eval mode): identity
    # layer2 + ReLU
    h = jnp.dot(h.astype(jnp.bfloat16), w2_ref[...],
                preferred_element_type=jnp.float32)
    h = jnp.maximum(h + b2_ref[...], 0.0)
    # layer4 (output projection)
    out = jnp.dot(h.astype(jnp.bfloat16), w3_ref[...],
                  preferred_element_type=jnp.float32) + b3_ref[...]
    o_ref[...] = out.astype(o_ref.dtype)


@functools.partial(jax.jit, static_argnames=("block_b",))
def mlp_forward(x, w1, b1, w2, b2, w3, b3, *, block_b=None):
    """x: [B, n_in] float32 (or bf16). Weights [in, out] bf16, biases [1, out] f32.

    Returns [B, n_out] float32.
    """
    B, n_in = x.shape
    n_hidden = w1.shape[1]
    n_out = w3.shape[1]

    # Adaptive batch tile: multiple of 8 sublanes, capped at 128 rows so large
    # batches give multiple grid steps (parallel axis -> megacore sharding).
    if block_b is None:
        block_b = min(128, _round_up(B, 8))

    # Only the (small) activation tensor is padded, and only along batch.
    b_pad = (-B) % block_b
    x_p = jnp.pad(x, ((0, b_pad), (0, 0))) if b_pad else x
    Bp = B + b_pad

    grid = (Bp // block_b,)

    out = pl.pallas_call(
        _mlp_kernel,
        out_shape=jax.ShapeDtypeStruct((Bp, n_out), jnp.float32),
        grid_spec=pltpu.PrefetchScalarGridSpec(
            num_scalar_prefetch=0,
            grid=grid,
            in_specs=[
                pl.BlockSpec((block_b, n_in), lambda i: (i, 0)),       # x tile
                pl.BlockSpec((n_in, n_hidden), lambda i: (0, 0)),      # W1 (bf16, resident)
                pl.BlockSpec((1, n_hidden), lambda i: (0, 0)),         # b1
                pl.BlockSpec((n_hidden, n_hidden), lambda i: (0, 0)),  # W2
                pl.BlockSpec((1, n_hidden), lambda i: (0, 0)),         # b2
                pl.BlockSpec((n_hidden, n_out), lambda i: (0, 0)),     # W3
                pl.BlockSpec((1, n_out), lambda i: (0, 0)),            # b3
            ],
            out_specs=pl.BlockSpec((block_b, n_out), lambda i: (i, 0)),
        ),
        compiler_params=pltpu.CompilerParams(
            dimension_semantics=("parallel",),
            # Generation-safe: below v7x's 64 MiB physical VMEM, ample on v5e/v6e.
            vmem_limit_bytes=48 << 20,
        ),
    )(x_p, w1, b1, w2, b2, w3, b3)

    return out[:B] if b_pad else out


def init_params(key, n_in, n_hidden, n_out):
    """PyTorch-style Linear init (uniform +/- 1/sqrt(fan_in)).

    Weights returned as [in_features, out_features] in bfloat16 (cast once,
    outside the jitted forward); biases as [1, out_features] float32.
    """
    def linear(k, fan_in, fan_out):
        kw, kb = jax.random.split(k)
        bound = 1.0 / jnp.sqrt(fan_in)
        w = jax.random.uniform(kw, (fan_in, fan_out), jnp.float32, -bound, bound)
        b = jax.random.uniform(kb, (1, fan_out), jnp.float32, -bound, bound)
        return w.astype(jnp.bfloat16), b

    k1, k2, k3 = jax.random.split(key, 3)
    w1, b1 = linear(k1, n_in, n_hidden)
    w2, b2 = linear(k2, n_hidden, n_hidden)
    w3, b3 = linear(k3, n_hidden, n_out)
    return w1, b1, w2, b2, w3, b3


def reference_forward(x, w1, b1, w2, b2, w3, b3):
    """Pure-JAX reference with identical bf16-operand / f32-accumulate math."""
    h = jnp.dot(x.astype(jnp.bfloat16), w1, preferred_element_type=jnp.float32)
    h = jnp.maximum(h + b1, 0.0)
    h = jnp.dot(h.astype(jnp.bfloat16), w2, preferred_element_type=jnp.float32)
    h = jnp.maximum(h + b2, 0.0)
    return jnp.dot(h.astype(jnp.bfloat16), w3,
                   preferred_element_type=jnp.float32) + b3


if __name__ == "__main__":
    # Shapes implied by the module: flattened 69x69 input, hidden 512, 10 classes.
    B, N_IN, N_HIDDEN, N_OUT = 8, 69 * 69, 512, 10

    key = jax.random.PRNGKey(0)
    k_x, k_p = jax.random.split(key)
    x = jax.random.normal(k_x, (B, N_IN), jnp.float32)
    params = init_params(k_p, N_IN, N_HIDDEN, N_OUT)

    out = mlp_forward(x, *params)
    out = jax.block_until_ready(out)

    ref = reference_forward(x, *params)
    assert out.shape == (B, N_OUT), out.shape
    assert jnp.allclose(out, ref, atol=1e-2, rtol=1e-2), (
        float(jnp.max(jnp.abs(out - ref)))
    )
    print("KERNEL_OK")
</pallas_src>

<mosaic_0001>
module attributes {stable_mosaic.version = 11 : i64} {
  func.func @_mlp_kernel(%arg0: i32, %arg1: memref<8x4761xf32, #tpu.memory_space<vmem>>, %arg2: memref<4761x512xbf16, #tpu.memory_space<vmem>>, %arg3: memref<1x512xf32, #tpu.memory_space<vmem>>, %arg4: memref<512x512xbf16, #tpu.memory_space<vmem>>, %arg5: memref<1x512xf32, #tpu.memory_space<vmem>>, %arg6: memref<512x10xbf16, #tpu.memory_space<vmem>>, %arg7: memref<1x10xf32, #tpu.memory_space<vmem>>, %arg8: memref<8x10xf32, #tpu.memory_space<vmem>>) attributes {dimension_semantics = [#tpu.dimension_semantics<parallel>], iteration_bounds = array<i64: 1>, scalar_prefetch = 0 : i64, scratch_operands = 0 : i64, tpu.core_type = #tpu.core_type<tc>, window_params = [{transform_indices = @transform_0, window_bounds = array<i64: 8, 4761>}, {pipeline_mode = #tpu.pipeline_mode<synchronous>, transform_indices = @transform_1, window_bounds = array<i64: 4761, 512>}, {pipeline_mode = #tpu.pipeline_mode<synchronous>, transform_indices = @transform_2, window_bounds = array<i64: 1, 512>}, {pipeline_mode = #tpu.pipeline_mode<synchronous>, transform_indices = @transform_3, window_bounds = array<i64: 512, 512>}, {pipeline_mode = #tpu.pipeline_mode<synchronous>, transform_indices = @transform_4, window_bounds = array<i64: 1, 512>}, {pipeline_mode = #tpu.pipeline_mode<synchronous>, transform_indices = @transform_5, window_bounds = array<i64: 512, 10>}, {pipeline_mode = #tpu.pipeline_mode<synchronous>, transform_indices = @transform_6, window_bounds = array<i64: 1, 10>}, {transform_indices = @transform_7, window_bounds = array<i64: 8, 10>}]} {
    %c0 = arith.constant 0 : index
    %c0_0 = arith.constant 0 : index
    %0 = vector.load %arg1[%c0, %c0_0] : memref<8x4761xf32, #tpu.memory_space<vmem>>, vector<8x4761xf32>
    %1 = arith.truncf %0 : vector<8x4761xf32> to vector<8x4761xbf16>
    %c0_1 = arith.constant 0 : index
    %c0_2 = arith.constant 0 : index
    %2 = vector.load %arg2[%c0_1, %c0_2] : memref<4761x512xbf16, #tpu.memory_space<vmem>>, vector<4761x512xbf16>
    %cst = arith.constant dense<0.000000e+00> : vector<8x512xf32>
    %3 = tpu.matmul %1, %2, %cst {dimension_numbers = #tpu.dot_dimension_numbers<[1], [0], [0], [1], [0, 0, 1, 1], [], []>} : vector<8x4761xbf16>, vector<4761x512xbf16>, vector<8x512xf32> -> vector<8x512xf32>
    %c0_3 = arith.constant 0 : index
    %c0_4 = arith.constant 0 : index
    %4 = vector.load %arg3[%c0_3, %c0_4] : memref<1x512xf32, #tpu.memory_space<vmem>>, vector<1x512xf32>
    %5 = vector.broadcast %4 : vector<1x512xf32> to vector<8x512xf32>
    %6 = arith.addf %3, %5 : vector<8x512xf32>
    %cst_5 = arith.constant 0.000000e+00 : f32
    %7 = vector.broadcast %cst_5 : f32 to vector<8x512xf32>
    %8 = arith.maximumf %6, %7 : vector<8x512xf32>
    %9 = arith.truncf %8 : vector<8x512xf32> to vector<8x512xbf16>
    %c0_6 = arith.constant 0 : index
    %c0_7 = arith.constant 0 : index
    %10 = vector.load %arg4[%c0_6, %c0_7] : memref<512x512xbf16, #tpu.memory_space<vmem>>, vector<512x512xbf16>
    %cst_8 = arith.constant dense<0.000000e+00> : vector<8x512xf32>
    %11 = tpu.matmul %9, %10, %cst_8 {dimension_numbers = #tpu.dot_dimension_numbers<[1], [0], [0], [1], [0, 0, 1, 1], [], []>} : vector<8x512xbf16>, vector<512x512xbf16>, vector<8x512xf32> -> vector<8x512xf32>
    %c0_9 = arith.constant 0 : index
    %c0_10 = arith.constant 0 : index
    %12 = vector.load %arg5[%c0_9, %c0_10] : memref<1x512xf32, #tpu.memory_space<vmem>>, vector<1x512xf32>
    %13 = vector.broadcast %12 : vector<1x512xf32> to vector<8x512xf32>
    %14 = arith.addf %11, %13 : vector<8x512xf32>
    %cst_11 = arith.constant 0.000000e+00 : f32
    %15 = vector.broadcast %cst_11 : f32 to vector<8x512xf32>
    %16 = arith.maximumf %14, %15 : vector<8x512xf32>
    %17 = arith.truncf %16 : vector<8x512xf32> to vector<8x512xbf16>
    %c0_12 = arith.constant 0 : index
    %c0_13 = arith.constant 0 : index
    %18 = vector.load %arg6[%c0_12, %c0_13] : memref<512x10xbf16, #tpu.memory_space<vmem>>, vector<512x10xbf16>
    %cst_14 = arith.constant dense<0.000000e+00> : vector<8x10xf32>
    %19 = tpu.matmul %17, %18, %cst_14 {dimension_numbers = #tpu.dot_dimension_numbers<[1], [0], [0], [1], [0, 0, 1, 1], [], []>} : vector<8x512xbf16>, vector<512x10xbf16>, vector<8x10xf32> -> vector<8x10xf32>
    %c0_15 = arith.constant 0 : index
    %c0_16 = arith.constant 0 : index
    %20 = vector.load %arg7[%c0_15, %c0_16] : memref<1x10xf32, #tpu.memory_space<vmem>>, vector<1x10xf32>
    %21 = vector.broadcast %20 : vector<1x10xf32> to vector<8x10xf32>
    %22 = arith.addf %19, %21 : vector<8x10xf32>
    %c0_17 = arith.constant 0 : index
    %c0_18 = arith.constant 0 : index
    %23 = vector.load %arg8[%c0_17, %c0_18] : memref<8x10xf32, #tpu.memory_space<vmem>>, vector<8x10xf32>
    tpu.vector_store %arg8[%c0_17, %c0_18], %22 {strides = array<i32>} : memref<8x10xf32, #tpu.memory_space<vmem>>, vector<8x10xf32>,
    return
  }
  func.func @transform_0(%arg0: i32) -> (i32, i32) {
    %c0_i32 = arith.constant 0 : i32
    %c0_i32_0 = arith.constant 0 : i32
    return %arg0, %c0_i32 : i32, i32
  }
  func.func @transform_1(%arg0: i32) -> (i32, i32) {
    %c0_i32 = arith.constant 0 : i32
    %c0_i32_0 = arith.constant 0 : i32
    %c0_i32_1 = arith.constant 0 : i32
    return %c0_i32, %c0_i32_0 : i32, i32
  }
  func.func @transform_2(%arg0: i32) -> (i32, i32) {
    %c0_i32 = arith.constant 0 : i32
    %c0_i32_0 = arith.constant 0 : i32
    %c0_i32_1 = arith.constant 0 : i32
    return %c0_i32, %c0_i32_0 : i32, i32
  }
  func.func @transform_3(%arg0: i32) -> (i32, i32) {
    %c0_i32 = arith.constant 0 : i32
    %c0_i32_0 = arith.constant 0 : i32
    %c0_i32_1 = arith.constant 0 : i32
    return %c0_i32, %c0_i32_0 : i32, i32
  }
  func.func @transform_4(%arg0: i32) -> (i32, i32) {
    %c0_i32 = arith.constant 0 : i32
    %c0_i32_0 = arith.constant 0 : i32
    %c0_i32_1 = arith.constant 0 : i32
    return %c0_i32, %c0_i32_0 : i32, i32
  }
  func.func @transform_5(%arg0: i32) -> (i32, i32) {
    %c0_i32 = arith.constant 0 : i32
    %c0_i32_0 = arith.constant 0 : i32
    %c0_i32_1 = arith.constant 0 : i32
    return %c0_i32, %c0_i32_0 : i32, i32
  }
  func.func @transform_6(%arg0: i32) -> (i32, i32) {
    %c0_i32 = arith.constant 0 : i32
    %c0_i32_0 = arith.constant 0 : i32
    %c0_i32_1 = arith.constant 0 : i32
    return %c0_i32, %c0_i32_0 : i32, i32
  }
  func.func @transform_7(%arg0: i32) -> (i32, i32) {
    %c0_i32 = arith.constant 0 : i32
    %c0_i32_0 = arith.constant 0 : i32
    return %arg0, %c0_i32 : i32, i32
  }
}

</mosaic_0001>

<bundles_post_ra>
// kernel: mlp_forward.1
= control target key start
LH: loop header
LB: loop body
LE: loop exit
PB: predicated region body
PF: predicated region fallthrough
CT: control target
= control target key end

     0   :  { %12 = vsyncpa [#allocation3], 0  ;;  %s14294_s0 = inlined_call_operand.hbm [shape: f32[8,4761], index: 0, kind: input, shape index: {}]   ;;  %s14295_s1 = inlined_call_operand.hbm [shape: bf16[4761,512], index: 1, kind: input, shape index: {}]   ;;  %s14296_s2 = inlined_call_operand.hbm [shape: f32[1,512], index: 2, kind: input, shape index: {}]   ;;  %s14297_s3 = inlined_call_operand.hbm [shape: bf16[512,512], index: 3, kind: input, shape index: {}]   ;;  %s14298_s4 = inlined_call_operand.hbm [shape: f32[1,512], index: 4, kind: input, shape index: {}]   ;;  %s14299_s5 = inlined_call_operand.vmem [shape: bf16[512,10], index: 5, kind: input, shape index: {}]   ;;  %s14300_s6 = inlined_call_operand.hbm [shape: f32[1,10], index: 6, kind: input, shape index: {}]   ;;  %s14301_s7 = inlined_call_operand.hbm [shape: f32[8,10], index: 7, kind: output, shape index: {}]  }
   0x1   :  { %13 = vsyncpa [#allocation6], 0 }
   0x2   :  { %14 = vsyncpa [#allocation9], 0 }
   0x3   :  { %15 = vsyncpa [#allocation12], 0 }
   0x4   :  { %16 = vsyncpa [#allocation4], 0  ;;  %s13831_s24 = smov [#allocation5]  }
   0x5   :  { %s32_s25 = sshll.u32 %s13831_s24, 4  ;;  %s33_s25 = int_to_ptr.vmem [resolvable:$true] %s32_s25 }
   0x6   :  { %s13689_s26 = scalar_lea.vmem %s33_s25, 152576  ;;  %p13694_p1 = scmp.lt.s32.totalorder %s33_s25, %s33_s25 }
   0x7   :  { %p13690_p0 = scmp.ne.s32.totalorder %s33_s25, %s13689_s26  ;;  %p13695_p2 = scmp.lt.s32.totalorder %s13689_s26, %s13689_s26 }
   0x9   :  { %p13696_p3 = por %p13695_p2, %p13694_p1 }
   0xb   :  { %p13697_p4 = pnand %p13696_p3, %p13690_p0 }
   0xd   :  { %13700 = shalt.err (!%p13697_p4)
}
   0xe   :  { %s13832_s27 = smov 256   ;;  %s13833_s28 = smov 16  }
   0xf   :  { %38 = dma.hbm_to_vmem [thread:$0]  %s14295_s1, 152576, %s33_s25, [#allocation6], %s13832_s27, %s13832_s27, %s13833_s28  }
  0x10   :  { %s13834_s8 = smov [#allocation8]   ;;  %s13835_s10 = smov [#allocation2]  }
  0x11   :  { %s54_s9 = sshll.u32 %s13834_s8, 4  ;;  %s23_s11 = sshll.u32 %s13835_s10, 4  ;;  %s55_s9 = int_to_ptr.vmem [resolvable:$true] %s54_s9  ;;  %s24_s11 = int_to_ptr.vmem [resolvable:$true] %s23_s11 }
  0x12   :  { %s13709_s12 = scalar_lea.vmem %s55_s9, 16384  ;;  %p13714_p6 = scmp.lt.s32.totalorder %s55_s9, %s55_s9 }
  0x13   :  { %p13710_p5 = scmp.ne.s32.totalorder %s55_s9, %s13709_s12  ;;  %p13715_p7 = scmp.lt.s32.totalorder %s13709_s12, %s13709_s12 }
  0x15   :  { %p13716_p8 = por %p13715_p7, %p13714_p6 }
  0x17   :  { %p13717_p9 = pnand %p13716_p8, %p13710_p5 }
  0x19   :  { %13720 = shalt.err (!%p13717_p9)
}
  0x1a   :  { %60 = dma.hbm_to_vmem [thread:$0]  %s14297_s3, 16384, %s55_s9, [#allocation9], %s13832_s27, %s13832_s27, %s13833_s28  }
  0x1b   :  { %s13729_s15 = scalar_lea.vmem %s24_s11, 4864  ;;  %p13734_p11 = scmp.lt.s32.totalorder %s24_s11, %s24_s11 }
  0x1c   :  { %p13730_p10 = scmp.ne.s32.totalorder %s24_s11, %s13729_s15  ;;  %p13735_p12 = scmp.lt.s32.totalorder %s13729_s15, %s13729_s15 }
  0x1e   :  { %p13736_p13 = por %p13735_p12, %p13734_p11 }
  0x20   :  { %p13737_p0 = pnand %p13736_p13, %p13730_p10 }
  0x22   :  { %13740 = shalt.err (!%p13737_p0)
}
  0x23   :  { %26 = dma.hbm_to_vmem [thread:$0]  %s14294_s0, 4864, %s24_s11, [#allocation3]  }
  0x24   :  { %s13836_s17 = smov [#allocation7]   ;;  %s13837_s19 = smov [#allocation10]  }
  0x25   :  { %s45_s18 = sshll.u32 %s13836_s17, 4  ;;  %s67_s20 = sshll.u32 %s13837_s19, 4  ;;  %s46_s18 = int_to_ptr.vmem [resolvable:$true] %s45_s18  ;;  %s68_s20 = int_to_ptr.vmem [resolvable:$true] %s67_s20 }
  0x26   :  { %s13749_s21 = scalar_lea.vmem %s46_s18, 64  ;;  %p13754_p2 = scmp.lt.s32.totalorder %s46_s18, %s46_s18 }
  0x27   :  { %p13750_p1 = scmp.ne.s32.totalorder %s46_s18, %s13749_s21  ;;  %p13755_p3 = scmp.lt.s32.totalorder %s13749_s21, %s13749_s21 }
  0x29   :  { %p13756_p4 = por %p13755_p3, %p13754_p2 }
  0x2b   :  { %p13757_p5 = pnand %p13756_p4, %p13750_p1 }
  0x2d   :  { %13760 = shalt.err (!%p13757_p5)
}
  0x2e   :  { %48 = dma.hbm_to_vmem [thread:$0]  %s14296_s2, 64, %s46_s18, [#allocation6]  }
  0x2f   :  { %s13769_s23 = scalar_lea.vmem %s68_s20, 64  ;;  %p13774_p7 = scmp.lt.s32.totalorder %s68_s20, %s68_s20 }
  0x30   :  { %p13770_p6 = scmp.ne.s32.totalorder %s68_s20, %s13769_s23  ;;  %p13775_p8 = scmp.lt.s32.totalorder %s13769_s23, %s13769_s23 }
  0x32   :  { %p13776_p9 = por %p13775_p8, %p13774_p7 }
  0x34   :  { %p13777_p10 = pnand %p13776_p9, %p13770_p6 }
  0x36   :  { %13780 = shalt.err (!%p13777_p10)
}
  0x37   :  { %70 = dma.hbm_to_vmem [thread:$0]  %s14298_s4, 64, %s68_s20, [#allocation9]  }
  0x38   :  { %s13838_s25 = smov [#allocation11]  }
  0x39   :  { %s79_s26 = sshll.u32 %s13838_s25, 4  ;;  %s80_s26 = int_to_ptr.vmem [resolvable:$true] %s79_s26 }
  0x3a   :  { %s13789_s27 = scalar_lea.vmem %s80_s26, 16  ;;  %s13793_s28 = scalar_lea.vmem %s80_s26, 32 }
  0x3b   :  { %p13790_p11 = scmp.ne.s32.totalorder %s80_s26, %s13789_s27  ;;  %p13794_p12 = scmp.lt.s32.totalorder %s80_s26, %s80_s26 }
  0x3c   :  { %p13795_p13 = scmp.lt.s32.totalorder %s13793_s28, %s13789_s27 }
  0x3e   :  { %p13796_p0 = por %p13795_p13, %p13794_p12 }
  0x40   :  { %p13797_p1 = pnand %p13796_p0, %p13790_p11 }
  0x42   :  { %13800 = shalt.err (!%p13797_p1)
}
  0x43   :  { %82 = dma.hbm_to_vmem [thread:$0]  %s14300_s6, 16, %s80_s26, [#allocation12]  }
  0x44   :  { %13821 = dma.done.wait [#allocation3], 4864  }
  0x45   :  { %13822 = vsyncadd [#allocation3], 4294962432 }
  0x46   :  { %13823 = dma.done.wait [#allocation6], 152640  }
  0x47   :  { %13824 = vsyncadd [#allocation6], 4294814656 }
  0x48   :  { %13825 = dma.done.wait [#allocation9], 16448  }
  0x49   :  { %13826 = vsyncadd [#allocation9], 4294950848 }
  0x4a   :  { %13827 = dma.done.wait [#allocation12], 16  }
  0x4b   :  { %13828 = vsyncadd [#allocation12], 4294967280  ;;  %v11668_v0 = vld [vmem:[#allocation5 + $0xe4] ss:$16 sps:$4 sm:$0xff]   ;;  %v11672_v2 = vld [vmem:[#allocation5 + $0xe0] ss:$16 sps:$4 sm:$0xff]  }
  0x4c   :  { %v11670_v1 = vld [vmem:[#allocation5 + $0x2e4] ss:$16 sps:$4 sm:$0xff]   ;;  %7368 = vmatprep.subr.bf16.mxu0 %v11668_v0  ;;  %v11673_v3 = vld [vmem:[#allocation5 + $0x2e0] ss:$16 sps:$4 sm:$0xff]   ;;  %v103_v46 = vld [vmem:[#allocation2 + $0x8] sm:$0xff]  ;;  %vm7348_vm0 = vcmask 203776  }
  0x4d   :  { %7409 = vmatprep.subr.bf16.mxu1 %v11670_v1  ;;  %v11674_v4 = vld [vmem:[#allocation5 + $0xc4] ss:$16 sps:$4 sm:$0xff]   ;;  %7369 = vmatpush1.bf16.msra.mxu0 %v11672_v2  ;;  %v11678_v6 = vld [vmem:[#allocation5 + $0xc0] ss:$16 sps:$4 sm:$0xff]   ;;  %v13899_v49 = vpack.c.bf16 %v103_v46, %v103_v46  ;;  %v105_v50 = vld [vmem:[#allocation2 + $0x18] sm:$0xff]  ;;  %vm7352_vm1 = vcmask 1043456  }
  0x4e   :  { %7410 = vmatpush1.bf16.msra.mxu1 %v11673_v3  ;;  %v11676_v5 = vld [vmem:[#allocation5 + $0x2c4] ss:$16 sps:$4 sm:$0xff]   ;;  %7370 = vmatprep.subr.bf16.mxu0 %v11674_v4  ;;  %v11679_v7 = vld [vmem:[#allocation5 + $0x2c0] ss:$16 sps:$4 sm:$0xff]   ;;  %v13901_v52 = vpack.c.bf16 %v105_v50, %v105_v50  ;;  %vm7353_vm2 = vcmask 1044480   ;;  %vm10239_vm3 = vcmask 80896  }
  0x4f   :  { %7411 = vmatprep.subr.bf16.mxu1 %v11676_v5  ;;  %v11680_v8 = vld [vmem:[#allocation5 + $0xa4] ss:$16 sps:$4 sm:$0xff]   ;;  %v11684_v10 = vld [vmem:[#allocation5 + $0xa0] ss:$16 sps:$4 sm:$0xff]   ;;  %7400 = vmatprep.mubr.bf16.mxu0 %v13899_v49 }
  0x50   :  { %v11682_v9 = vld [vmem:[#allocation5 + $0x2a4] ss:$16 sps:$4 sm:$0xff]   ;;  %v11685_v11 = vld [vmem:[#allocation5 + $0x2a0] ss:$16 sps:$4 sm:$0xff]   ;;  %7441 = vmatprep.mubr.bf16.mxu1 %v13901_v52 }
  0x51   :  { %7371 = vmatpush1.bf16.msra.mxu0 %v11678_v6  ;;  %v11686_v12 = vld [vmem:[#allocation5 + $0x84] ss:$16 sps:$4 sm:$0xff]   ;;  %v11690_v14 = vld [vmem:[#allocation5 + $0x80] ss:$16 sps:$4 sm:$0xff]  }
  0x52   :  { %7412 = vmatpush1.bf16.msra.mxu1 %v11679_v7  ;;  %7372 = vmatprep.subr.bf16.mxu0 %v11680_v8  ;;  %v11688_v13 = vld [vmem:[#allocation5 + $0x284] ss:$16 sps:$4 sm:$0xff]   ;;  %v11691_v15 = vld [vmem:[#allocation5 + $0x280] ss:$16 sps:$4 sm:$0xff]  }
  0x53   :  { %7413 = vmatprep.subr.bf16.mxu1 %v11682_v9  ;;  %v11692_v16 = vld [vmem:[#allocation5 + $0x64] ss:$16 sps:$4 sm:$0xff]   ;;  %v11696_v18 = vld [vmem:[#allocation5 + $0x60] ss:$16 sps:$4 sm:$0xff]  }
  0x54   :  { %v11694_v17 = vld [vmem:[#allocation5 + $0x264] ss:$16 sps:$4 sm:$0xff]   ;;  %v11697_v19 = vld [vmem:[#allocation5 + $0x260] ss:$16 sps:$4 sm:$0xff]  }
  0x55   :  { %7373 = vmatpush1.bf16.msra.mxu0 %v11684_v10  ;;  %v11698_v20 = vld [vmem:[#allocation5 + $0x44] ss:$16 sps:$4 sm:$0xff]   ;;  %v11702_v22 = vld [vmem:[#allocation5 + $0x40] ss:$16 sps:$4 sm:$0xff]  }
  0x56   :  { %7414 = vmatpush1.bf16.msra.mxu1 %v11685_v11  ;;  %7374 = vmatprep.subr.bf16.mxu0 %v11686_v12  ;;  %v11700_v21 = vld [vmem:[#allocation5 + $0x244] ss:$16 sps:$4 sm:$0xff]   ;;  %v11703_v23 = vld [vmem:[#allocation5 + $0x240] ss:$16 sps:$4 sm:$0xff]  }
  0x57   :  { %7415 = vmatprep.subr.bf16.mxu1 %v11688_v13  ;;  %v11704_v24 = vld [vmem:[#allocation5 + $0x24] ss:$16 sps:$4 sm:$0xff]   ;;  %v11708_v26 = vld [vmem:[#allocation5 + $0x20] ss:$16 sps:$4 sm:$0xff]  }
  0x58   :  { %v11706_v25 = vld [vmem:[#allocation5 + $0x224] ss:$16 sps:$4 sm:$0xff]   ;;  %v11709_v27 = vld [vmem:[#allocation5 + $0x220] ss:$16 sps:$4 sm:$0xff]  }
  0x59   :  { %7375 = vmatpush1.bf16.msra.mxu0 %v11690_v14  ;;  %v11710_v28 = vld [vmem:[#allocation5 + $0x4] ss:$16 sps:$4 sm:$0xff]   ;;  %v11714_v30 = vld [vmem:[#allocation5] ss:$16 sps:$4 sm:$0xff]  }
  0x5a   :  { %7416 = vmatpush1.bf16.msra.mxu1 %v11691_v15  ;;  %7376 = vmatprep.subr.bf16.mxu0 %v11692_v16  ;;  %v11712_v29 = vld [vmem:[#allocation5 + $0x204] ss:$16 sps:$4 sm:$0xff]   ;;  %v11715_v31 = vld [vmem:[#allocation5 + $0x200] ss:$16 sps:$4 sm:$0xff]  }
  0x5b   :  { %7417 = vmatprep.subr.bf16.mxu1 %v11694_v17  ;;  %v11716_v32 = vld [vmem:[#allocation5 + $0x1e4] ss:$16 sps:$4 sm:$0xff]   ;;  %v11720_v34 = vld [vmem:[#allocation5 + $0x1e0] ss:$16 sps:$4 sm:$0xff]  }
  0x5c   :  { %v11718_v33 = vld [vmem:[#allocation5 + $0x3e4] ss:$16 sps:$4 sm:$0xff]   ;;  %v11721_v35 = vld [vmem:[#allocation5 + $0x3e0] ss:$16 sps:$4 sm:$0xff]  }
  0x5d   :  { %7377 = vmatpush1.bf16.msra.mxu0 %v11696_v18  ;;  %v11722_v36 = vld [vmem:[#allocation5 + $0x1c4] ss:$16 sps:$4 sm:$0xff]   ;;  %v11726_v38 = vld [vmem:[#allocation5 + $0x1c0] ss:$16 sps:$4 sm:$0xff]  }
  0x5e   :  { %7418 = vmatpush1.bf16.msra.mxu1 %v11697_v19  ;;  %7378 = vmatprep.subr.bf16.mxu0 %v11698_v20  ;;  %v11724_v37 = vld [vmem:[#allocation5 + $0x3c4] ss:$16 sps:$4 sm:$0xff]   ;;  %v11727_v39 = vld [vmem:[#allocation5 + $0x3c0] ss:$16 sps:$4 sm:$0xff]  }
  0x5f   :  { %7419 = vmatprep.subr.bf16.mxu1 %v11700_v21  ;;  %v11728_v40 = vld [vmem:[#allocation5 + $0x1a4] ss:$16 sps:$4 sm:$0xff]   ;;  %v11732_v42 = vld [vmem:[#allocation5 + $0x1a0] ss:$16 sps:$4 sm:$0xff]  }
  0x60   :  { %v11730_v41 = vld [vmem:[#allocation5 + $0x3a4] ss:$16 sps:$4 sm:$0xff]   ;;  %v11733_v43 = vld [vmem:[#allocation5 + $0x3a0] ss:$16 sps:$4 sm:$0xff]  }
  0x61   :  { %7379 = vmatpush1.bf16.msra.mxu0 %v11702_v22  ;;  %v11734_v44 = vld [vmem:[#allocation5 + $0x184] ss:$16 sps:$4 sm:$0xff]   ;;  %v11738_v47 = vld [vmem:[#allocation5 + $0x180] ss:$16 sps:$4 sm:$0xff]  }
  0x62   :  { %7420 = vmatpush1.bf16.msra.mxu1 %v11703_v23  ;;  %7380 = vmatprep.subr.bf16.mxu0 %v11704_v24  ;;  %v11736_v45 = vld [vmem:[#allocation5 + $0x384] ss:$16 sps:$4 sm:$0xff]   ;;  %v11739_v48 = vld [vmem:[#allocation5 + $0x380] ss:$16 sps:$4 sm:$0xff]  }
  0x63   :  { %7421 = vmatprep.subr.bf16.mxu1 %v11706_v25  ;;  %v11740_v51 = vld [vmem:[#allocation5 + $0x164] ss:$16 sps:$4 sm:$0xff]   ;;  %v11744_v54 = vld [vmem:[#allocation5 + $0x160] ss:$16 sps:$4 sm:$0xff]  }
  0x64   :  { %v11742_v53 = vld [vmem:[#allocation5 + $0x364] ss:$16 sps:$4 sm:$0xff]   ;;  %v11745_v55 = vld [vmem:[#allocation5 + $0x360] ss:$16 sps:$4 sm:$0xff]  }
  0x65   :  { %7381 = vmatpush1.bf16.msra.mxu0 %v11708_v26  ;;  %v11746_v56 = vld [vmem:[#allocation5 + $0x144] ss:$16 sps:$4 sm:$0xff]   ;;  %v11750_v58 = vld [vmem:[#allocation5 + $0x140] ss:$16 sps:$4 sm:$0xff]  }
  0x66   :  { %7422 = vmatpush1.bf16.msra.mxu1 %v11709_v27  ;;  %7382 = vmatprep.subr.bf16.mxu0 %v11710_v28  ;;  %v11748_v57 = vld [vmem:[#allocation5 + $0x344] ss:$16 sps:$4 sm:$0xff]   ;;  %v11751_v59 = vld [vmem:[#allocation5 + $0x340] ss:$16 sps:$4 sm:$0xff]  }
  0x67   :  { %7423 = vmatprep.subr.bf16.mxu1 %v11712_v29  ;;  %v11752_v60 = vld [vmem:[#allocation5 + $0x124] ss:$16 sps:$4 sm:$0xff]   ;;  %v11756_v62 = vld [vmem:[#allocation5 + $0x120] ss:$16 sps:$4 sm:$0xff]  }
  0x68   :  { %v11754_v61 = vld [vmem:[#allocation5 + $0x324] ss:$16 sps:$4 sm:$0xff]   ;;  %v11757_v63 = vld [vmem:[#allocation5 + $0x320] ss:$16 sps:$4 sm:$0xff]  }
  0x69   :  { %7383 = vmatpush1.bf16.msra.mxu0 %v11714_v30  ;;  %v11758_v0 = vld [vmem:[#allocation5 + $0x104] ss:$16 sps:$4 sm:$0xff]   ;;  %v11762_v2 = vld [vmem:[#allocation5 + $0x100] ss:$16 sps:$4 sm:$0xff]  }
  0x6a   :  { %7424 = vmatpush1.bf16.msra.mxu1 %v11715_v31  ;;  %7384 = vmatprep.subr.bf16.mxu0 %v11716_v32  ;;  %v11760_v1 = vld [vmem:[#allocation5 + $0x304] ss:$16 sps:$4 sm:$0xff]   ;;  %v11763_v3 = vld [vmem:[#allocation5 + $0x300] ss:$16 sps:$4 sm:$0xff]  }
  0x6b   :  { %7425 = vmatprep.subr.bf16.mxu1 %v11718_v33  ;;  %v102_v4 = vld [vmem:[#allocation2] sm:$0xff]  ;;  %v104_v5 = vld [vmem:[#allocation2 + $0x10] sm:$0xff] }
  0x6c   :  { %v11766_v6 = vld [vmem:[#allocation5 + $0x4e4] ss:$16 sps:$4 sm:$0xff]   ;;  %v13905_v8 = vpack.c.bf16 %v102_v4, %v102_v4  ;;  %v13907_v9 = vpack.c.bf16 %v104_v5, %v104_v5  ;;  %v11764_v10 = vld [vmem:[#allocation5 + $0x4e0] ss:$16 sps:$4 sm:$0xff]  }
  0x6d   :  { %7385 = vmatpush2.bf16.msra.mxu0 %v11720_v34  ;;  %v11769_v7 = vld [vmem:[#allocation5 + $0x6e4] ss:$16 sps:$4 sm:$0xff]   ;;  %v11767_v11 = vld [vmem:[#allocation5 + $0x6e0] ss:$16 sps:$4 sm:$0xff]   ;;  %v107_v34 = vld [vmem:[#allocation2 + $0x28] sm:$0xff] }
  0x6e   :  { %7426 = vmatpush2.bf16.msra.mxu1 %v11721_v35  ;;  %7386 = vmatprep.subr.bf16.mxu0 %v11722_v36  ;;  %v11772_v12 = vld [vmem:[#allocation5 + $0x4c4] ss:$16 sps:$4 sm:$0xff]   ;;  %v11770_v14 = vld [vmem:[#allocation5 + $0x4c0] ss:$16 sps:$4 sm:$0xff]  }
  0x6f   :  { %7427 = vmatprep.subr.bf16.mxu1 %v11724_v37  ;;  %v11775_v13 = vld [vmem:[#allocation5 + $0x6c4] ss:$16 sps:$4 sm:$0xff]   ;;  %v11773_v15 = vld [vmem:[#allocation5 + $0x6c0] ss:$16 sps:$4 sm:$0xff]   ;;  %v13911_v37 = vpack.c.bf16 %v107_v34, %v107_v34 }
  0x70   :  { %v11778_v16 = vld [vmem:[#allocation5 + $0x4a4] ss:$16 sps:$4 sm:$0xff]   ;;  %v11776_v18 = vld [vmem:[#allocation5 + $0x4a0] ss:$16 sps:$4 sm:$0xff]  }
  0x71   :  { %7387 = vmatpush2.bf16.msra.mxu0 %v11726_v38  ;;  %v11781_v17 = vld [vmem:[#allocation5 + $0x6a4] ss:$16 sps:$4 sm:$0xff]   ;;  %v11779_v19 = vld [vmem:[#allocation5 + $0x6a0] ss:$16 sps:$4 sm:$0xff]   ;;  %v109_v38 = vld [vmem:[#allocation2 + $0x38] sm:$0xff] }
  0x72   :  { %7428 = vmatpush2.bf16.msra.mxu1 %v11727_v39  ;;  %7388 = vmatprep.subr.bf16.mxu0 %v11728_v40  ;;  %v11784_v20 = vld [vmem:[#allocation5 + $0x484] ss:$16 sps:$4 sm:$0xff]   ;;  %v11782_v22 = vld [vmem:[#allocation5 + $0x480] ss:$16 sps:$4 sm:$0xff]   ;;  %v13913_v40 = vpack.c.bf16 %v109_v38, %v109_v38 }
  0x73   :  { %7429 = vmatprep.subr.bf16.mxu1 %v11730_v41  ;;  %v11787_v21 = vld [vmem:[#allocation5 + $0x684] ss:$16 sps:$4 sm:$0xff]   ;;  %v11785_v23 = vld [vmem:[#allocation5 + $0x680] ss:$16 sps:$4 sm:$0xff]  }
  0x74   :  { %v11790_v24 = vld [vmem:[#allocation5 + $0x464] ss:$16 sps:$4 sm:$0xff]   ;;  %v11788_v26 = vld [vmem:[#allocation5 + $0x460] ss:$16 sps:$4 sm:$0xff]  }
  0x75   :  { %7389 = vmatpush2.bf16.msra.mxu0 %v11732_v42  ;;  %v11793_v25 = vld [vmem:[#allocation5 + $0x664] ss:$16 sps:$4 sm:$0xff]   ;;  %v11791_v27 = vld [vmem:[#allocation5 + $0x660] ss:$16 sps:$4 sm:$0xff]  }
  0x76   :  { %7430 = vmatpush2.bf16.msra.mxu1 %v11733_v43  ;;  %7390 = vmatprep.subr.bf16.mxu0 %v11734_v44  ;;  %v11796_v28 = vld [vmem:[#allocation5 + $0x444] ss:$16 sps:$4 sm:$0xff]   ;;  %v11794_v30 = vld [vmem:[#allocation5 + $0x440] ss:$16 sps:$4 sm:$0xff]  }
  0x77   :  { %7431 = vmatprep.subr.bf16.mxu1 %v11736_v45  ;;  %v11799_v29 = vld [vmem:[#allocation5 + $0x644] ss:$16 sps:$4 sm:$0xff]   ;;  %v11797_v31 = vld [vmem:[#allocation5 + $0x640] ss:$16 sps:$4 sm:$0xff]  }
  0x78   :  { %v11802_v32 = vld [vmem:[#allocation5 + $0x424] ss:$16 sps:$4 sm:$0xff]   ;;  %v11800_v35 = vld [vmem:[#allocation5 + $0x420] ss:$16 sps:$4 sm:$0xff]  }
  0x79   :  { %7391 = vmatpush2.bf16.msra.mxu0 %v11738_v47  ;;  %v11805_v33 = vld [vmem:[#allocation5 + $0x624] ss:$16 sps:$4 sm:$0xff]   ;;  %v11803_v36 = vld [vmem:[#allocation5 + $0x620] ss:$16 sps:$4 sm:$0xff]  }
  0x7a   :  { %7432 = vmatpush2.bf16.msra.mxu1 %v11739_v48  ;;  %7392 = vmatprep.subr.bf16.mxu0 %v11740_v51  ;;  %v11808_v39 = vld [vmem:[#allocation5 + $0x404] ss:$16 sps:$4 sm:$0xff]   ;;  %v11806_v42 = vld [vmem:[#allocation5 + $0x400] ss:$16 sps:$4 sm:$0xff]  }
  0x7b   :  { %7433 = vmatprep.subr.bf16.mxu1 %v11742_v53  ;;  %v11811_v41 = vld [vmem:[#allocation5 + $0x604] ss:$16 sps:$4 sm:$0xff]   ;;  %v11809_v43 = vld [vmem:[#allocation5 + $0x600] ss:$16 sps:$4 sm:$0xff]  }
  0x7c   :  { %v11814_v44 = vld [vmem:[#allocation5 + $0x5e4] ss:$16 sps:$4 sm:$0xff]   ;;  %v11812_v46 = vld [vmem:[#allocation5 + $0x5e0] ss:$16 sps:$4 sm:$0xff]  }
  0x7d   :  { %7393 = vmatpush2.bf16.msra.mxu0 %v11744_v54  ;;  %v11817_v45 = vld [vmem:[#allocation5 + $0x7e4] ss:$16 sps:$4 sm:$0xff]   ;;  %v11815_v47 = vld [vmem:[#allocation5 + $0x7e0] ss:$16 sps:$4 sm:$0xff]  }
  0x7e   :  { %7434 = vmatpush2.bf16.msra.mxu1 %v11745_v55  ;;  %7394 = vmatprep.subr.bf16.mxu0 %v11746_v56  ;;  %v11820_v48 = vld [vmem:[#allocation5 + $0x5c4] ss:$16 sps:$4 sm:$0xff]   ;;  %v11818_v51 = vld [vmem:[#allocation5 + $0x5c0] ss:$16 sps:$4 sm:$0xff]  }
  0x7f   :  { %7435 = vmatprep.subr.bf16.mxu1 %v11748_v57  ;;  %v11823_v50 = vld [vmem:[#allocation5 + $0x7c4] ss:$16 sps:$4 sm:$0xff]   ;;  %v11821_v53 = vld [vmem:[#allocation5 + $0x7c0] ss:$16 sps:$4 sm:$0xff]  }
  0x80   :  { %v11826_v54 = vld [vmem:[#allocation5 + $0x5a4] ss:$16 sps:$4 sm:$0xff]   ;;  %v11824_v56 = vld [vmem:[#allocation5 + $0x5a0] ss:$16 sps:$4 sm:$0xff]  }
  0x81   :  { %7395 = vmatpush2.bf16.msra.mxu0 %v11750_v58  ;;  %v11829_v55 = vld [vmem:[#allocation5 + $0x7a4] ss:$16 sps:$4 sm:$0xff]   ;;  %v11827_v57 = vld [vmem:[#allocation5 + $0x7a0] ss:$16 sps:$4 sm:$0xff]  }
  0x82   :  { %7436 = vmatpush2.bf16.msra.mxu1 %v11751_v59  ;;  %7396 = vmatprep.subr.bf16.mxu0 %v11752_v60  ;;  %v11832_v58 = vld [vmem:[#allocation5 + $0x584] ss:$16 sps:$4 sm:$0xff]   ;;  %v11830_v60 = vld [vmem:[#allocation5 + $0x580] ss:$16 sps:$4 sm:$0xff]  }
  0x83   :  { %7437 = vmatprep.subr.bf16.mxu1 %v11754_v61  ;;  %v11835_v59 = vld [vmem:[#allocation5 + $0x784] ss:$16 sps:$4 sm:$0xff]   ;;  %v11833_v61 = vld [vmem:[#allocation5 + $0x780] ss:$16 sps:$4 sm:$0xff]  }
  0x84   :  { %v11842_v4 = vld [vmem:[#allocation5 + $0x540] ss:$16 sps:$4 sm:$0xff]   ;;  %v11883_v38 = vld [vmem:[#allocation5 + $0xa84] ss:$16 sps:$4 sm:$0xff]  }
  0x85   :  { %7397 = vmatpush2.bf16.msra.mxu0 %v11756_v62  ;;  %v11838_v62 = vld [vmem:[#allocation5 + $0x564] ss:$16 sps:$4 sm:$0xff]   ;;  %v11845_v5 = vld [vmem:[#allocation5 + $0x740] ss:$16 sps:$4 sm:$0xff]  }
  0x86   :  { %7438 = vmatpush2.bf16.msra.mxu1 %v11757_v63  ;;  %7398 = vmatprep.subr.bf16.mxu0 %v11758_v0  ;;  %v11841_v63 = vld [vmem:[#allocation5 + $0x764] ss:$16 sps:$4 sm:$0xff]   ;;  %v11836_v0 = vld [vmem:[#allocation5 + $0x560] ss:$16 sps:$4 sm:$0xff]  }
  0x87   :  { %7439 = vmatprep.subr.bf16.mxu1 %v11760_v1  ;;  %v11839_v1 = vld [vmem:[#allocation5 + $0x760] ss:$16 sps:$4 sm:$0xff]  }
  0x88   :  { %v11872_v34 = vld [vmem:[#allocation5 + $0x8a0] ss:$16 sps:$4 sm:$0xff]  }
  0x89   :  { %7399 = vmatpush2.bf16.msra.mxu0 %v11762_v2  ;;  %v11844_v2 = vld [vmem:[#allocation5 + $0x544] ss:$16 sps:$4 sm:$0xff]  }
  0x8a   :  { %7440 = vmatpush2.bf16.msra.mxu1 %v11763_v3  ;;  %7450 = vmatprep.subr.bf16.mxu0 %v11766_v6  ;;  %v11847_v3 = vld [vmem:[#allocation5 + $0x744] ss:$16 sps:$4 sm:$0xff]  }
  0x8b   :  { %7491 = vmatprep.subr.bf16.mxu1 %v11769_v7  ;;  %v11850_v6 = vld [vmem:[#allocation5 + $0x524] ss:$16 sps:$4 sm:$0xff]  }
  0x8c   :  { %7401 = vmatmul.mubr.bf16.vlgmr.msra.gmra.mxu0 %v13905_v8  ;;  %v11853_v7 = vld [vmem:[#allocation5 + $0x724] ss:$16 sps:$4 sm:$0xff]  }
  0x8d   :  { %7442 = vmatmul.mubr.bf16.vlgmr.msra.gmra.mxu1 %v13907_v9  ;;  %7451 = vmatpush1.bf16.msra.mxu0 %v11764_v10  ;;  %v11848_v10 = vld [vmem:[#allocation5 + $0x520] ss:$16 sps:$4 sm:$0xff]  }
  0x8e   :  { %7492 = vmatpush1.bf16.msra.mxu1 %v11767_v11  ;;  %7452 = vmatprep.subr.bf16.mxu0 %v11772_v12  ;;  %v11851_v11 = vld [vmem:[#allocation5 + $0x720] ss:$16 sps:$4 sm:$0xff]   ;;  %v11856_v12 = vld [vmem:[#allocation5 + $0x504] ss:$16 sps:$4 sm:$0xff]  }
  0x8f   :  { %7493 = vmatprep.subr.bf16.mxu1 %v11775_v13  ;;  %7482 = vmatprep.mubr.bf16.mxu0 %v13911_v37  ;;  %v11859_v13 = vld [vmem:[#allocation5 + $0x704] ss:$16 sps:$4 sm:$0xff]  }
  0x90   :  { %7523 = vmatprep.mubr.bf16.mxu1 %v13913_v40 }
  0x91   :  { %7453 = vmatpush1.bf16.msra.mxu0 %v11770_v14  ;;  %v11854_v14 = vld [vmem:[#allocation5 + $0x500] ss:$16 sps:$4 sm:$0xff]  }
  0x92   :  { %7494 = vmatpush1.bf16.msra.mxu1 %v11773_v15  ;;  %7454 = vmatprep.subr.bf16.mxu0 %v11778_v16  ;;  %v11857_v15 = vld [vmem:[#allocation5 + $0x700] ss:$16 sps:$4 sm:$0xff]  }
  0x93   :  { %7495 = vmatprep.subr.bf16.mxu1 %v11781_v17  ;;  %v106_v16 = vld [vmem:[#allocation2 + $0x20] sm:$0xff]  ;;  %v108_v17 = vld [vmem:[#allocation2 + $0x30] sm:$0xff] }
  0x95   :  { %7455 = vmatpush1.bf16.msra.mxu0 %v11776_v18  ;;  %v11862_v18 = vld [vmem:[#allocation5 + $0x8e4] ss:$16 sps:$4 sm:$0xff]  }
  0x96   :  { %7496 = vmatpush1.bf16.msra.mxu1 %v11779_v19  ;;  %7456 = vmatprep.subr.bf16.mxu0 %v11784_v20  ;;  %v11865_v19 = vld [vmem:[#allocation5 + $0xae4] ss:$16 sps:$4 sm:$0xff]   ;;  %v13917_v20 = vpack.c.bf16 %v106_v16, %v106_v16  ;;  %v11932_v16 = vld [vmem:[#allocation5 + $0x960] ss:$16 sps:$4 sm:$0xff]  }
  0x97   :  { %7497 = vmatprep.subr.bf16.mxu1 %v11787_v21  ;;  %v13919_v21 = vpack.c.bf16 %v108_v17, %v108_v17  ;;  %v11935_v17 = vld [vmem:[#allocation5 + $0xb60] ss:$16 sps:$4 sm:$0xff]  }
  0x99   :  { %7457 = vmatpush1.bf16.msra.mxu0 %v11782_v22  ;;  %v11860_v22 = vld [vmem:[#allocation5 + $0x8e0] ss:$16 sps:$4 sm:$0xff]  }
  0x9a   :  { %7498 = vmatpush1.bf16.msra.mxu1 %v11785_v23  ;;  %7458 = vmatprep.subr.bf16.mxu0 %v11790_v24  ;;  %v11863_v23 = vld [vmem:[#allocation5 + $0xae0] ss:$16 sps:$4 sm:$0xff]   ;;  %v11868_v24 = vld [vmem:[#allocation5 + $0x8c4] ss:$16 sps:$4 sm:$0xff]  }
  0x9b   :  { %7499 = vmatprep.subr.bf16.mxu1 %v11793_v25  ;;  %v11871_v25 = vld [vmem:[#allocation5 + $0xac4] ss:$16 sps:$4 sm:$0xff]  }
  0x9d   :  { %7459 = vmatpush1.bf16.msra.mxu0 %v11788_v26  ;;  %v111_v26 = vld [vmem:[#allocation2 + $0x48] sm:$0xff] }
  0x9e   :  { %7500 = vmatpush1.bf16.msra.mxu1 %v11791_v27  ;;  %7460 = vmatprep.subr.bf16.mxu0 %v11796_v28  ;;  %v11866_v27 = vld [vmem:[#allocation5 + $0x8c0] ss:$16 sps:$4 sm:$0xff]  }
  0x9f   :  { %7501 = vmatprep.subr.bf16.mxu1 %v11799_v29  ;;  %v11869_v28 = vld [vmem:[#allocation5 + $0xac0] ss:$16 sps:$4 sm:$0xff]   ;;  %v13923_v29 = vpack.c.bf16 %v111_v26, %v111_v26 }
  0xa0   :  { %v11944_v26 = vld [vmem:[#allocation5 + $0x920] ss:$16 sps:$4 sm:$0xff]  }
  0xa1   :  { %7461 = vmatpush1.bf16.msra.mxu0 %v11794_v30  ;;  %v113_v30 = vld [vmem:[#allocation2 + $0x58] sm:$0xff] }
  0xa2   :  { %7502 = vmatpush1.bf16.msra.mxu1 %v11797_v31  ;;  %7462 = vmatprep.subr.bf16.mxu0 %v11802_v32  ;;  %v11874_v31 = vld [vmem:[#allocation5 + $0x8a4] ss:$16 sps:$4 sm:$0xff]   ;;  %v13925_v32 = vpack.c.bf16 %v113_v30, %v113_v30 }
  0xa3   :  { %7503 = vmatprep.subr.bf16.mxu1 %v11805_v33  ;;  %v11877_v33 = vld [vmem:[#allocation5 + $0xaa4] ss:$16 sps:$4 sm:$0xff]  }
  0xa4   :  { %v11955_v30 = vld [vmem:[#allocation5 + $0xb04] ss:$16 sps:$4 sm:$0xff]  }
  0xa5   :  { %7463 = vmatpush1.bf16.msra.mxu0 %v11800_v35  ;;  %v11875_v35 = vld [vmem:[#allocation5 + $0xaa0] ss:$16 sps:$4 sm:$0xff]  }
  0xa6   :  { %7504 = vmatpush1.bf16.msra.mxu1 %v11803_v36  ;;  %7464 = vmatprep.subr.bf16.mxu0 %v11808_v39  ;;  %v11880_v36 = vld [vmem:[#allocation5 + $0x884] ss:$16 sps:$4 sm:$0xff]   ;;  %v11878_v39 = vld [vmem:[#allocation5 + $0x880] ss:$16 sps:$4 sm:$0xff]  }
  0xa7   :  { %7505 = vmatprep.subr.bf16.mxu1 %v11811_v41  ;;  %v11881_v41 = vld [vmem:[#allocation5 + $0xa80] ss:$16 sps:$4 sm:$0xff]  }
  0xa9   :  { %7465 = vmatpush1.bf16.msra.mxu0 %v11806_v42  ;;  %v11886_v42 = vld [vmem:[#allocation5 + $0x864] ss:$16 sps:$4 sm:$0xff]  }
  0xaa   :  { %7506 = vmatpush1.bf16.msra.mxu1 %v11809_v43  ;;  %7466 = vmatprep.subr.bf16.mxu0 %v11814_v44  ;;  %v11889_v43 = vld [vmem:[#allocation5 + $0xa64] ss:$16 sps:$4 sm:$0xff]   ;;  %v11884_v44 = vld [vmem:[#allocation5 + $0x860] ss:$16 sps:$4 sm:$0xff]  }
  0xab   :  { %7507 = vmatprep.subr.bf16.mxu1 %v11817_v45  ;;  %v11887_v45 = vld [vmem:[#allocation5 + $0xa60] ss:$16 sps:$4 sm:$0xff]  }
  0xad   :  { %7467 = vmatpush2.bf16.msra.mxu0 %v11812_v46  ;;  %v11892_v46 = vld [vmem:[#allocation5 + $0x844] ss:$16 sps:$4 sm:$0xff]  }
  0xae   :  { %7508 = vmatpush2.bf16.msra.mxu1 %v11815_v47  ;;  %7468 = vmatprep.subr.bf16.mxu0 %v11820_v48  ;;  %v11895_v47 = vld [vmem:[#allocation5 + $0xa44] ss:$16 sps:$4 sm:$0xff]   ;;  %v11890_v48 = vld [vmem:[#allocation5 + $0x840] ss:$16 sps:$4 sm:$0xff]  }
  0xaf   :  { %7509 = vmatprep.subr.bf16.mxu1 %v11823_v50  ;;  %v11893_v50 = vld [vmem:[#allocation5 + $0xa40] ss:$16 sps:$4 sm:$0xff]  }
  0xb1   :  { %7469 = vmatpush2.bf16.msra.mxu0 %v11818_v51  ;;  %v11898_v51 = vld [vmem:[#allocation5 + $0x824] ss:$16 sps:$4 sm:$0xff]  }
  0xb2   :  { %7510 = vmatpush2.bf16.msra.mxu1 %v11821_v53  ;;  %7470 = vmatprep.subr.bf16.mxu0 %v11826_v54  ;;  %v11901_v53 = vld [vmem:[#allocation5 + $0xa24] ss:$16 sps:$4 sm:$0xff]   ;;  %v11896_v54 = vld [vmem:[#allocation5 + $0x820] ss:$16 sps:$4 sm:$0xff]  }
  0xb3   :  { %7511 = vmatprep.subr.bf16.mxu1 %v11829_v55  ;;  %v11899_v55 = vld [vmem:[#allocation5 + $0xa20] ss:$16 sps:$4 sm:$0xff]  }
  0xb5   :  { %7471 = vmatpush2.bf16.msra.mxu0 %v11824_v56  ;;  %v11904_v56 = vld [vmem:[#allocation5 + $0x804] ss:$16 sps:$4 sm:$0xff]  }
  0xb6   :  { %7512 = vmatpush2.bf16.msra.mxu1 %v11827_v57  ;;  %7472 = vmatprep.subr.bf16.mxu0 %v11832_v58  ;;  %v11907_v57 = vld [vmem:[#allocation5 + $0xa04] ss:$16 sps:$4 sm:$0xff]   ;;  %v11902_v58 = vld [vmem:[#allocation5 + $0x800] ss:$16 sps:$4 sm:$0xff]  }
  0xb7   :  { %7513 = vmatprep.subr.bf16.mxu1 %v11835_v59  ;;  %v11905_v59 = vld [vmem:[#allocation5 + $0xa00] ss:$16 sps:$4 sm:$0xff]  }
  0xb9   :  { %7473 = vmatpush2.bf16.msra.mxu0 %v11830_v60  ;;  %v11910_v60 = vld [vmem:[#allocation5 + $0x9e4] ss:$16 sps:$4 sm:$0xff]  }
  0xba   :  { %7514 = vmatpush2.bf16.msra.mxu1 %v11833_v61  ;;  %7474 = vmatprep.subr.bf16.mxu0 %v11838_v62  ;;  %v11913_v61 = vld [vmem:[#allocation5 + $0xbe4] ss:$16 sps:$4 sm:$0xff]   ;;  %v11908_v62 = vld [vmem:[#allocation5 + $0x9e0] ss:$16 sps:$4 sm:$0xff]  }
  0xbb   :  { %7515 = vmatprep.subr.bf16.mxu1 %v11841_v63  ;;  %v11911_v63 = vld [vmem:[#allocation5 + $0xbe0] ss:$16 sps:$4 sm:$0xff]  }
  0xbd   :  { %7475 = vmatpush2.bf16.msra.mxu0 %v11836_v0  ;;  %v11916_v0 = vld [vmem:[#allocation5 + $0x9c4] ss:$16 sps:$4 sm:$0xff]  }
  0xbe   :  { %7516 = vmatpush2.bf16.msra.mxu1 %v11839_v1  ;;  %7476 = vmatprep.subr.bf16.mxu0 %v11844_v2  ;;  %v11919_v1 = vld [vmem:[#allocation5 + $0xbc4] ss:$16 sps:$4 sm:$0xff]   ;;  %v11914_v2 = vld [vmem:[#allocation5 + $0x9c0] ss:$16 sps:$4 sm:$0xff]  }
  0xbf   :  { %7517 = vmatprep.subr.bf16.mxu1 %v11847_v3  ;;  %v11917_v3 = vld [vmem:[#allocation5 + $0xbc0] ss:$16 sps:$4 sm:$0xff]  }
  0xc1   :  { %7477 = vmatpush2.bf16.msra.mxu0 %v11842_v4  ;;  %v11922_v4 = vld [vmem:[#allocation5 + $0x9a4] ss:$16 sps:$4 sm:$0xff]  }
  0xc2   :  { %7518 = vmatpush2.bf16.msra.mxu1 %v11845_v5  ;;  %7478 = vmatprep.subr.bf16.mxu0 %v11850_v6  ;;  %v11925_v5 = vld [vmem:[#allocation5 + $0xba4] ss:$16 sps:$4 sm:$0xff]   ;;  %v11920_v6 = vld [vmem:[#allocation5 + $0x9a0] ss:$16 sps:$4 sm:$0xff]  }
  0xc3   :  { %7519 = vmatprep.subr.bf16.mxu1 %v11853_v7  ;;  %v11923_v7 = vld [vmem:[#allocation5 + $0xba0] ss:$16 sps:$4 sm:$0xff]  }
  0xc5   :  { %7479 = vmatpush2.bf16.msra.mxu0 %v11848_v10  ;;  %v11928_v10 = vld [vmem:[#allocation5 + $0x984] ss:$16 sps:$4 sm:$0xff]  }
  0xc6   :  { %7520 = vmatpush2.bf16.msra.mxu1 %v11851_v11  ;;  %7480 = vmatprep.subr.bf16.mxu0 %v11856_v12  ;;  %v11931_v11 = vld [vmem:[#allocation5 + $0xb84] ss:$16 sps:$4 sm:$0xff]   ;;  %v11926_v12 = vld [vmem:[#allocation5 + $0x980] ss:$16 sps:$4 sm:$0xff]  }
  0xc7   :  { %7521 = vmatprep.subr.bf16.mxu1 %v11859_v13  ;;  %v11929_v13 = vld [vmem:[#allocation5 + $0xb80] ss:$16 sps:$4 sm:$0xff]  }
  0xc9   :  { %7481 = vmatpush2.bf16.msra.mxu0 %v11854_v14  ;;  %v11934_v14 = vld [vmem:[#allocation5 + $0x964] ss:$16 sps:$4 sm:$0xff]  }
  0xca   :  { %7522 = vmatpush2.bf16.msra.mxu1 %v11857_v15  ;;  %7532 = vmatprep.subr.bf16.mxu0 %v11862_v18  ;;  %v11937_v15 = vld [vmem:[#allocation5 + $0xb64] ss:$16 sps:$4 sm:$0xff]  }
  0xcb   :  { %7573 = vmatprep.subr.bf16.mxu1 %v11865_v19  ;;  %v11940_v18 = vld [vmem:[#allocation5 + $0x944] ss:$16 sps:$4 sm:$0xff]  }
  0xcc   :  { %7483 = vmatmul.mubr.bf16.vlgmr.msra.gmra.mxu0 %v13917_v20  ;;  %v11943_v19 = vld [vmem:[#allocation5 + $0xb44] ss:$16 sps:$4 sm:$0xff]  }
  0xcd   :  { %7524 = vmatmul.mubr.bf16.vlgmr.msra.gmra.mxu1 %v13919_v21  ;;  %7533 = vmatpush1.bf16.msra.mxu0 %v11860_v22  ;;  %v11938_v22 = vld [vmem:[#allocation5 + $0x940] ss:$16 sps:$4 sm:$0xff]  }
  0xce   :  { %7574 = vmatpush1.bf16.msra.mxu1 %v11863_v23  ;;  %7534 = vmatprep.subr.bf16.mxu0 %v11868_v24  ;;  %v11941_v23 = vld [vmem:[#allocation5 + $0xb40] ss:$16 sps:$4 sm:$0xff]   ;;  %v11946_v24 = vld [vmem:[#allocation5 + $0x924] ss:$16 sps:$4 sm:$0xff]  }
  0xcf   :  { %7575 = vmatprep.subr.bf16.mxu1 %v11871_v25  ;;  %7564 = vmatprep.mubr.bf16.mxu0 %v13923_v29  ;;  %v11949_v25 = vld [vmem:[#allocation5 + $0xb24] ss:$16 sps:$4 sm:$0xff]  }
  0xd0   :  { %7605 = vmatprep.mubr.bf16.mxu1 %v13925_v32 }
  0xd1   :  { %7535 = vmatpush1.bf16.msra.mxu0 %v11866_v27  ;;  %v11947_v27 = vld [vmem:[#allocation5 + $0xb20] ss:$16 sps:$4 sm:$0xff]  }
  0xd2   :  { %7576 = vmatpush1.bf16.msra.mxu1 %v11869_v28  ;;  %7536 = vmatprep.subr.bf16.mxu0 %v11874_v31  ;;  %v11952_v28 = vld [vmem:[#allocation5 + $0x904] ss:$16 sps:$4 sm:$0xff]   ;;  %v11950_v31 = vld [vmem:[#allocation5 + $0x900] ss:$16 sps:$4 sm:$0xff]  }
  0xd3   :  { %7577 = vmatprep.subr.bf16.mxu1 %v11877_v33  ;;  %v11953_v33 = vld [vmem:[#allocation5 + $0xb00] ss:$16 sps:$4 sm:$0xff]  }
  0xd5   :  { %7537 = vmatpush1.bf16.msra.mxu0 %v11872_v34  ;;  %v110_v34 = vld [vmem:[#allocation2 + $0x40] sm:$0xff] }
  0xd6   :  { %7578 = vmatpush1.bf16.msra.mxu1 %v11875_v35  ;;  %7538 = vmatprep.subr.bf16.mxu0 %v11880_v36  ;;  %v112_v35 = vld [vmem:[#allocation2 + $0x50] sm:$0xff] }
  0xd7   :  { %7579 = vmatprep.subr.bf16.mxu1 %v11883_v38  ;;  %v11958_v36 = vld [vmem:[#allocation5 + $0xce4] ss:$16 sps:$4 sm:$0xff]  }
  0xd8   :  { %v11961_v38 = vld [vmem:[#allocation5 + $0xee4] ss:$16 sps:$4 sm:$0xff]  }
  0xd9   :  { %7539 = vmatpush1.bf16.msra.mxu0 %v11878_v39  ;;  %v11956_v39 = vld [vmem:[#allocation5 + $0xce0] ss:$16 sps:$4 sm:$0xff]  }
  0xda   :  { %7580 = vmatpush1.bf16.msra.mxu1 %v11881_v41  ;;  %7540 = vmatprep.subr.bf16.mxu0 %v11886_v42  ;;  %v115_v41 = vld [vmem:[#allocation2 + $0x68] sm:$0xff]  ;;  %v13929_v42 = vpack.c.bf16 %v110_v34, %v110_v34  ;;  %v12022_v34 = vld [vmem:[#allocation5 + $0xd80] ss:$16 sps:$4 sm:$0xff]  }
  0xdb   :  { %7581 = vmatprep.subr.bf16.mxu1 %v11889_v43  ;;  %v13931_v43 = vpack.c.bf16 %v112_v35, %v112_v35  ;;  %v12025_v35 = vld [vmem:[#allocation5 + $0xf80] ss:$16 sps:$4 sm:$0xff]  }
  0xdd   :  { %7541 = vmatpush1.bf16.msra.mxu0 %v11884_v44  ;;  %v117_v44 = vld [vmem:[#allocation2 + $0x78] sm:$0xff] }
  0xde   :  { %7582 = vmatpush1.bf16.msra.mxu1 %v11887_v45  ;;  %7542 = vmatprep.subr.bf16.mxu0 %v11892_v46  ;;  %v11959_v45 = vld [vmem:[#allocation5 + $0xee0] ss:$16 sps:$4 sm:$0xff]   ;;  %v11964_v46 = vld [vmem:[#allocation5 + $0xcc4] ss:$16 sps:$4 sm:$0xff]  }
  0xdf   :  { %7583 = vmatprep.subr.bf16.mxu1 %v11895_v47  ;;  %v11967_v47 = vld [vmem:[#allocation5 + $0xec4] ss:$16 sps:$4 sm:$0xff]  }
  0xe1   :  { %7543 = vmatpush1.bf16.msra.mxu0 %v11890_v48  ;;  %v13933_v48 = vpack.c.bf16 %v115_v41, %v115_v41  ;;  %v12031_v41 = vld [vmem:[#allocation5 + $0xf60] ss:$16 sps:$4 sm:$0xff]  }
  0xe2   :  { %7584 = vmatpush1.bf16.msra.mxu1 %v11893_v50  ;;  %7544 = vmatprep.subr.bf16.mxu0 %v11898_v51  ;;  %v13935_v50 = vpack.c.bf16 %v117_v44, %v117_v44  ;;  %v11962_v51 = vld [vmem:[#allocation5 + $0xcc0] ss:$16 sps:$4 sm:$0xff]   ;;  %v12036_v44 = vld [vmem:[#allocation5 + $0xd44] ss:$16 sps:$4 sm:$0xff]  }
  0xe3   :  { %7585 = vmatprep.subr.bf16.mxu1 %v11901_v53  ;;  %v11965_v53 = vld [vmem:[#allocation5 + $0xec0] ss:$16 sps:$4 sm:$0xff]  }
  0xe5   :  { %7545 = vmatpush1.bf16.msra.mxu0 %v11896_v54  ;;  %v11970_v54 = vld [vmem:[#allocation5 + $0xca4] ss:$16 sps:$4 sm:$0xff]  }
  0xe6   :  { %7586 = vmatpush1.bf16.msra.mxu1 %v11899_v55  ;;  %7546 = vmatprep.subr.bf16.mxu0 %v11904_v56  ;;  %v11973_v55 = vld [vmem:[#allocation5 + $0xea4] ss:$16 sps:$4 sm:$0xff]   ;;  %v11968_v56 = vld [vmem:[#allocation5 + $0xca0] ss:$16 sps:$4 sm:$0xff]  }
  0xe7   :  { %7587 = vmatprep.subr.bf16.mxu1 %v11907_v57  ;;  %v11971_v57 = vld [vmem:[#allocation5 + $0xea0] ss:$16 sps:$4 sm:$0xff]  }
  0xe9   :  { %7547 = vmatpush1.bf16.msra.mxu0 %v11902_v58  ;;  %v11976_v58 = vld [vmem:[#allocation5 + $0xc84] ss:$16 sps:$4 sm:$0xff]  }
  0xea   :  { %7588 = vmatpush1.bf16.msra.mxu1 %v11905_v59  ;;  %7548 = vmatprep.subr.bf16.mxu0 %v11910_v60  ;;  %v11979_v59 = vld [vmem:[#allocation5 + $0xe84] ss:$16 sps:$4 sm:$0xff]   ;;  %v11974_v60 = vld [vmem:[#allocation5 + $0xc80] ss:$16 sps:$4 sm:$0xff]  }
  0xeb   :  { %7589 = vmatprep.subr.bf16.mxu1 %v11913_v61  ;;  %v11977_v61 = vld [vmem:[#allocation5 + $0xe80] ss:$16 sps:$4 sm:$0xff]  }
  0xed   :  { %7549 = vmatpush2.bf16.msra.mxu0 %v11908_v62  ;;  %v11982_v62 = vld [vmem:[#allocation5 + $0xc64] ss:$16 sps:$4 sm:$0xff]  }
  0xee   :  { %7590 = vmatpush2.bf16.msra.mxu1 %v11911_v63  ;;  %7550 = vmatprep.subr.bf16.mxu0 %v11916_v0  ;;  %v11985_v63 = vld [vmem:[#allocation5 + $0xe64] ss:$16 sps:$4 sm:$0xff]   ;;  %v11980_v0 = vld [vmem:[#allocation5 + $0xc60] ss:$16 sps:$4 sm:$0xff]  }
  0xef   :  { %7591 = vmatprep.subr.bf16.mxu1 %v11919_v1  ;;  %v11983_v1 = vld [vmem:[#allocation5 + $0xe60] ss:$16 sps:$4 sm:$0xff]  }
  0xf1   :  { %7551 = vmatpush2.bf16.msra.mxu0 %v11914_v2  ;;  %v11988_v2 = vld [vmem:[#allocation5 + $0xc44] ss:$16 sps:$4 sm:$0xff]  }
  0xf2   :  { %7592 = vmatpush2.bf16.msra.mxu1 %v11917_v3  ;;  %7552 = vmatprep.subr.bf16.mxu0 %v11922_v4  ;;  %v11991_v3 = vld [vmem:[#allocation5 + $0xe44] ss:$16 sps:$4 sm:$0xff]   ;;  %v11986_v4 = vld [vmem:[#allocation5 + $0xc40] ss:$16 sps:$4 sm:$0xff]  }
  0xf3   :  { %7593 = vmatprep.subr.bf16.mxu1 %v11925_v5  ;;  %v11989_v5 = vld [vmem:[#allocation5 + $0xe40] ss:$16 sps:$4 sm:$0xff]  }
  0xf5   :  { %7553 = vmatpush2.bf16.msra.mxu0 %v11920_v6  ;;  %v11994_v6 = vld [vmem:[#allocation5 + $0xc24] ss:$16 sps:$4 sm:$0xff]  }
  0xf6   :  { %7594 = vmatpush2.bf16.msra.mxu1 %v11923_v7  ;;  %7554 = vmatprep.subr.bf16.mxu0 %v11928_v10  ;;  %v11997_v7 = vld [vmem:[#allocation5 + $0xe24] ss:$16 sps:$4 sm:$0xff]   ;;  %v11992_v10 = vld [vmem:[#allocation5 + $0xc20] ss:$16 sps:$4 sm:$0xff]  }
  0xf7   :  { %7595 = vmatprep.subr.bf16.mxu1 %v11931_v11  ;;  %v11995_v11 = vld [vmem:[#allocation5 + $0xe20] ss:$16 sps:$4 sm:$0xff]  }
  0xf9   :  { %7555 = vmatpush2.bf16.msra.mxu0 %v11926_v12  ;;  %v12000_v12 = vld [vmem:[#allocation5 + $0xc04] ss:$16 sps:$4 sm:$0xff]  }
  0xfa   :  { %7596 = vmatpush2.bf16.msra.mxu1 %v11929_v13  ;;  %7556 = vmatprep.subr.bf16.mxu0 %v11934_v14  ;;  %v12003_v13 = vld [vmem:[#allocation5 + $0xe04] ss:$16 sps:$4 sm:$0xff]   ;;  %v11998_v14 = vld [vmem:[#allocation5 + $0xc00] ss:$16 sps:$4 sm:$0xff]  }
  0xfb   :  { %7597 = vmatprep.subr.bf16.mxu1 %v11937_v15  ;;  %v12001_v15 = vld [vmem:[#allocation5 + $0xe00] ss:$16 sps:$4 sm:$0xff]  }
  0xfd   :  { %7557 = vmatpush2.bf16.msra.mxu0 %v11932_v16  ;;  %v12006_v16 = vld [vmem:[#allocation5 + $0xde4] ss:$16 sps:$4 sm:$0xff]  }
  0xfe   :  { %7598 = vmatpush2.bf16.msra.mxu1 %v11935_v17  ;;  %7558 = vmatprep.subr.bf16.mxu0 %v11940_v18  ;;  %v12009_v17 = vld [vmem:[#allocation5 + $0xfe4] ss:$16 sps:$4 sm:$0xff]   ;;  %v12004_v18 = vld [vmem:[#allocation5 + $0xde0] ss:$16 sps:$4 sm:$0xff]  }
  0xff   :  { %7599 = vmatprep.subr.bf16.mxu1 %v11943_v19  ;;  %v12007_v19 = vld [vmem:[#allocation5 + $0xfe0] ss:$16 sps:$4 sm:$0xff]  }
 0x101   :  { %7559 = vmatpush2.bf16.msra.mxu0 %v11938_v22  ;;  %v12012_v22 = vld [vmem:[#allocation5 + $0xdc4] ss:$16 sps:$4 sm:$0xff]  }
 0x102   :  { %7600 = vmatpush2.bf16.msra.mxu1 %v11941_v23  ;;  %7560 = vmatprep.subr.bf16.mxu0 %v11946_v24  ;;  %v12015_v23 = vld [vmem:[#allocation5 + $0xfc4] ss:$16 sps:$4 sm:$0xff]   ;;  %v12010_v24 = vld [vmem:[#allocation5 + $0xdc0] ss:$16 sps:$4 sm:$0xff]  }
 0x103   :  { %7601 = vmatprep.subr.bf16.mxu1 %v11949_v25  ;;  %v12013_v25 = vld [vmem:[#allocation5 + $0xfc0] ss:$16 sps:$4 sm:$0xff]  }
 0x105   :  { %7561 = vmatpush2.bf16.msra.mxu0 %v11944_v26  ;;  %v12018_v26 = vld [vmem:[#allocation5 + $0xda4] ss:$16 sps:$4 sm:$0xff]  }
 0x106   :  { %7602 = vmatpush2.bf16.msra.mxu1 %v11947_v27  ;;  %7562 = vmatprep.subr.bf16.mxu0 %v11952_v28  ;;  %v12021_v27 = vld [vmem:[#allocation5 + $0xfa4] ss:$16 sps:$4 sm:$0xff]   ;;  %v12016_v28 = vld [vmem:[#allocation5 + $0xda0] ss:$16 sps:$4 sm:$0xff]  }
 0x107   :  { %7603 = vmatprep.subr.bf16.mxu1 %v11955_v30  ;;  %v12019_v30 = vld [vmem:[#allocation5 + $0xfa0] ss:$16 sps:$4 sm:$0xff]  }
 0x109   :  { %7563 = vmatpush2.bf16.msra.mxu0 %v11950_v31  ;;  %v12024_v31 = vld [vmem:[#allocation5 + $0xd84] ss:$16 sps:$4 sm:$0xff]  }
 0x10a   :  { %7604 = vmatpush2.bf16.msra.mxu1 %v11953_v33  ;;  %7614 = vmatprep.subr.bf16.mxu0 %v11958_v36  ;;  %v12027_v33 = vld [vmem:[#allocation5 + $0xf84] ss:$16 sps:$4 sm:$0xff]  }
 0x10b   :  { %7655 = vmatprep.subr.bf16.mxu1 %v11961_v38  ;;  %v12030_v36 = vld [vmem:[#allocation5 + $0xd64] ss:$16 sps:$4 sm:$0xff]  }
 0x10c   :  { %7565 = vmatmul.mubr.bf16.vlgmr.msra.gmra.mxu0 %v13929_v42  ;;  %v12033_v38 = vld [vmem:[#allocation5 + $0xf64] ss:$16 sps:$4 sm:$0xff]  }
 0x10d   :  { %7606 = vmatmul.mubr.bf16.vlgmr.msra.gmra.mxu1 %v13931_v43  ;;  %7615 = vmatpush1.bf16.msra.mxu0 %v11956_v39  ;;  %v12028_v39 = vld [vmem:[#allocation5 + $0xd60] ss:$16 sps:$4 sm:$0xff]  }
 0x10e   :  { %7656 = vmatpush1.bf16.msra.mxu1 %v11959_v45  ;;  %7616 = vmatprep.subr.bf16.mxu0 %v11964_v46  ;;  %v12039_v45 = vld [vmem:[#allocation5 + $0xf44] ss:$16 sps:$4 sm:$0xff]   ;;  %v12034_v46 = vld [vmem:[#allocation5 + $0xd40] ss:$16 sps:$4 sm:$0xff]  }
 0x10f   :  { %7657 = vmatprep.subr.bf16.mxu1 %v11967_v47  ;;  %7646 = vmatprep.mubr.bf16.mxu0 %v13933_v48  ;;  %v12037_v47 = vld [vmem:[#allocation5 + $0xf40] ss:$16 sps:$4 sm:$0xff]  }
 0x110   :  { %7687 = vmatprep.mubr.bf16.mxu1 %v13935_v50 }
 0x111   :  { %7617 = vmatpush1.bf16.msra.mxu0 %v11962_v51  ;;  %v1372_v51 = vlaneseq }
 0x112   :  { %7658 = vmatpush1.bf16.msra.mxu1 %v11965_v53  ;;  %7618 = vmatprep.subr.bf16.mxu0 %v11970_v54  ;;  %v12042_v53 = vld [vmem:[#allocation5 + $0xd24] ss:$16 sps:$4 sm:$0xff]  }
 0x113   :  { %7659 = vmatprep.subr.bf16.mxu1 %v11973_v55  ;;  %v12045_v54 = vld [vmem:[#allocation5 + $0xf24] ss:$16 sps:$4 sm:$0xff]   ;;  %v12040_v55 = vld [vmem:[#allocation5 + $0xd20] ss:$16 sps:$4 sm:$0xff]  }
 0x115   :  { %7619 = vmatpush1.bf16.msra.mxu0 %v11968_v56  ;;  %v12043_v56 = vld [vmem:[#allocation5 + $0xf20] ss:$16 sps:$4 sm:$0xff]  }
 0x116   :  { %7660 = vmatpush1.bf16.msra.mxu1 %v11971_v57  ;;  %7620 = vmatprep.subr.bf16.mxu0 %v11976_v58  ;;  %v13941_v57 = vshrl.u32 %v1372_v51, 7  ;;  %v12048_v58 = vld [vmem:[#allocation5 + $0xd04] ss:$16 sps:$4 sm:$0xff]   ;;  %v12073_v51 = vld [vmem:[#allocation5 + $0x1280] ss:$16 sps:$4 sm:$0xff]  }
 0x117   :  { %7661 = vmatprep.subr.bf16.mxu1 %v11979_v59  ;;  %v12051_v59 = vld [vmem:[#allocation5 + $0xf04] ss:$16 sps:$4 sm:$0xff]  }
 0x119   :  { %7621 = vmatpush1.bf16.msra.mxu0 %v11974_v60  ;;  %v12046_v60 = vld [vmem:[#allocation5 + $0xd00] ss:$16 sps:$4 sm:$0xff]  }
 0x11a   :  { %7662 = vmatpush1.bf16.msra.mxu1 %v11977_v61  ;;  %7622 = vmatprep.subr.bf16.mxu0 %v11982_v62  ;;  %v12049_v61 = vld [vmem:[#allocation5 + $0xf00] ss:$16 sps:$4 sm:$0xff]  }
 0x11b   :  { %7663 = vmatprep.subr.bf16.mxu1 %v11985_v63  ;;  %v1370_v62 = vld [vmem:[#allocation7] sm:$0xf]  ;;  %v114_v63 = vld [vmem:[#allocation2 + $0x60] sm:$0xff] }
 0x11d   :  { %7623 = vmatpush1.bf16.msra.mxu0 %v11980_v0  ;;  %v1374_v0 = vsub.s32 0, %v13941_v57 }
 0x11e   :  { %7664 = vmatpush1.bf16.msra.mxu1 %v11983_v1  ;;  %7624 = vmatprep.subr.bf16.mxu0 %v11988_v2  ;;  %v116_v1 = vld [vmem:[#allocation2 + $0x70] sm:$0xff] }
 0x11f   :  { %7665 = vmatprep.subr.bf16.mxu1 %v11991_v3  ;;  %v12054_v2 = vld [vmem:[#allocation5 + $0x10e4] ss:$16 sps:$4 sm:$0xff]  }
 0x120   :  { %v12057_v3 = vld [vmem:[#allocation5 + $0x12e4] ss:$16 sps:$4 sm:$0xff]  }
 0x121   :  { %7625 = vmatpush1.bf16.msra.mxu0 %v11986_v4  ;;  %v12052_v4 = vld [vmem:[#allocation5 + $0x10e0] ss:$16 sps:$4 sm:$0xff]  }
 0x122   :  { %7666 = vmatpush1.bf16.msra.mxu1 %v11989_v5  ;;  %7626 = vmatprep.subr.bf16.mxu0 %v11994_v6  ;;  %v1378_v5 = vsub.s32 1, %v13941_v57  ;;  %v119_v6 = vld [vmem:[#allocation2 + $0x88] sm:$0xff] }
 0x123   :  { %7667 = vmatprep.subr.bf16.mxu1 %v11997_v7  ;;  %v13945_v7 = vpack.c.bf16 %v114_v63, %v114_v63  ;;  %v12093_v63 = vld [vmem:[#allocation5 + $0x1224] ss:$16 sps:$4 sm:$0xff]  }
 0x125   :  { %7627 = vmatpush1.bf16.msra.mxu0 %v11992_v10  ;;  %v13947_v10 = vpack.c.bf16 %v116_v1, %v116_v1  ;;  %v12088_v1 = vld [vmem:[#allocation5 + $0x1020] ss:$16 sps:$4 sm:$0xff]  }
 0x126   :  { %7668 = vmatpush1.bf16.msra.mxu1 %v11995_v11  ;;  %7628 = vmatprep.subr.bf16.mxu0 %v12000_v12  ;;  %v121_v11 = vld [vmem:[#allocation2 + $0x98] sm:$0xff]  ;;  %v1375_v12 = vrot.slane %v1370_v62, %v1374_v0 }
 0x127   :  { %7669 = vmatprep.subr.bf16.mxu1 %v12003_v13  ;;  %v12055_v13 = vld [vmem:[#allocation5 + $0x12e0] ss:$16 sps:$4 sm:$0xff]  }
 0x129   :  { %7629 = vmatpush1.bf16.msra.mxu0 %v11998_v14  ;;  %v12060_v14 = vld [vmem:[#allocation5 + $0x10c4] ss:$16 sps:$4 sm:$0xff]  }
 0x12a   :  { %7670 = vmatpush1.bf16.msra.mxu1 %v12001_v15  ;;  %7630 = vmatprep.subr.bf16.mxu0 %v12006_v16  ;;  %v12063_v15 = vld [vmem:[#allocation5 + $0x12c4] ss:$16 sps:$4 sm:$0xff]   ;;  %v1379_v16 = vrot.slane %v1370_v62, %v1378_v5 }
 0x12b   :  { %7671 = vmatprep.subr.bf16.mxu1 %v12009_v17  ;;  %v13953_v17 = vpack.c.bf16 %v119_v6, %v119_v6  ;;  %v12090_v62 = vld [vmem:[#allocation5 + $0x1024] ss:$16 sps:$4 sm:$0xff]   ;;  %v12094_v6 = vld [vmem:[#allocation5 + $0x1000] ss:$16 sps:$4 sm:$0xff]  }
 0x12d   :  { %7631 = vmatpush2.bf16.msra.mxu0 %v12004_v18  ;;  %v13955_v18 = vpack.c.bf16 %v121_v11, %v121_v11  ;;  %v12097_v11 = vld [vmem:[#allocation5 + $0x1200] ss:$16 sps:$4 sm:$0xff]  }
 0x12e   :  { %7672 = vmatpush2.bf16.msra.mxu1 %v12007_v19  ;;  %7632 = vmatprep.subr.bf16.mxu0 %v12012_v22 }
 0x12f   :  { %7673 = vmatprep.subr.bf16.mxu1 %v12015_v23  ;;  %v12058_v23 = vld [vmem:[#allocation5 + $0x10c0] ss:$16 sps:$4 sm:$0xff]  }
 0x131   :  { %7633 = vmatpush2.bf16.msra.mxu0 %v12010_v24 }
 0x132   :  { %7674 = vmatpush2.bf16.msra.mxu1 %v12013_v25  ;;  %7634 = vmatprep.subr.bf16.mxu0 %v12018_v26  ;;  %v12061_v25 = vld [vmem:[#allocation5 + $0x12c0] ss:$16 sps:$4 sm:$0xff]  }
 0x133   :  { %7675 = vmatprep.subr.bf16.mxu1 %v12021_v27 }
 0x135   :  { %7635 = vmatpush2.bf16.msra.mxu0 %v12016_v28  ;;  %v12066_v28 = vld [vmem:[#allocation5 + $0x10a4] ss:$16 sps:$4 sm:$0xff]  }
 0x136   :  { %7676 = vmatpush2.bf16.msra.mxu1 %v12019_v30  ;;  %7636 = vmatprep.subr.bf16.mxu0 %v12024_v31  ;;  %v12069_v30 = vld [vmem:[#allocation5 + $0x12a4] ss:$16 sps:$4 sm:$0xff]  }
 0x137   :  { %7677 = vmatprep.subr.bf16.mxu1 %v12027_v33 }
 0x139   :  { %7637 = vmatpush2.bf16.msra.mxu0 %v12022_v34 }
 0x13a   :  { %7678 = vmatpush2.bf16.msra.mxu1 %v12025_v35  ;;  %7638 = vmatprep.subr.bf16.mxu0 %v12030_v36  ;;  %v12064_v36 = vld [vmem:[#allocation5 + $0x10a0] ss:$16 sps:$4 sm:$0xff]  }
 0x13b   :  { %7679 = vmatprep.subr.bf16.mxu1 %v12033_v38 }
 0x13d   :  { %7639 = vmatpush2.bf16.msra.mxu0 %v12028_v39  ;;  %v12067_v39 = vld [vmem:[#allocation5 + $0x12a0] ss:$16 sps:$4 sm:$0xff]  }
 0x13e   :  { %7680 = vmatpush2.bf16.msra.mxu1 %v12031_v41  ;;  %7640 = vmatprep.subr.bf16.mxu0 %v12036_v44 }
 0x13f   :  { %7681 = vmatprep.subr.bf16.mxu1 %v12039_v45  ;;  %v12072_v45 = vld [vmem:[#allocation5 + $0x1084] ss:$16 sps:$4 sm:$0xff]  }
 0x141   :  { %7641 = vmatpush2.bf16.msra.mxu0 %v12034_v46  ;;  %v12075_v46 = vld [vmem:[#allocation5 + $0x1284] ss:$16 sps:$4 sm:$0xff]  }
 0x142   :  { %7682 = vmatpush2.bf16.msra.mxu1 %v12037_v47  ;;  %7642 = vmatprep.subr.bf16.mxu0 %v12042_v53  ;;  %v12070_v47 = vld [vmem:[#allocation5 + $0x1080] ss:$16 sps:$4 sm:$0xff]   ;;  %v12078_v53 = vld [vmem:[#allocation5 + $0x1064] ss:$16 sps:$4 sm:$0xff]  }
 0x143   :  { %7683 = vmatprep.subr.bf16.mxu1 %v12045_v54  ;;  %v12081_v54 = vld [vmem:[#allocation5 + $0x1264] ss:$16 sps:$4 sm:$0xff]  }
 0x145   :  { %7643 = vmatpush2.bf16.msra.mxu0 %v12040_v55  ;;  %v12076_v55 = vld [vmem:[#allocation5 + $0x1060] ss:$16 sps:$4 sm:$0xff]  }
 0x146   :  { %7684 = vmatpush2.bf16.msra.mxu1 %v12043_v56  ;;  %7644 = vmatprep.subr.bf16.mxu0 %v12048_v58  ;;  %v12079_v56 = vld [vmem:[#allocation5 + $0x1260] ss:$16 sps:$4 sm:$0xff]   ;;  %v12084_v58 = vld [vmem:[#allocation5 + $0x1044] ss:$16 sps:$4 sm:$0xff]  }
 0x147   :  { %7685 = vmatprep.subr.bf16.mxu1 %v12051_v59  ;;  %v12087_v59 = vld [vmem:[#allocation5 + $0x1244] ss:$16 sps:$4 sm:$0xff]  }
 0x149   :  { %7645 = vmatpush2.bf16.msra.mxu0 %v12046_v60  ;;  %v12082_v60 = vld [vmem:[#allocation5 + $0x1040] ss:$16 sps:$4 sm:$0xff]  }
 0x14a   :  { %7686 = vmatpush2.bf16.msra.mxu1 %v12049_v61  ;;  %7696 = vmatprep.subr.bf16.mxu0 %v12054_v2  ;;  %v12085_v61 = vld [vmem:[#allocation5 + $0x1240] ss:$16 sps:$4 sm:$0xff]  }
 0x14b   :  { %7737 = vmatprep.subr.bf16.mxu1 %v12057_v3  ;;  %v12091_v2 = vld [vmem:[#allocation5 + $0x1220] ss:$16 sps:$4 sm:$0xff]   ;;  %v12096_v3 = vld [vmem:[#allocation5 + $0x1004] ss:$16 sps:$4 sm:$0xff]  }
 0x14c   :  { %v7402_v19 = vpop.f32.mrf.mxu0  ;;  %7647 = vmatmul.mubr.bf16.vlgmr.msra.gmra.mxu0 %v13945_v7 }
 0x14d   :  { %v7443_v22 = vpop.f32.mrf.mxu1  ;;  %7688 = vmatmul.mubr.bf16.vlgmr.msra.gmra.mxu1 %v13947_v10  ;;  %v7403_v24 = vadd.f32 %v7402_v19, %v1375_v12  ;;  %7697 = vmatpush1.bf16.msra.mxu0 %v12052_v4  ;;  %v12099_v4 = vld [vmem:[#allocation5 + $0x1204] ss:$16 sps:$4 sm:$0xff]  }
 0x14e   :  { %7738 = vmatpush1.bf16.msra.mxu1 %v12055_v13  ;;  %v7404_v26 = vpop.f32.mrf.mxu0  ;;  %7698 = vmatprep.subr.bf16.mxu0 %v12060_v14  ;;  %v12102_v12 = vld [vmem:[#allocation5 + $0x11e4] ss:$16 sps:$4 sm:$0xff]   ;;  %v12100_v14 = vld [vmem:[#allocation5 + $0x11e0] ss:$16 sps:$4 sm:$0xff]  }
 0x14f   :  { %v7445_v27 = vpop.f32.mrf.mxu1  ;;  %7739 = vmatprep.subr.bf16.mxu1 %v12063_v15  ;;  %v13959_v31 = vadd.f32 %v7443_v22, %v7403_v24  ;;  %v7405_v33 = vadd.f32 %v7404_v26, %v1379_v16  ;;  %7728 = vmatprep.mubr.bf16.mxu0 %v13953_v17  ;;  %v12105_v13 = vld [vmem:[#allocation5 + $0x13e4] ss:$16 sps:$4 sm:$0xff]   ;;  %v12103_v15 = vld [vmem:[#allocation5 + $0x13e0] ss:$16 sps:$4 sm:$0xff]  }
 0x150   :  { %7769 = vmatprep.mubr.bf16.mxu1 %v13955_v18  ;;  %v7406_v34 = vpop.f32.mrf.mxu0  ;;  %v12108_v16 = vld [vmem:[#allocation5 + $0x11c4] ss:$16 sps:$4 sm:$0xff]   ;;  %v12106_v22 = vld [vmem:[#allocation5 + $0x11c0] ss:$16 sps:$4 sm:$0xff]  }
 0x151   :  { %v7447_v35 = vpop.f32.mrf.mxu1  ;;  %v13963_v38 = vadd.f32 %v7445_v27, %v7405_v33  ;;  %7699 = vmatpush1.bf16.msra.mxu0 %v12058_v23  ;;  %v12111_v19 = vld [vmem:[#allocation5 + $0x13c4] ss:$16 sps:$4 sm:$0xff]   ;;  %v12109_v23 = vld [vmem:[#allocation5 + $0x13c0] ss:$16 sps:$4 sm:$0xff]  }
 0x152   :  { %7740 = vmatpush1.bf16.msra.mxu1 %v12061_v25  ;;  %v7407_v41 = vpop.f32.mrf.mxu0  ;;  %7700 = vmatprep.subr.bf16.mxu0 %v12066_v28  ;;  %v12114_v24 = vld [vmem:[#allocation5 + $0x11a4] ss:$16 sps:$4 sm:$0xff]   ;;  %v12112_v26 = vld [vmem:[#allocation5 + $0x11a0] ss:$16 sps:$4 sm:$0xff]  }
 0x153   :  { %v7448_v44 = vpop.f32.mrf.mxu1  ;;  %7741 = vmatprep.subr.bf16.mxu1 %v12069_v30  ;;  %v12117_v25 = vld [vmem:[#allocation5 + $0x13a4] ss:$16 sps:$4 sm:$0xff]   ;;  %v12115_v27 = vld [vmem:[#allocation5 + $0x13a0] ss:$16 sps:$4 sm:$0xff]  }
 0x154   :  { %v12120_v28 = vld [vmem:[#allocation5 + $0x1184] ss:$16 sps:$4 sm:$0xff]   ;;  %v12118_v33 = vld [vmem:[#allocation5 + $0x1180] ss:$16 sps:$4 sm:$0xff]  }
 0x155   :  { %7701 = vmatpush1.bf16.msra.mxu0 %v12064_v36  ;;  %v12123_v30 = vld [vmem:[#allocation5 + $0x1384] ss:$16 sps:$4 sm:$0xff]   ;;  %v12121_v34 = vld [vmem:[#allocation5 + $0x1380] ss:$16 sps:$4 sm:$0xff]  }
 0x156   :  { %7742 = vmatpush1.bf16.msra.mxu1 %v12067_v39  ;;  %7702 = vmatprep.subr.bf16.mxu0 %v12072_v45  ;;  %v12126_v35 = vld [vmem:[#allocation5 + $0x1164] ss:$16 sps:$4 sm:$0xff]   ;;  %v12124_v39 = vld [vmem:[#allocation5 + $0x1160] ss:$16 sps:$4 sm:$0xff]  }
 0x157   :  { %7743 = vmatprep.subr.bf16.mxu1 %v12075_v46  ;;  %v12129_v36 = vld [vmem:[#allocation5 + $0x1364] ss:$16 sps:$4 sm:$0xff]   ;;  %v12127_v41 = vld [vmem:[#allocation5 + $0x1360] ss:$16 sps:$4 sm:$0xff]  }
 0x158   :  { %v12132_v44 = vld [vmem:[#allocation5 + $0x1144] ss:$16 sps:$4 sm:$0xff]   ;;  %v12130_v46 = vld [vmem:[#allocation5 + $0x1140] ss:$16 sps:$4 sm:$0xff]  }
 0x159   :  { %7703 = vmatpush1.bf16.msra.mxu0 %v12070_v47  ;;  %v12135_v45 = vld [vmem:[#allocation5 + $0x1344] ss:$16 sps:$4 sm:$0xff]   ;;  %v12133_v47 = vld [vmem:[#allocation5 + $0x1340] ss:$16 sps:$4 sm:$0xff]  }
 0x15a   :  { %7744 = vmatpush1.bf16.msra.mxu1 %v12073_v51  ;;  %7704 = vmatprep.subr.bf16.mxu0 %v12078_v53  ;;  %v12138_v51 = vld [vmem:[#allocation5 + $0x1124] ss:$16 sps:$4 sm:$0xff]  }
 0x15b   :  { %7745 = vmatprep.subr.bf16.mxu1 %v12081_v54  ;;  %v12141_v53 = vld [vmem:[#allocation5 + $0x1324] ss:$16 sps:$4 sm:$0xff]   ;;  %v12136_v54 = vld [vmem:[#allocation5 + $0x1120] ss:$16 sps:$4 sm:$0xff]  }
 0x15d   :  { %7705 = vmatpush1.bf16.msra.mxu0 %v12076_v55  ;;  %v12139_v55 = vld [vmem:[#allocation5 + $0x1320] ss:$16 sps:$4 sm:$0xff]  }
 0x15e   :  { %7746 = vmatpush1.bf16.msra.mxu1 %v12079_v56  ;;  %7706 = vmatprep.subr.bf16.mxu0 %v12084_v58  ;;  %v12144_v56 = vld [vmem:[#allocation5 + $0x1104] ss:$16 sps:$4 sm:$0xff]  }
 0x15f   :  { %7747 = vmatprep.subr.bf16.mxu1 %v12087_v59  ;;  %v12147_v58 = vld [vmem:[#allocation5 + $0x1304] ss:$16 sps:$4 sm:$0xff]   ;;  %v12142_v59 = vld [vmem:[#allocation5 + $0x1100] ss:$16 sps:$4 sm:$0xff]  }
 0x161   :  { %7707 = vmatpush1.bf16.msra.mxu0 %v12082_v60  ;;  %v12145_v60 = vld [vmem:[#allocation5 + $0x1300] ss:$16 sps:$4 sm:$0xff]  }
 0x162   :  { %7748 = vmatpush1.bf16.msra.mxu1 %v12085_v61  ;;  %7708 = vmatprep.subr.bf16.mxu0 %v12090_v62  ;;  %v118_v61 = vld [vmem:[#allocation2 + $0x80] sm:$0xff]  ;;  %v120_v62 = vld [vmem:[#allocation2 + $0x90] sm:$0xff] }
 0x163   :  { %7749 = vmatprep.subr.bf16.mxu1 %v12093_v63  ;;  %v12150_v63 = vld [vmem:[#allocation5 + $0x14e4] ss:$16 sps:$4 sm:$0xff]  }
 0x165   :  { %7709 = vmatpush1.bf16.msra.mxu0 %v12088_v1  ;;  %v12153_v1 = vld [vmem:[#allocation5 + $0x16e4] ss:$16 sps:$4 sm:$0xff]  }
 0x166   :  { %7750 = vmatpush1.bf16.msra.mxu1 %v12091_v2  ;;  %7710 = vmatprep.subr.bf16.mxu0 %v12096_v3  ;;  %v13965_v2 = vpack.c.bf16 %v118_v61, %v118_v61  ;;  %v13967_v3 = vpack.c.bf16 %v120_v62, %v120_v62  ;;  %v12181_v61 = vld [vmem:[#allocation5 + $0x1640] ss:$16 sps:$4 sm:$0xff]   ;;  %v12186_v62 = vld [vmem:[#allocation5 + $0x1424] ss:$16 sps:$4 sm:$0xff]  }
 0x167   :  { %7751 = vmatprep.subr.bf16.mxu1 %v12099_v4  ;;  %v123_v4 = vld [vmem:[#allocation2 + $0xa8] sm:$0xff] }
 0x169   :  { %7711 = vmatpush1.bf16.msra.mxu0 %v12094_v6  ;;  %v125_v6 = vld [vmem:[#allocation2 + $0xb8] sm:$0xff] }
 0x16a   :  { %7752 = vmatpush1.bf16.msra.mxu1 %v12097_v11  ;;  %7712 = vmatprep.subr.bf16.mxu0 %v12102_v12  ;;  %v12148_v11 = vld [vmem:[#allocation5 + $0x14e0] ss:$16 sps:$4 sm:$0xff]  }
 0x16b   :  { %7753 = vmatprep.subr.bf16.mxu1 %v12105_v13  ;;  %v12151_v12 = vld [vmem:[#allocation5 + $0x16e0] ss:$16 sps:$4 sm:$0xff]   ;;  %v12156_v13 = vld [vmem:[#allocation5 + $0x14c4] ss:$16 sps:$4 sm:$0xff]  }
 0x16d   :  { %7713 = vmatpush2.bf16.msra.mxu0 %v12100_v14  ;;  %v12159_v14 = vld [vmem:[#allocation5 + $0x16c4] ss:$16 sps:$4 sm:$0xff]  }
 0x16e   :  { %7754 = vmatpush2.bf16.msra.mxu1 %v12103_v15  ;;  %7714 = vmatprep.subr.bf16.mxu0 %v12108_v16  ;;  %v12154_v15 = vld [vmem:[#allocation5 + $0x14c0] ss:$16 sps:$4 sm:$0xff]  }
 0x16f   :  { %7755 = vmatprep.subr.bf16.mxu1 %v12111_v19  ;;  %v12157_v16 = vld [vmem:[#allocation5 + $0x16c0] ss:$16 sps:$4 sm:$0xff]   ;;  %v13969_v19 = vpack.c.bf16 %v123_v4, %v123_v4 }
 0x170   :  { %v12187_v4 = vld [vmem:[#allocation5 + $0x1620] ss:$16 sps:$4 sm:$0xff]  }
 0x171   :  { %7715 = vmatpush2.bf16.msra.mxu0 %v12106_v22  ;;  %v13971_v22 = vpack.c.bf16 %v125_v6, %v125_v6  ;;  %v12192_v6 = vld [vmem:[#allocation5 + $0x1404] ss:$16 sps:$4 sm:$0xff]  }
 0x172   :  { %7756 = vmatpush2.bf16.msra.mxu1 %v12109_v23  ;;  %7716 = vmatprep.subr.bf16.mxu0 %v12114_v24 }
 0x173   :  { %7757 = vmatprep.subr.bf16.mxu1 %v12117_v25 }
 0x175   :  { %7717 = vmatpush2.bf16.msra.mxu0 %v12112_v26 }
 0x176   :  { %7758 = vmatpush2.bf16.msra.mxu1 %v12115_v27  ;;  %7718 = vmatprep.subr.bf16.mxu0 %v12120_v28  ;;  %v12162_v28 = vld [vmem:[#allocation5 + $0x14a4] ss:$16 sps:$4 sm:$0xff]  }
 0x177   :  { %7759 = vmatprep.subr.bf16.mxu1 %v12123_v30  ;;  %v12165_v30 = vld [vmem:[#allocation5 + $0x16a4] ss:$16 sps:$4 sm:$0xff]  }
 0x179   :  { %7719 = vmatpush2.bf16.msra.mxu0 %v12118_v33 }
 0x17a   :  { %7760 = vmatpush2.bf16.msra.mxu1 %v12121_v34  ;;  %7720 = vmatprep.subr.bf16.mxu0 %v12126_v35  ;;  %v12160_v35 = vld [vmem:[#allocation5 + $0x14a0] ss:$16 sps:$4 sm:$0xff]  }
 0x17b   :  { %7761 = vmatprep.subr.bf16.mxu1 %v12129_v36  ;;  %v12163_v36 = vld [vmem:[#allocation5 + $0x16a0] ss:$16 sps:$4 sm:$0xff]  }
 0x17d   :  { %7721 = vmatpush2.bf16.msra.mxu0 %v12124_v39 }
 0x17e   :  { %7762 = vmatpush2.bf16.msra.mxu1 %v12127_v41  ;;  %7722 = vmatprep.subr.bf16.mxu0 %v12132_v44 }
 0x17f   :  { %7763 = vmatprep.subr.bf16.mxu1 %v12135_v45 }
 0x181   :  { %7723 = vmatpush2.bf16.msra.mxu0 %v12130_v46  ;;  %v12168_v46 = vld [vmem:[#allocation5 + $0x1484] ss:$16 sps:$4 sm:$0xff]  }
 0x182   :  { %7764 = vmatpush2.bf16.msra.mxu1 %v12133_v47  ;;  %7724 = vmatprep.subr.bf16.mxu0 %v12138_v51  ;;  %v12171_v47 = vld [vmem:[#allocation5 + $0x1684] ss:$16 sps:$4 sm:$0xff]   ;;  %v12169_v51 = vld [vmem:[#allocation5 + $0x1680] ss:$16 sps:$4 sm:$0xff]  }
 0x183   :  { %7765 = vmatprep.subr.bf16.mxu1 %v12141_v53  ;;  %v12174_v53 = vld [vmem:[#allocation5 + $0x1464] ss:$16 sps:$4 sm:$0xff]  }
 0x185   :  { %7725 = vmatpush2.bf16.msra.mxu0 %v12136_v54  ;;  %v12177_v54 = vld [vmem:[#allocation5 + $0x1664] ss:$16 sps:$4 sm:$0xff]  }
 0x186   :  { %7766 = vmatpush2.bf16.msra.mxu1 %v12139_v55  ;;  %7726 = vmatprep.subr.bf16.mxu0 %v12144_v56  ;;  %v12172_v55 = vld [vmem:[#allocation5 + $0x1460] ss:$16 sps:$4 sm:$0xff]  }
 0x187   :  { %7767 = vmatprep.subr.bf16.mxu1 %v12147_v58  ;;  %v12175_v56 = vld [vmem:[#allocation5 + $0x1660] ss:$16 sps:$4 sm:$0xff]   ;;  %v12180_v58 = vld [vmem:[#allocation5 + $0x1444] ss:$16 sps:$4 sm:$0xff]  }
 0x189   :  { %7727 = vmatpush2.bf16.msra.mxu0 %v12142_v59  ;;  %v12183_v59 = vld [vmem:[#allocation5 + $0x1644] ss:$16 sps:$4 sm:$0xff]  }
 0x18a   :  { %7768 = vmatpush2.bf16.msra.mxu1 %v12145_v60  ;;  %7778 = vmatprep.subr.bf16.mxu0 %v12150_v63  ;;  %v12178_v60 = vld [vmem:[#allocation5 + $0x1440] ss:$16 sps:$4 sm:$0xff]   ;;  %v12189_v63 = vld [vmem:[#allocation5 + $0x1624] ss:$16 sps:$4 sm:$0xff]  }
 0x18b   :  { %7819 = vmatprep.subr.bf16.mxu1 %v12153_v1  ;;  %v12184_v1 = vld [vmem:[#allocation5 + $0x1420] ss:$16 sps:$4 sm:$0xff]  }
 0x18c   :  { %v7484_v23 = vpop.f32.mrf.mxu0  ;;  %7729 = vmatmul.mubr.bf16.vlgmr.msra.gmra.mxu0 %v13965_v2 }
 0x18d   :  { %v7525_v24 = vpop.f32.mrf.mxu1  ;;  %7770 = vmatmul.mubr.bf16.vlgmr.msra.gmra.mxu1 %v13967_v3  ;;  %v7485_v25 = vadd.f32 %v7484_v23, %v13959_v31  ;;  %7779 = vmatpush1.bf16.msra.mxu0 %v12148_v11  ;;  %v12195_v11 = vld [vmem:[#allocation5 + $0x1604] ss:$16 sps:$4 sm:$0xff]   ;;  %v12199_v23 = vld [vmem:[#allocation5 + $0x17e0] ss:$16 sps:$4 sm:$0xff]  }
 0x18e   :  { %7820 = vmatpush1.bf16.msra.mxu1 %v12151_v12  ;;  %v7486_v26 = vpop.f32.mrf.mxu0  ;;  %7780 = vmatprep.subr.bf16.mxu0 %v12156_v13  ;;  %v12190_v12 = vld [vmem:[#allocation5 + $0x1400] ss:$16 sps:$4 sm:$0xff]  }
 0x18f   :  { %v7527_v27 = vpop.f32.mrf.mxu1  ;;  %7821 = vmatprep.subr.bf16.mxu1 %v12159_v14  ;;  %v13976_v33 = vadd.f32 %v7525_v24, %v7485_v25  ;;  %v7487_v34 = vadd.f32 %v7486_v26, %v13963_v38  ;;  %7810 = vmatprep.mubr.bf16.mxu0 %v13969_v19  ;;  %v12166_v38 = vld [vmem:[#allocation5 + $0x1480] ss:$16 sps:$4 sm:$0xff]   ;;  %v12198_v14 = vld [vmem:[#allocation5 + $0x15e4] ss:$16 sps:$4 sm:$0xff]  }
 0x190   :  { %7851 = vmatprep.mubr.bf16.mxu1 %v13971_v22  ;;  %v7488_v39 = vpop.f32.mrf.mxu0  ;;  %v12193_v13 = vld [vmem:[#allocation5 + $0x1600] ss:$16 sps:$4 sm:$0xff]   ;;  %v12204_v24 = vld [vmem:[#allocation5 + $0x15c4] ss:$16 sps:$4 sm:$0xff]  }
 0x191   :  { %v7529_v31 = vpop.f32.mrf.mxu1  ;;  %v13981_v41 = vadd.f32 %v7527_v27, %v7487_v34  ;;  %7781 = vmatpush1.bf16.msra.mxu0 %v12154_v15  ;;  %v12201_v15 = vld [vmem:[#allocation5 + $0x17e4] ss:$16 sps:$4 sm:$0xff]   ;;  %v12202_v26 = vld [vmem:[#allocation5 + $0x15c0] ss:$16 sps:$4 sm:$0xff]  }
 0x192   :  { %7822 = vmatpush1.bf16.msra.mxu1 %v12157_v16  ;;  %v7489_v44 = vpop.f32.mrf.mxu0  ;;  %7782 = vmatprep.subr.bf16.mxu0 %v12162_v28  ;;  %v12196_v16 = vld [vmem:[#allocation5 + $0x15e0] ss:$16 sps:$4 sm:$0xff]   ;;  %v12207_v25 = vld [vmem:[#allocation5 + $0x17c4] ss:$16 sps:$4 sm:$0xff]  }
 0x193   :  { %v7530_v45 = vpop.f32.mrf.mxu1  ;;  %7823 = vmatprep.subr.bf16.mxu1 %v12165_v30  ;;  %v12205_v27 = vld [vmem:[#allocation5 + $0x17c0] ss:$16 sps:$4 sm:$0xff]   ;;  %v12210_v28 = vld [vmem:[#allocation5 + $0x15a4] ss:$16 sps:$4 sm:$0xff]  }
 0x194   :  { %v12213_v30 = vld [vmem:[#allocation5 + $0x17a4] ss:$16 sps:$4 sm:$0xff]   ;;  %v12208_v34 = vld [vmem:[#allocation5 + $0x15a0] ss:$16 sps:$4 sm:$0xff]  }
 0x195   :  { %7783 = vmatpush1.bf16.msra.mxu0 %v12160_v35  ;;  %v12211_v35 = vld [vmem:[#allocation5 + $0x17a0] ss:$16 sps:$4 sm:$0xff]   ;;  %v12219_v39 = vld [vmem:[#allocation5 + $0x1784] ss:$16 sps:$4 sm:$0xff]  }
 0x196   :  { %7824 = vmatpush1.bf16.msra.mxu1 %v12163_v36  ;;  %7784 = vmatprep.subr.bf16.mxu0 %v12168_v46  ;;  %v12216_v36 = vld [vmem:[#allocation5 + $0x1584] ss:$16 sps:$4 sm:$0xff]   ;;  %v12214_v31 = vld [vmem:[#allocation5 + $0x1580] ss:$16 sps:$4 sm:$0xff]  }
 0x197   :  { %7825 = vmatprep.subr.bf16.mxu1 %v12171_v47  ;;  %v12217_v44 = vld [vmem:[#allocation5 + $0x1780] ss:$16 sps:$4 sm:$0xff]   ;;  %v12222_v45 = vld [vmem:[#allocation5 + $0x1564] ss:$16 sps:$4 sm:$0xff]  }
 0x198   :  { %v12225_v46 = vld [vmem:[#allocation5 + $0x1764] ss:$16 sps:$4 sm:$0xff]   ;;  %v12220_v47 = vld [vmem:[#allocation5 + $0x1560] ss:$16 sps:$4 sm:$0xff]  }
 0x199   :  { %7785 = vmatpush1.bf16.msra.mxu0 %v12166_v38  ;;  %v12223_v38 = vld [vmem:[#allocation5 + $0x1760] ss:$16 sps:$4 sm:$0xff]  }
 0x19a   :  { %7826 = vmatpush1.bf16.msra.mxu1 %v12169_v51  ;;  %7786 = vmatprep.subr.bf16.mxu0 %v12174_v53  ;;  %v12228_v51 = vld [vmem:[#allocation5 + $0x1544] ss:$16 sps:$4 sm:$0xff]  }
 0x19b   :  { %7827 = vmatprep.subr.bf16.mxu1 %v12177_v54  ;;  %v12231_v53 = vld [vmem:[#allocation5 + $0x1744] ss:$16 sps:$4 sm:$0xff]   ;;  %v12226_v54 = vld [vmem:[#allocation5 + $0x1540] ss:$16 sps:$4 sm:$0xff]  }
 0x19d   :  { %7787 = vmatpush1.bf16.msra.mxu0 %v12172_v55  ;;  %v12229_v55 = vld [vmem:[#allocation5 + $0x1740] ss:$16 sps:$4 sm:$0xff]  }
 0x19e   :  { %7828 = vmatpush1.bf16.msra.mxu1 %v12175_v56  ;;  %7788 = vmatprep.subr.bf16.mxu0 %v12180_v58  ;;  %v12234_v56 = vld [vmem:[#allocation5 + $0x1524] ss:$16 sps:$4 sm:$0xff]  }
 0x19f   :  { %7829 = vmatprep.subr.bf16.mxu1 %v12183_v59  ;;  %v12237_v58 = vld [vmem:[#allocation5 + $0x1724] ss:$16 sps:$4 sm:$0xff]   ;;  %v12232_v59 = vld [vmem:[#allocation5 + $0x1520] ss:$16 sps:$4 sm:$0xff]  }
 0x1a1   :  { %7789 = vmatpush1.bf16.msra.mxu0 %v12178_v60  ;;  %v12235_v60 = vld [vmem:[#allocation5 + $0x1720] ss:$16 sps:$4 sm:$0xff]  }
 0x1a2   :  { %7830 = vmatpush1.bf16.msra.mxu1 %v12181_v61  ;;  %7790 = vmatprep.subr.bf16.mxu0 %v12186_v62  ;;  %v12240_v61 = vld [vmem:[#allocation5 + $0x1504] ss:$16 sps:$4 sm:$0xff]  }
 0x1a3   :  { %7831 = vmatprep.subr.bf16.mxu1 %v12189_v63  ;;  %v12243_v62 = vld [vmem:[#allocation5 + $0x1704] ss:$16 sps:$4 sm:$0xff]   ;;  %v12238_v63 = vld [vmem:[#allocation5 + $0x1500] ss:$16 sps:$4 sm:$0xff]  }
 0x1a5   :  { %7791 = vmatpush1.bf16.msra.mxu0 %v12184_v1  ;;  %v12241_v1 = vld [vmem:[#allocation5 + $0x1700] ss:$16 sps:$4 sm:$0xff]  }
 0x1a6   :  { %7832 = vmatpush1.bf16.msra.mxu1 %v12187_v4  ;;  %7792 = vmatprep.subr.bf16.mxu0 %v12192_v6  ;;  %v122_v4 = vld [vmem:[#allocation2 + $0xa0] sm:$0xff]  ;;  %v124_v6 = vld [vmem:[#allocation2 + $0xb0] sm:$0xff] }
 0x1a7   :  { %7833 = vmatprep.subr.bf16.mxu1 %v12195_v11  ;;  %v12246_v11 = vld [vmem:[#allocation5 + $0x18e4] ss:$16 sps:$4 sm:$0xff]  }
 0x1a9   :  { %7793 = vmatpush1.bf16.msra.mxu0 %v12190_v12  ;;  %v12249_v12 = vld [vmem:[#allocation5 + $0x1ae4] ss:$16 sps:$4 sm:$0xff]  }
 0x1aa   :  { %7834 = vmatpush1.bf16.msra.mxu1 %v12193_v13  ;;  %7794 = vmatprep.subr.bf16.mxu0 %v12198_v14  ;;  %v13983_v13 = vpack.c.bf16 %v122_v4, %v122_v4  ;;  %v13985_v14 = vpack.c.bf16 %v124_v6, %v124_v6  ;;  %v12271_v4 = vld [vmem:[#allocation5 + $0x1a60] ss:$16 sps:$4 sm:$0xff]   ;;  %v12276_v6 = vld [vmem:[#allocation5 + $0x1844] ss:$16 sps:$4 sm:$0xff]  }
 0x1ab   :  { %7835 = vmatprep.subr.bf16.mxu1 %v12201_v15  ;;  %v127_v15 = vld [vmem:[#allocation2 + $0xc8] sm:$0xff] }
 0x1ad   :  { %7795 = vmatpush2.bf16.msra.mxu0 %v12196_v16  ;;  %v129_v16 = vld [vmem:[#allocation2 + $0xd8] sm:$0xff] }
 0x1ae   :  { %7836 = vmatpush2.bf16.msra.mxu1 %v12199_v23  ;;  %7796 = vmatprep.subr.bf16.mxu0 %v12204_v24  ;;  %v12244_v23 = vld [vmem:[#allocation5 + $0x18e0] ss:$16 sps:$4 sm:$0xff]  }
 0x1af   :  { %7837 = vmatprep.subr.bf16.mxu1 %v12207_v25  ;;  %v12247_v24 = vld [vmem:[#allocation5 + $0x1ae0] ss:$16 sps:$4 sm:$0xff]   ;;  %v12252_v25 = vld [vmem:[#allocation5 + $0x18c4] ss:$16 sps:$4 sm:$0xff]  }
 0x1b1   :  { %7797 = vmatpush2.bf16.msra.mxu0 %v12202_v26  ;;  %v12255_v26 = vld [vmem:[#allocation5 + $0x1ac4] ss:$16 sps:$4 sm:$0xff]  }
 0x1b2   :  { %7838 = vmatpush2.bf16.msra.mxu1 %v12205_v27  ;;  %7798 = vmatprep.subr.bf16.mxu0 %v12210_v28  ;;  %v12250_v27 = vld [vmem:[#allocation5 + $0x18c0] ss:$16 sps:$4 sm:$0xff]  }
 0x1b3   :  { %7839 = vmatprep.subr.bf16.mxu1 %v12213_v30  ;;  %v12253_v28 = vld [vmem:[#allocation5 + $0x1ac0] ss:$16 sps:$4 sm:$0xff]   ;;  %v13987_v30 = vpack.c.bf16 %v127_v15, %v127_v15 }
 0x1b4   :  { %v12277_v15 = vld [vmem:[#allocation5 + $0x1a40] ss:$16 sps:$4 sm:$0xff]  }
 0x1b5   :  { %7799 = vmatpush2.bf16.msra.mxu0 %v12208_v34  ;;  %v13989_v34 = vpack.c.bf16 %v129_v16, %v129_v16  ;;  %v12282_v16 = vld [vmem:[#allocation5 + $0x1824] ss:$16 sps:$4 sm:$0xff]  }
 0x1b6   :  { %7840 = vmatpush2.bf16.msra.mxu1 %v12211_v35  ;;  %7800 = vmatprep.subr.bf16.mxu0 %v12216_v36 }
 0x1b7   :  { %7841 = vmatprep.subr.bf16.mxu1 %v12219_v39 }
 0x1b9   :  { %7801 = vmatpush2.bf16.msra.mxu0 %v12214_v31 }
 0x1ba   :  { %7842 = vmatpush2.bf16.msra.mxu1 %v12217_v44  ;;  %7802 = vmatprep.subr.bf16.mxu0 %v12222_v45  ;;  %v12258_v45 = vld [vmem:[#allocation5 + $0x18a4] ss:$16 sps:$4 sm:$0xff]  }
 0x1bb   :  { %7843 = vmatprep.subr.bf16.mxu1 %v12225_v46  ;;  %v12261_v46 = vld [vmem:[#allocation5 + $0x1aa4] ss:$16 sps:$4 sm:$0xff]  }
 0x1bd   :  { %7803 = vmatpush2.bf16.msra.mxu0 %v12220_v47 }
 0x1be   :  { %7844 = vmatpush2.bf16.msra.mxu1 %v12223_v38  ;;  %7804 = vmatprep.subr.bf16.mxu0 %v12228_v51  ;;  %v12256_v51 = vld [vmem:[#allocation5 + $0x18a0] ss:$16 sps:$4 sm:$0xff]  }
 0x1bf   :  { %7845 = vmatprep.subr.bf16.mxu1 %v12231_v53  ;;  %v12259_v53 = vld [vmem:[#allocation5 + $0x1aa0] ss:$16 sps:$4 sm:$0xff]  }
 0x1c1   :  { %7805 = vmatpush2.bf16.msra.mxu0 %v12226_v54 }
 0x1c2   :  { %7846 = vmatpush2.bf16.msra.mxu1 %v12229_v55  ;;  %7806 = vmatprep.subr.bf16.mxu0 %v12234_v56 }
 0x1c3   :  { %7847 = vmatprep.subr.bf16.mxu1 %v12237_v58 }
 0x1c5   :  { %7807 = vmatpush2.bf16.msra.mxu0 %v12232_v59  ;;  %v12264_v59 = vld [vmem:[#allocation5 + $0x1884] ss:$16 sps:$4 sm:$0xff]  }
 0x1c6   :  { %7848 = vmatpush2.bf16.msra.mxu1 %v12235_v60  ;;  %7808 = vmatprep.subr.bf16.mxu0 %v12240_v61  ;;  %v12267_v60 = vld [vmem:[#allocation5 + $0x1a84] ss:$16 sps:$4 sm:$0xff]   ;;  %v12265_v61 = vld [vmem:[#allocation5 + $0x1a80] ss:$16 sps:$4 sm:$0xff]  }
 0x1c7   :  { %7849 = vmatprep.subr.bf16.mxu1 %v12243_v62  ;;  %v12270_v62 = vld [vmem:[#allocation5 + $0x1864] ss:$16 sps:$4 sm:$0xff]  }
 0x1c9   :  { %7809 = vmatpush2.bf16.msra.mxu0 %v12238_v63  ;;  %v12273_v63 = vld [vmem:[#allocation5 + $0x1a64] ss:$16 sps:$4 sm:$0xff]  }
 0x1ca   :  { %7850 = vmatpush2.bf16.msra.mxu1 %v12241_v1  ;;  %7860 = vmatprep.subr.bf16.mxu0 %v12246_v11  ;;  %v12268_v1 = vld [vmem:[#allocation5 + $0x1860] ss:$16 sps:$4 sm:$0xff]   ;;  %v12279_v11 = vld [vmem:[#allocation5 + $0x1a44] ss:$16 sps:$4 sm:$0xff]  }
 0x1cb   :  { %7901 = vmatprep.subr.bf16.mxu1 %v12249_v12  ;;  %v12274_v12 = vld [vmem:[#allocation5 + $0x1840] ss:$16 sps:$4 sm:$0xff]  }
 0x1cc   :  { %v7566_v35 = vpop.f32.mrf.mxu0  ;;  %7811 = vmatmul.mubr.bf16.vlgmr.msra.gmra.mxu0 %v13983_v13 }
 0x1cd   :  { %v7607_v36 = vpop.f32.mrf.mxu1  ;;  %7852 = vmatmul.mubr.bf16.vlgmr.msra.gmra.mxu1 %v13985_v14  ;;  %v7567_v39 = vadd.f32 %v7566_v35, %v13976_v33  ;;  %7861 = vmatpush1.bf16.msra.mxu0 %v12244_v23  ;;  %v12285_v23 = vld [vmem:[#allocation5 + $0x1a24] ss:$16 sps:$4 sm:$0xff]   ;;  %v12289_v35 = vld [vmem:[#allocation5 + $0x1a00] ss:$16 sps:$4 sm:$0xff]  }
 0x1ce   :  { %7902 = vmatpush1.bf16.msra.mxu1 %v12247_v24  ;;  %v7568_v31 = vpop.f32.mrf.mxu0  ;;  %7862 = vmatprep.subr.bf16.mxu0 %v12252_v25  ;;  %v12280_v24 = vld [vmem:[#allocation5 + $0x1820] ss:$16 sps:$4 sm:$0xff]  }
 0x1cf   :  { %v7609_v44 = vpop.f32.mrf.mxu1  ;;  %7903 = vmatprep.subr.bf16.mxu1 %v12255_v26  ;;  %v13994_v47 = vadd.f32 %v7607_v36, %v7567_v39  ;;  %v7569_v38 = vadd.f32 %v7568_v31, %v13981_v41  ;;  %7892 = vmatprep.mubr.bf16.mxu0 %v13987_v30  ;;  %v12262_v41 = vld [vmem:[#allocation5 + $0x1880] ss:$16 sps:$4 sm:$0xff]   ;;  %v12288_v26 = vld [vmem:[#allocation5 + $0x1804] ss:$16 sps:$4 sm:$0xff]  }
 0x1d0   :  { %7933 = vmatprep.mubr.bf16.mxu1 %v13989_v34  ;;  %v7570_v54 = vpop.f32.mrf.mxu0  ;;  %v12283_v25 = vld [vmem:[#allocation5 + $0x1a20] ss:$16 sps:$4 sm:$0xff]   ;;  %v12294_v36 = vld [vmem:[#allocation5 + $0x19e4] ss:$16 sps:$4 sm:$0xff]  }
 0x1d1   :  { %v7611_v33 = vpop.f32.mrf.mxu1  ;;  %v13999_v55 = vadd.f32 %v7609_v44, %v7569_v38  ;;  %7863 = vmatpush1.bf16.msra.mxu0 %v12250_v27  ;;  %v12291_v27 = vld [vmem:[#allocation5 + $0x1a04] ss:$16 sps:$4 sm:$0xff]   ;;  %v12292_v31 = vld [vmem:[#allocation5 + $0x19e0] ss:$16 sps:$4 sm:$0xff]  }
 0x1d2   :  { %7904 = vmatpush1.bf16.msra.mxu1 %v12253_v28  ;;  %v7571_v56 = vpop.f32.mrf.mxu0  ;;  %7864 = vmatprep.subr.bf16.mxu0 %v12258_v45  ;;  %v12286_v28 = vld [vmem:[#allocation5 + $0x1800] ss:$16 sps:$4 sm:$0xff]   ;;  %v12297_v39 = vld [vmem:[#allocation5 + $0x1be4] ss:$16 sps:$4 sm:$0xff]  }
 0x1d3   :  { %v7612_v58 = vpop.f32.mrf.mxu1  ;;  %7905 = vmatprep.subr.bf16.mxu1 %v12261_v46  ;;  %v12295_v44 = vld [vmem:[#allocation5 + $0x1be0] ss:$16 sps:$4 sm:$0xff]   ;;  %v12300_v45 = vld [vmem:[#allocation5 + $0x19c4] ss:$16 sps:$4 sm:$0xff]  }
 0x1d4   :  { %v12303_v46 = vld [vmem:[#allocation5 + $0x1bc4] ss:$16 sps:$4 sm:$0xff]   ;;  %v12298_v38 = vld [vmem:[#allocation5 + $0x19c0] ss:$16 sps:$4 sm:$0xff]  }
 0x1d5   :  { %7865 = vmatpush1.bf16.msra.mxu0 %v12256_v51  ;;  %v12301_v51 = vld [vmem:[#allocation5 + $0x1bc0] ss:$16 sps:$4 sm:$0xff]   ;;  %v12309_v54 = vld [vmem:[#allocation5 + $0x1ba4] ss:$16 sps:$4 sm:$0xff]  }
 0x1d6   :  { %7906 = vmatpush1.bf16.msra.mxu1 %v12259_v53  ;;  %7866 = vmatprep.subr.bf16.mxu0 %v12264_v59  ;;  %v12306_v53 = vld [vmem:[#allocation5 + $0x19a4] ss:$16 sps:$4 sm:$0xff]   ;;  %v12304_v33 = vld [vmem:[#allocation5 + $0x19a0] ss:$16 sps:$4 sm:$0xff]  }
 0x1d7   :  { %7907 = vmatprep.subr.bf16.mxu1 %v12267_v60  ;;  %v12307_v56 = vld [vmem:[#allocation5 + $0x1ba0] ss:$16 sps:$4 sm:$0xff]   ;;  %v12312_v58 = vld [vmem:[#allocation5 + $0x1984] ss:$16 sps:$4 sm:$0xff]  }
 0x1d8   :  { %v12315_v59 = vld [vmem:[#allocation5 + $0x1b84] ss:$16 sps:$4 sm:$0xff]   ;;  %v12310_v60 = vld [vmem:[#allocation5 + $0x1980] ss:$16 sps:$4 sm:$0xff]  }
 0x1d9   :  { %7867 = vmatpush1.bf16.msra.mxu0 %v12262_v41  ;;  %v12313_v41 = vld [vmem:[#allocation5 + $0x1b80] ss:$16 sps:$4 sm:$0xff]  }
 0x1da   :  { %7908 = vmatpush1.bf16.msra.mxu1 %v12265_v61  ;;  %7868 = vmatprep.subr.bf16.mxu0 %v12270_v62  ;;  %v12318_v61 = vld [vmem:[#allocation5 + $0x1964] ss:$16 sps:$4 sm:$0xff]  }
 0x1db   :  { %7909 = vmatprep.subr.bf16.mxu1 %v12273_v63  ;;  %v12321_v62 = vld [vmem:[#allocation5 + $0x1b64] ss:$16 sps:$4 sm:$0xff]   ;;  %v12316_v63 = vld [vmem:[#allocation5 + $0x1960] ss:$16 sps:$4 sm:$0xff]  }
 0x1dd   :  { %7869 = vmatpush1.bf16.msra.mxu0 %v12268_v1  ;;  %v12319_v1 = vld [vmem:[#allocation5 + $0x1b60] ss:$16 sps:$4 sm:$0xff]  }
 0x1de   :  { %7910 = vmatpush1.bf16.msra.mxu1 %v12271_v4  ;;  %7870 = vmatprep.subr.bf16.mxu0 %v12276_v6  ;;  %v12324_v4 = vld [vmem:[#allocation5 + $0x1944] ss:$16 sps:$4 sm:$0xff]  }
 0x1df   :  { %7911 = vmatprep.subr.bf16.mxu1 %v12279_v11  ;;  %v12327_v6 = vld [vmem:[#allocation5 + $0x1b44] ss:$16 sps:$4 sm:$0xff]   ;;  %v12322_v11 = vld [vmem:[#allocation5 + $0x1940] ss:$16 sps:$4 sm:$0xff]  }
 0x1e1   :  { %7871 = vmatpush1.bf16.msra.mxu0 %v12274_v12  ;;  %v12325_v12 = vld [vmem:[#allocation5 + $0x1b40] ss:$16 sps:$4 sm:$0xff]  }
 0x1e2   :  { %7912 = vmatpush1.bf16.msra.mxu1 %v12277_v15  ;;  %7872 = vmatprep.subr.bf16.mxu0 %v12282_v16  ;;  %v12330_v15 = vld [vmem:[#allocation5 + $0x1924] ss:$16 sps:$4 sm:$0xff]  }
 0x1e3   :  { %7913 = vmatprep.subr.bf16.mxu1 %v12285_v23  ;;  %v12333_v16 = vld [vmem:[#allocation5 + $0x1b24] ss:$16 sps:$4 sm:$0xff]   ;;  %v12328_v23 = vld [vmem:[#allocation5 + $0x1920] ss:$16 sps:$4 sm:$0xff]  }
 0x1e5   :  { %7873 = vmatpush1.bf16.msra.mxu0 %v12280_v24  ;;  %v12331_v24 = vld [vmem:[#allocation5 + $0x1b20] ss:$16 sps:$4 sm:$0xff]  }
 0x1e6   :  { %7914 = vmatpush1.bf16.msra.mxu1 %v12283_v25  ;;  %7874 = vmatprep.subr.bf16.mxu0 %v12288_v26  ;;  %v12336_v25 = vld [vmem:[#allocation5 + $0x1904] ss:$16 sps:$4 sm:$0xff]  }
 0x1e7   :  { %7915 = vmatprep.subr.bf16.mxu1 %v12291_v27  ;;  %v12339_v26 = vld [vmem:[#allocation5 + $0x1b04] ss:$16 sps:$4 sm:$0xff]   ;;  %v12334_v27 = vld [vmem:[#allocation5 + $0x1900] ss:$16 sps:$4 sm:$0xff]  }
 0x1e9   :  { %7875 = vmatpush1.bf16.msra.mxu0 %v12286_v28  ;;  %v12337_v28 = vld [vmem:[#allocation5 + $0x1b00] ss:$16 sps:$4 sm:$0xff]  }
 0x1ea   :  { %7916 = vmatpush1.bf16.msra.mxu1 %v12289_v35  ;;  %7876 = vmatprep.subr.bf16.mxu0 %v12294_v36  ;;  %v126_v35 = vld [vmem:[#allocation2 + $0xc0] sm:$0xff]  ;;  %v128_v36 = vld [vmem:[#allocation2 + $0xd0] sm:$0xff] }
 0x1eb   :  { %7917 = vmatprep.subr.bf16.mxu1 %v12297_v39  ;;  %v12342_v39 = vld [vmem:[#allocation5 + $0x1ce4] ss:$16 sps:$4 sm:$0xff]  }
 0x1ed   :  { %7877 = vmatpush2.bf16.msra.mxu0 %v12292_v31  ;;  %v12345_v31 = vld [vmem:[#allocation5 + $0x1ee4] ss:$16 sps:$4 sm:$0xff]  }
 0x1ee   :  { %7918 = vmatpush2.bf16.msra.mxu1 %v12295_v44  ;;  %7878 = vmatprep.subr.bf16.mxu0 %v12300_v45  ;;  %v14001_v44 = vpack.c.bf16 %v126_v35, %v126_v35  ;;  %v14003_v45 = vpack.c.bf16 %v128_v36, %v128_v36  ;;  %v12361_v35 = vld [vmem:[#allocation5 + $0x1e80] ss:$16 sps:$4 sm:$0xff]   ;;  %v12366_v36 = vld [vmem:[#allocation5 + $0x1c64] ss:$16 sps:$4 sm:$0xff]  }
 0x1ef   :  { %7919 = vmatprep.subr.bf16.mxu1 %v12303_v46  ;;  %v131_v46 = vld [vmem:[#allocation2 + $0xe8] sm:$0xff] }
 0x1f1   :  { %7879 = vmatpush2.bf16.msra.mxu0 %v12298_v38  ;;  %v133_v38 = vld [vmem:[#allocation2 + $0xf8] sm:$0xff] }
 0x1f2   :  { %7920 = vmatpush2.bf16.msra.mxu1 %v12301_v51  ;;  %7880 = vmatprep.subr.bf16.mxu0 %v12306_v53  ;;  %v12340_v51 = vld [vmem:[#allocation5 + $0x1ce0] ss:$16 sps:$4 sm:$0xff]  }
 0x1f3   :  { %7921 = vmatprep.subr.bf16.mxu1 %v12309_v54  ;;  %v12343_v53 = vld [vmem:[#allocation5 + $0x1ee0] ss:$16 sps:$4 sm:$0xff]   ;;  %v12348_v54 = vld [vmem:[#allocation5 + $0x1cc4] ss:$16 sps:$4 sm:$0xff]  }
 0x1f5   :  { %7881 = vmatpush2.bf16.msra.mxu0 %v12304_v33  ;;  %v12351_v33 = vld [vmem:[#allocation5 + $0x1ec4] ss:$16 sps:$4 sm:$0xff]  }
 0x1f6   :  { %7922 = vmatpush2.bf16.msra.mxu1 %v12307_v56  ;;  %7882 = vmatprep.subr.bf16.mxu0 %v12312_v58  ;;  %v12346_v56 = vld [vmem:[#allocation5 + $0x1cc0] ss:$16 sps:$4 sm:$0xff]  }
 0x1f7   :  { %7923 = vmatprep.subr.bf16.mxu1 %v12315_v59  ;;  %v12349_v58 = vld [vmem:[#allocation5 + $0x1ec0] ss:$16 sps:$4 sm:$0xff]   ;;  %v14005_v59 = vpack.c.bf16 %v131_v46, %v131_v46 }
 0x1f8   :  { %v12367_v46 = vld [vmem:[#allocation5 + $0x1e60] ss:$16 sps:$4 sm:$0xff]  }
 0x1f9   :  { %7883 = vmatpush2.bf16.msra.mxu0 %v12310_v60  ;;  %v14007_v60 = vpack.c.bf16 %v133_v38, %v133_v38  ;;  %v12372_v38 = vld [vmem:[#allocation5 + $0x1c44] ss:$16 sps:$4 sm:$0xff]  }
 0x1fa   :  { %7924 = vmatpush2.bf16.msra.mxu1 %v12313_v41  ;;  %7884 = vmatprep.subr.bf16.mxu0 %v12318_v61 }
 0x1fb   :  { %7925 = vmatprep.subr.bf16.mxu1 %v12321_v62 }
 0x1fd   :  { %7885 = vmatpush2.bf16.msra.mxu0 %v12316_v63 }
 0x1fe   :  { %7926 = vmatpush2.bf16.msra.mxu1 %v12319_v1  ;;  %7886 = vmatprep.subr.bf16.mxu0 %v12324_v4  ;;  %v12354_v4 = vld [vmem:[#allocation5 + $0x1ca4] ss:$16 sps:$4 sm:$0xff]  }
 0x1ff   :  { %7927 = vmatprep.subr.bf16.mxu1 %v12327_v6  ;;  %v12357_v6 = vld [vmem:[#allocation5 + $0x1ea4] ss:$16 sps:$4 sm:$0xff]  }
 0x201   :  { %7887 = vmatpush2.bf16.msra.mxu0 %v12322_v11 }
 0x202   :  { %7928 = vmatpush2.bf16.msra.mxu1 %v12325_v12  ;;  %7888 = vmatprep.subr.bf16.mxu0 %v12330_v15  ;;  %v12352_v15 = vld [vmem:[#allocation5 + $0x1ca0] ss:$16 sps:$4 sm:$0xff]  }
 0x203   :  { %7929 = vmatprep.subr.bf16.mxu1 %v12333_v16  ;;  %v12355_v16 = vld [vmem:[#allocation5 + $0x1ea0] ss:$16 sps:$4 sm:$0xff]  }
 0x205   :  { %7889 = vmatpush2.bf16.msra.mxu0 %v12328_v23 }
 0x206   :  { %7930 = vmatpush2.bf16.msra.mxu1 %v12331_v24  ;;  %7890 = vmatprep.subr.bf16.mxu0 %v12336_v25 }
 0x207   :  { %7931 = vmatprep.subr.bf16.mxu1 %v12339_v26 }
 0x209   :  { %7891 = vmatpush2.bf16.msra.mxu0 %v12334_v27  ;;  %v12360_v27 = vld [vmem:[#allocation5 + $0x1c84] ss:$16 sps:$4 sm:$0xff]  }
 0x20a   :  { %7932 = vmatpush2.bf16.msra.mxu1 %v12337_v28  ;;  %7942 = vmatprep.subr.bf16.mxu0 %v12342_v39  ;;  %v12363_v28 = vld [vmem:[#allocation5 + $0x1e84] ss:$16 sps:$4 sm:$0xff]  }
 0x20b   :  { %7983 = vmatprep.subr.bf16.mxu1 %v12345_v31  ;;  %v12369_v39 = vld [vmem:[#allocation5 + $0x1e64] ss:$16 sps:$4 sm:$0xff]   ;;  %v12364_v31 = vld [vmem:[#allocation5 + $0x1c60] ss:$16 sps:$4 sm:$0xff]  }
 0x20c   :  { %v7648_v41 = vpop.f32.mrf.mxu0  ;;  %7893 = vmatmul.mubr.bf16.vlgmr.msra.gmra.mxu0 %v14001_v44 }
 0x20d   :  { %v7689_v61 = vpop.f32.mrf.mxu1  ;;  %7934 = vmatmul.mubr.bf16.vlgmr.msra.gmra.mxu1 %v14003_v45  ;;  %v7649_v62 = vadd.f32 %v7648_v41, %v13994_v47  ;;  %7943 = vmatpush1.bf16.msra.mxu0 %v12340_v51  ;;  %v12375_v51 = vld [vmem:[#allocation5 + $0x1e44] ss:$16 sps:$4 sm:$0xff]   ;;  %v12379_v41 = vld [vmem:[#allocation5 + $0x1e20] ss:$16 sps:$4 sm:$0xff]  }
 0x20e   :  { %7984 = vmatpush1.bf16.msra.mxu1 %v12343_v53  ;;  %v7650_v63 = vpop.f32.mrf.mxu0  ;;  %7944 = vmatprep.subr.bf16.mxu0 %v12348_v54  ;;  %v12370_v53 = vld [vmem:[#allocation5 + $0x1c40] ss:$16 sps:$4 sm:$0xff]  }
 0x20f   :  { %v7691_v1 = vpop.f32.mrf.mxu1  ;;  %7985 = vmatprep.subr.bf16.mxu1 %v12351_v33  ;;  %v14012_v11 = vadd.f32 %v7689_v61, %v7649_v62  ;;  %v7651_v12 = vadd.f32 %v7650_v63, %v13999_v55  ;;  %7974 = vmatprep.mubr.bf16.mxu0 %v14005_v59  ;;  %v12358_v55 = vld [vmem:[#allocation5 + $0x1c80] ss:$16 sps:$4 sm:$0xff]   ;;  %v12378_v33 = vld [vmem:[#allocation5 + $0x1c24] ss:$16 sps:$4 sm:$0xff]  }
 0x210   :  { %8015 = vmatprep.mubr.bf16.mxu1 %v14007_v60  ;;  %v7652_v23 = vpop.f32.mrf.mxu0  ;;  %v12373_v54 = vld [vmem:[#allocation5 + $0x1e40] ss:$16 sps:$4 sm:$0xff]   ;;  %v12384_v61 = vld [vmem:[#allocation5 + $0x1c04] ss:$16 sps:$4 sm:$0xff]  }
 0x211   :  { %v7693_v47 = vpop.f32.mrf.mxu1  ;;  %v14017_v24 = vadd.f32 %v7691_v1, %v7651_v12  ;;  %7945 = vmatpush1.bf16.msra.mxu0 %v12346_v56  ;;  %v12381_v56 = vld [vmem:[#allocation5 + $0x1e24] ss:$16 sps:$4 sm:$0xff]   ;;  %v12382_v63 = vld [vmem:[#allocation5 + $0x1c00] ss:$16 sps:$4 sm:$0xff]  }
 0x212   :  { %7986 = vmatpush1.bf16.msra.mxu1 %v12349_v58  ;;  %v7653_v25 = vpop.f32.mrf.mxu0  ;;  %7946 = vmatprep.subr.bf16.mxu0 %v12354_v4  ;;  %v12376_v58 = vld [vmem:[#allocation5 + $0x1c20] ss:$16 sps:$4 sm:$0xff]   ;;  %v12387_v62 = vld [vmem:[#allocation5 + $0x1e04] ss:$16 sps:$4 sm:$0xff]  }
 0x213   :  { %v7694_v26 = vpop.f32.mrf.mxu1  ;;  %7987 = vmatprep.subr.bf16.mxu1 %v12357_v6  ;;  %v12385_v1 = vld [vmem:[#allocation5 + $0x1e00] ss:$16 sps:$4 sm:$0xff]   ;;  %v12390_v4 = vld [vmem:[#allocation5 + $0x1de4] ss:$16 sps:$4 sm:$0xff]  }
 0x214   :  { %v12393_v6 = vld [vmem:[#allocation5 + $0x1fe4] ss:$16 sps:$4 sm:$0xff]   ;;  %v12388_v12 = vld [vmem:[#allocation5 + $0x1de0] ss:$16 sps:$4 sm:$0xff]  }
 0x215   :  { %7947 = vmatpush1.bf16.msra.mxu0 %v12352_v15  ;;  %v12391_v15 = vld [vmem:[#allocation5 + $0x1fe0] ss:$16 sps:$4 sm:$0xff]   ;;  %v12399_v23 = vld [vmem:[#allocation5 + $0x1fc4] ss:$16 sps:$4 sm:$0xff]  }
 0x216   :  { %7988 = vmatpush1.bf16.msra.mxu1 %v12355_v16  ;;  %7948 = vmatprep.subr.bf16.mxu0 %v12360_v27  ;;  %v12396_v16 = vld [vmem:[#allocation5 + $0x1dc4] ss:$16 sps:$4 sm:$0xff]   ;;  %v12394_v47 = vld [vmem:[#allocation5 + $0x1dc0] ss:$16 sps:$4 sm:$0xff]  }
 0x217   :  { %7989 = vmatprep.subr.bf16.mxu1 %v12363_v28  ;;  %v12397_v25 = vld [vmem:[#allocation5 + $0x1fc0] ss:$16 sps:$4 sm:$0xff]   ;;  %v12402_v26 = vld [vmem:[#allocation5 + $0x1da4] ss:$16 sps:$4 sm:$0xff]  }
 0x218   :  { %v12405_v27 = vld [vmem:[#allocation5 + $0x1fa4] ss:$16 sps:$4 sm:$0xff]   ;;  %v12400_v28 = vld [vmem:[#allocation5 + $0x1da0] ss:$16 sps:$4 sm:$0xff]  }
 0x219   :  { %7949 = vmatpush1.bf16.msra.mxu0 %v12358_v55  ;;  %v12403_v55 = vld [vmem:[#allocation5 + $0x1fa0] ss:$16 sps:$4 sm:$0xff]  }
 0x21a   :  { %7990 = vmatpush1.bf16.msra.mxu1 %v12361_v35  ;;  %7950 = vmatprep.subr.bf16.mxu0 %v12366_v36  ;;  %v12408_v35 = vld [vmem:[#allocation5 + $0x1d84] ss:$16 sps:$4 sm:$0xff]  }
 0x21b   :  { %7991 = vmatprep.subr.bf16.mxu1 %v12369_v39  ;;  %v12411_v36 = vld [vmem:[#allocation5 + $0x1f84] ss:$16 sps:$4 sm:$0xff]   ;;  %v12406_v39 = vld [vmem:[#allocation5 + $0x1d80] ss:$16 sps:$4 sm:$0xff]  }
 0x21d   :  { %7951 = vmatpush1.bf16.msra.mxu0 %v12364_v31  ;;  %v12409_v31 = vld [vmem:[#allocation5 + $0x1f80] ss:$16 sps:$4 sm:$0xff]  }
 0x21e   :  { %7992 = vmatpush1.bf16.msra.mxu1 %v12367_v46  ;;  %7952 = vmatprep.subr.bf16.mxu0 %v12372_v38  ;;  %v12414_v46 = vld [vmem:[#allocation5 + $0x1d64] ss:$16 sps:$4 sm:$0xff]  }
 0x21f   :  { %7993 = vmatprep.subr.bf16.mxu1 %v12375_v51  ;;  %v12417_v38 = vld [vmem:[#allocation5 + $0x1f64] ss:$16 sps:$4 sm:$0xff]   ;;  %v12412_v51 = vld [vmem:[#allocation5 + $0x1d60] ss:$16 sps:$4 sm:$0xff]  }
 0x221   :  { %7953 = vmatpush1.bf16.msra.mxu0 %v12370_v53  ;;  %v12415_v53 = vld [vmem:[#allocation5 + $0x1f60] ss:$16 sps:$4 sm:$0xff]  }
 0x222   :  { %7994 = vmatpush1.bf16.msra.mxu1 %v12373_v54  ;;  %7954 = vmatprep.subr.bf16.mxu0 %v12378_v33  ;;  %v12420_v54 = vld [vmem:[#allocation5 + $0x1d44] ss:$16 sps:$4 sm:$0xff]  }
 0x223   :  { %7995 = vmatprep.subr.bf16.mxu1 %v12381_v56  ;;  %v12423_v33 = vld [vmem:[#allocation5 + $0x1f44] ss:$16 sps:$4 sm:$0xff]   ;;  %v12418_v56 = vld [vmem:[#allocation5 + $0x1d40] ss:$16 sps:$4 sm:$0xff]  }
 0x225   :  { %7955 = vmatpush1.bf16.msra.mxu0 %v12376_v58  ;;  %v12421_v58 = vld [vmem:[#allocation5 + $0x1f40] ss:$16 sps:$4 sm:$0xff]  }
 0x226   :  { %7996 = vmatpush1.bf16.msra.mxu1 %v12379_v41  ;;  %7956 = vmatprep.subr.bf16.mxu0 %v12384_v61  ;;  %v12426_v41 = vld [vmem:[#allocation5 + $0x1d24] ss:$16 sps:$4 sm:$0xff]  }
 0x227   :  { %7997 = vmatprep.subr.bf16.mxu1 %v12387_v62  ;;  %v12429_v61 = vld [vmem:[#allocation5 + $0x1f24] ss:$16 sps:$4 sm:$0xff]   ;;  %v12424_v62 = vld [vmem:[#allocation5 + $0x1d20] ss:$16 sps:$4 sm:$0xff]  }
 0x229   :  { %7957 = vmatpush1.bf16.msra.mxu0 %v12382_v63  ;;  %v12427_v63 = vld [vmem:[#allocation5 + $0x1f20] ss:$16 sps:$4 sm:$0xff]  }
 0x22a   :  { %7998 = vmatpush1.bf16.msra.mxu1 %v12385_v1  ;;  %7958 = vmatprep.subr.bf16.mxu0 %v12390_v4  ;;  %v12432_v1 = vld [vmem:[#allocation5 + $0x1d04] ss:$16 sps:$4 sm:$0xff]  }
 0x22b   :  { %7999 = vmatprep.subr.bf16.mxu1 %v12393_v6  ;;  %v12435_v4 = vld [vmem:[#allocation5 + $0x1f04] ss:$16 sps:$4 sm:$0xff]   ;;  %v12430_v6 = vld [vmem:[#allocation5 + $0x1d00] ss:$16 sps:$4 sm:$0xff]  }
 0x22d   :  { %7959 = vmatpush2.bf16.msra.mxu0 %v12388_v12  ;;  %v12433_v12 = vld [vmem:[#allocation5 + $0x1f00] ss:$16 sps:$4 sm:$0xff]  }
 0x22e   :  { %8000 = vmatpush2.bf16.msra.mxu1 %v12391_v15  ;;  %7960 = vmatprep.subr.bf16.mxu0 %v12396_v16  ;;  %v130_v15 = vld [vmem:[#allocation2 + $0xe0] sm:$0xff]  ;;  %v132_v16 = vld [vmem:[#allocation2 + $0xf0] sm:$0xff] }
 0x22f   :  { %8001 = vmatprep.subr.bf16.mxu1 %v12399_v23  ;;  %v12438_v23 = vld [vmem:[#allocation5 + $0x20e4] ss:$16 sps:$4 sm:$0xff]  }
 0x231   :  { %7961 = vmatpush2.bf16.msra.mxu0 %v12394_v47  ;;  %v12441_v47 = vld [vmem:[#allocation5 + $0x22e4] ss:$16 sps:$4 sm:$0xff]  }
 0x232   :  { %8002 = vmatpush2.bf16.msra.mxu1 %v12397_v25  ;;  %7962 = vmatprep.subr.bf16.mxu0 %v12402_v26  ;;  %v135_v25 = vld [vmem:[#allocation2 + $0x108] sm:$0xff]  ;;  %v137_v26 = vld [vmem:[#allocation2 + $0x118] sm:$0xff] }
 0x233   :  { %8003 = vmatprep.subr.bf16.mxu1 %v12405_v27  ;;  %v12436_v27 = vld [vmem:[#allocation5 + $0x20e0] ss:$16 sps:$4 sm:$0xff]  }
 0x235   :  { %7963 = vmatpush2.bf16.msra.mxu0 %v12400_v28  ;;  %v12439_v28 = vld [vmem:[#allocation5 + $0x22e0] ss:$16 sps:$4 sm:$0xff]  }
 0x236   :  { %8004 = vmatpush2.bf16.msra.mxu1 %v12403_v55  ;;  %7964 = vmatprep.subr.bf16.mxu0 %v12408_v35  ;;  %v14019_v55 = vpack.c.bf16 %v130_v15, %v130_v15  ;;  %v14021_v35 = vpack.c.bf16 %v132_v16, %v132_v16 }
 0x237   :  { %8005 = vmatprep.subr.bf16.mxu1 %v12411_v36  ;;  %v12444_v36 = vld [vmem:[#allocation5 + $0x20c4] ss:$16 sps:$4 sm:$0xff]  }
 0x239   :  { %7965 = vmatpush2.bf16.msra.mxu0 %v12406_v39  ;;  %v12447_v39 = vld [vmem:[#allocation5 + $0x22c4] ss:$16 sps:$4 sm:$0xff]  }
 0x23a   :  { %8006 = vmatpush2.bf16.msra.mxu1 %v12409_v31  ;;  %7966 = vmatprep.subr.bf16.mxu0 %v12414_v46  ;;  %v12442_v31 = vld [vmem:[#allocation5 + $0x20c0] ss:$16 sps:$4 sm:$0xff]  }
 0x23b   :  { %8007 = vmatprep.subr.bf16.mxu1 %v12417_v38  ;;  %v12445_v46 = vld [vmem:[#allocation5 + $0x22c0] ss:$16 sps:$4 sm:$0xff]   ;;  %v14023_v38 = vpack.c.bf16 %v135_v25, %v135_v25 }
 0x23c   :  { %v12457_v25 = vld [vmem:[#allocation5 + $0x2280] ss:$16 sps:$4 sm:$0xff]  }
 0x23d   :  { %7967 = vmatpush2.bf16.msra.mxu0 %v12412_v51  ;;  %v14025_v51 = vpack.c.bf16 %v137_v26, %v137_v26  ;;  %v12462_v26 = vld [vmem:[#allocation5 + $0x2064] ss:$16 sps:$4 sm:$0xff]  }
 0x23e   :  { %8008 = vmatpush2.bf16.msra.mxu1 %v12415_v53  ;;  %7968 = vmatprep.subr.bf16.mxu0 %v12420_v54 }
 0x23f   :  { %8009 = vmatprep.subr.bf16.mxu1 %v12423_v33 }
 0x241   :  { %7969 = vmatpush2.bf16.msra.mxu0 %v12418_v56 }
 0x242   :  { %8010 = vmatpush2.bf16.msra.mxu1 %v12421_v58  ;;  %7970 = vmatprep.subr.bf16.mxu0 %v12426_v41  ;;  %v12450_v41 = vld [vmem:[#allocation5 + $0x20a4] ss:$16 sps:$4 sm:$0xff]  }
 0x243   :  { %8011 = vmatprep.subr.bf16.mxu1 %v12429_v61  ;;  %v12453_v61 = vld [vmem:[#allocation5 + $0x22a4] ss:$16 sps:$4 sm:$0xff]  }
 0x245   :  { %7971 = vmatpush2.bf16.msra.mxu0 %v12424_v62 }
 0x246   :  { %8012 = vmatpush2.bf16.msra.mxu1 %v12427_v63  ;;  %7972 = vmatprep.subr.bf16.mxu0 %v12432_v1  ;;  %v12448_v1 = vld [vmem:[#allocation5 + $0x20a0] ss:$16 sps:$4 sm:$0xff]  }
 0x247   :  { %8013 = vmatprep.subr.bf16.mxu1 %v12435_v4  ;;  %v12451_v4 = vld [vmem:[#allocation5 + $0x22a0] ss:$16 sps:$4 sm:$0xff]  }
 0x249   :  { %7973 = vmatpush2.bf16.msra.mxu0 %v12430_v6 }
 0x24a   :  { %8014 = vmatpush2.bf16.msra.mxu1 %v12433_v12  ;;  %8024 = vmatprep.subr.bf16.mxu0 %v12438_v23  ;;  %v12456_v23 = vld [vmem:[#allocation5 + $0x2084] ss:$16 sps:$4 sm:$0xff]  }
 0x24b   :  { %8065 = vmatprep.subr.bf16.mxu1 %v12441_v47  ;;  %v12459_v47 = vld [vmem:[#allocation5 + $0x2284] ss:$16 sps:$4 sm:$0xff]  }
 0x24c   :  { %v7730_v53 = vpop.f32.mrf.mxu0  ;;  %7975 = vmatmul.mubr.bf16.vlgmr.msra.gmra.mxu0 %v14019_v55 }
 0x24d   :  { %v7771_v54 = vpop.f32.mrf.mxu1  ;;  %8016 = vmatmul.mubr.bf16.vlgmr.msra.gmra.mxu1 %v14021_v35  ;;  %v7731_v33 = vadd.f32 %v7730_v53, %v14012_v11  ;;  %8025 = vmatpush1.bf16.msra.mxu0 %v12436_v27  ;;  %v12465_v27 = vld [vmem:[#allocation5 + $0x2264] ss:$16 sps:$4 sm:$0xff]   ;;  %v12469_v53 = vld [vmem:[#allocation5 + $0x2240] ss:$16 sps:$4 sm:$0xff]  }
 0x24e   :  { %8066 = vmatpush1.bf16.msra.mxu1 %v12439_v28  ;;  %v7732_v56 = vpop.f32.mrf.mxu0  ;;  %8026 = vmatprep.subr.bf16.mxu0 %v12444_v36  ;;  %v12460_v28 = vld [vmem:[#allocation5 + $0x2060] ss:$16 sps:$4 sm:$0xff]  }
 0x24f   :  { %v7773_v58 = vpop.f32.mrf.mxu1  ;;  %8067 = vmatprep.subr.bf16.mxu1 %v12447_v39  ;;  %v14030_v62 = vadd.f32 %v7771_v54, %v7731_v33  ;;  %v7733_v63 = vadd.f32 %v7732_v56, %v14017_v24  ;;  %8056 = vmatprep.mubr.bf16.mxu0 %v14023_v38  ;;  %v12454_v24 = vld [vmem:[#allocation5 + $0x2080] ss:$16 sps:$4 sm:$0xff]   ;;  %v12468_v39 = vld [vmem:[#allocation5 + $0x2044] ss:$16 sps:$4 sm:$0xff]  }
 0x250   :  { %8097 = vmatprep.mubr.bf16.mxu1 %v14025_v51  ;;  %v7734_v6 = vpop.f32.mrf.mxu0  ;;  %v12463_v36 = vld [vmem:[#allocation5 + $0x2260] ss:$16 sps:$4 sm:$0xff]   ;;  %v12474_v54 = vld [vmem:[#allocation5 + $0x2024] ss:$16 sps:$4 sm:$0xff]  }
 0x251   :  { %v7775_v11 = vpop.f32.mrf.mxu1  ;;  %v14035_v12 = vadd.f32 %v7773_v58, %v7733_v63  ;;  %8027 = vmatpush1.bf16.msra.mxu0 %v12442_v31  ;;  %v12471_v31 = vld [vmem:[#allocation5 + $0x2244] ss:$16 sps:$4 sm:$0xff]   ;;  %v12472_v56 = vld [vmem:[#allocation5 + $0x2020] ss:$16 sps:$4 sm:$0xff]  }
 0x252   :  { %8068 = vmatpush1.bf16.msra.mxu1 %v12445_v46  ;;  %v7735_v15 = vpop.f32.mrf.mxu0  ;;  %8028 = vmatprep.subr.bf16.mxu0 %v12450_v41  ;;  %v12466_v46 = vld [vmem:[#allocation5 + $0x2040] ss:$16 sps:$4 sm:$0xff]   ;;  %v12477_v33 = vld [vmem:[#allocation5 + $0x2224] ss:$16 sps:$4 sm:$0xff]  }
 0x253   :  { %v7776_v16 = vpop.f32.mrf.mxu1  ;;  %8069 = vmatprep.subr.bf16.mxu1 %v12453_v61  ;;  %v12475_v58 = vld [vmem:[#allocation5 + $0x2220] ss:$16 sps:$4 sm:$0xff]   ;;  %v12480_v41 = vld [vmem:[#allocation5 + $0x2004] ss:$16 sps:$4 sm:$0xff]  }
 0x254   :  { %v12483_v61 = vld [vmem:[#allocation5 + $0x2204] ss:$16 sps:$4 sm:$0xff]   ;;  %v12478_v63 = vld [vmem:[#allocation5 + $0x2000] ss:$16 sps:$4 sm:$0xff]  }
 0x255   :  { %8029 = vmatpush1.bf16.msra.mxu0 %v12448_v1  ;;  %v12481_v1 = vld [vmem:[#allocation5 + $0x2200] ss:$16 sps:$4 sm:$0xff]   ;;  %v12489_v6 = vld [vmem:[#allocation5 + $0x23e4] ss:$16 sps:$4 sm:$0xff]  }
 0x256   :  { %8070 = vmatpush1.bf16.msra.mxu1 %v12451_v4  ;;  %8030 = vmatprep.subr.bf16.mxu0 %v12456_v23  ;;  %v12486_v4 = vld [vmem:[#allocation5 + $0x21e4] ss:$16 sps:$4 sm:$0xff]   ;;  %v12484_v11 = vld [vmem:[#allocation5 + $0x21e0] ss:$16 sps:$4 sm:$0xff]  }
 0x257   :  { %8071 = vmatprep.subr.bf16.mxu1 %v12459_v47  ;;  %v12487_v15 = vld [vmem:[#allocation5 + $0x23e0] ss:$16 sps:$4 sm:$0xff]   ;;  %v12492_v16 = vld [vmem:[#allocation5 + $0x21c4] ss:$16 sps:$4 sm:$0xff]  }
 0x258   :  { %v12495_v23 = vld [vmem:[#allocation5 + $0x23c4] ss:$16 sps:$4 sm:$0xff]   ;;  %v12490_v47 = vld [vmem:[#allocation5 + $0x21c0] ss:$16 sps:$4 sm:$0xff]  }
 0x259   :  { %8031 = vmatpush1.bf16.msra.mxu0 %v12454_v24  ;;  %v12493_v24 = vld [vmem:[#allocation5 + $0x23c0] ss:$16 sps:$4 sm:$0xff]  }
 0x25a   :  { %8072 = vmatpush1.bf16.msra.mxu1 %v12457_v25  ;;  %8032 = vmatprep.subr.bf16.mxu0 %v12462_v26  ;;  %v12498_v25 = vld [vmem:[#allocation5 + $0x21a4] ss:$16 sps:$4 sm:$0xff]  }
 0x25b   :  { %8073 = vmatprep.subr.bf16.mxu1 %v12465_v27  ;;  %v12501_v26 = vld [vmem:[#allocation5 + $0x23a4] ss:$16 sps:$4 sm:$0xff]   ;;  %v12496_v27 = vld [vmem:[#allocation5 + $0x21a0] ss:$16 sps:$4 sm:$0xff]  }
 0x25d   :  { %8033 = vmatpush1.bf16.msra.mxu0 %v12460_v28  ;;  %v12499_v28 = vld [vmem:[#allocation5 + $0x23a0] ss:$16 sps:$4 sm:$0xff]  }
 0x25e   :  { %8074 = vmatpush1.bf16.msra.mxu1 %v12463_v36  ;;  %8034 = vmatprep.subr.bf16.mxu0 %v12468_v39  ;;  %v12504_v36 = vld [vmem:[#allocation5 + $0x2184] ss:$16 sps:$4 sm:$0xff]  }
 0x25f   :  { %8075 = vmatprep.subr.bf16.mxu1 %v12471_v31  ;;  %v12507_v39 = vld [vmem:[#allocation5 + $0x2384] ss:$16 sps:$4 sm:$0xff]   ;;  %v12502_v31 = vld [vmem:[#allocation5 + $0x2180] ss:$16 sps:$4 sm:$0xff]  }
 0x261   :  { %8035 = vmatpush1.bf16.msra.mxu0 %v12466_v46  ;;  %v12505_v46 = vld [vmem:[#allocation5 + $0x2380] ss:$16 sps:$4 sm:$0xff]  }
 0x262   :  { %8076 = vmatpush1.bf16.msra.mxu1 %v12469_v53  ;;  %8036 = vmatprep.subr.bf16.mxu0 %v12474_v54  ;;  %v12510_v53 = vld [vmem:[#allocation5 + $0x2164] ss:$16 sps:$4 sm:$0xff]  }
 0x263   :  { %8077 = vmatprep.subr.bf16.mxu1 %v12477_v33  ;;  %v12513_v54 = vld [vmem:[#allocation5 + $0x2364] ss:$16 sps:$4 sm:$0xff]   ;;  %v12508_v33 = vld [vmem:[#allocation5 + $0x2160] ss:$16 sps:$4 sm:$0xff]  }
 0x265   :  { %8037 = vmatpush1.bf16.msra.mxu0 %v12472_v56  ;;  %v12511_v56 = vld [vmem:[#allocation5 + $0x2360] ss:$16 sps:$4 sm:$0xff]  }
 0x266   :  { %8078 = vmatpush1.bf16.msra.mxu1 %v12475_v58  ;;  %8038 = vmatprep.subr.bf16.mxu0 %v12480_v41  ;;  %v12516_v58 = vld [vmem:[#allocation5 + $0x2144] ss:$16 sps:$4 sm:$0xff]  }
 0x267   :  { %8079 = vmatprep.subr.bf16.mxu1 %v12483_v61  ;;  %v12519_v41 = vld [vmem:[#allocation5 + $0x2344] ss:$16 sps:$4 sm:$0xff]   ;;  %v12514_v61 = vld [vmem:[#allocation5 + $0x2140] ss:$16 sps:$4 sm:$0xff]  }
 0x269   :  { %8039 = vmatpush1.bf16.msra.mxu0 %v12478_v63  ;;  %v12517_v63 = vld [vmem:[#allocation5 + $0x2340] ss:$16 sps:$4 sm:$0xff]  }
 0x26a   :  { %8080 = vmatpush1.bf16.msra.mxu1 %v12481_v1  ;;  %8040 = vmatprep.subr.bf16.mxu0 %v12486_v4  ;;  %v12522_v1 = vld [vmem:[#allocation5 + $0x2124] ss:$16 sps:$4 sm:$0xff]  }
 0x26b   :  { %8081 = vmatprep.subr.bf16.mxu1 %v12489_v6  ;;  %v12525_v4 = vld [vmem:[#allocation5 + $0x2324] ss:$16 sps:$4 sm:$0xff]   ;;  %v12520_v6 = vld [vmem:[#allocation5 + $0x2120] ss:$16 sps:$4 sm:$0xff]  }
 0x26d   :  { %8041 = vmatpush2.bf16.msra.mxu0 %v12484_v11  ;;  %v12523_v11 = vld [vmem:[#allocation5 + $0x2320] ss:$16 sps:$4 sm:$0xff]  }
 0x26e   :  { %8082 = vmatpush2.bf16.msra.mxu1 %v12487_v15  ;;  %8042 = vmatprep.subr.bf16.mxu0 %v12492_v16  ;;  %v12528_v15 = vld [vmem:[#allocation5 + $0x2104] ss:$16 sps:$4 sm:$0xff]  }
 0x26f   :  { %8083 = vmatprep.subr.bf16.mxu1 %v12495_v23  ;;  %v12531_v16 = vld [vmem:[#allocation5 + $0x2304] ss:$16 sps:$4 sm:$0xff]   ;;  %v12526_v23 = vld [vmem:[#allocation5 + $0x2100] ss:$16 sps:$4 sm:$0xff]  }
 0x271   :  { %8043 = vmatpush2.bf16.msra.mxu0 %v12490_v47  ;;  %v12529_v47 = vld [vmem:[#allocation5 + $0x2300] ss:$16 sps:$4 sm:$0xff]  }
 0x272   :  { %8084 = vmatpush2.bf16.msra.mxu1 %v12493_v24  ;;  %8044 = vmatprep.subr.bf16.mxu0 %v12498_v25  ;;  %v134_v24 = vld [vmem:[#allocation2 + $0x100] sm:$0xff]  ;;  %v136_v25 = vld [vmem:[#allocation2 + $0x110] sm:$0xff] }
 0x273   :  { %8085 = vmatprep.subr.bf16.mxu1 %v12501_v26  ;;  %v12534_v26 = vld [vmem:[#allocation5 + $0x24e4] ss:$16 sps:$4 sm:$0xff]  }
 0x275   :  { %8045 = vmatpush2.bf16.msra.mxu0 %v12496_v27  ;;  %v12537_v27 = vld [vmem:[#allocation5 + $0xec] ss:$16 sps:$4 sm:$0xff]  }
 0x276   :  { %8086 = vmatpush2.bf16.msra.mxu1 %v12499_v28  ;;  %8046 = vmatprep.subr.bf16.mxu0 %v12504_v36  ;;  %v139_v28 = vld [vmem:[#allocation2 + $0x128] sm:$0xff]  ;;  %v12532_v36 = vld [vmem:[#allocation5 + $0x24e0] ss:$16 sps:$4 sm:$0xff]  }
 0x277   :  { %8087 = vmatprep.subr.bf16.mxu1 %v12507_v39  ;;  %v12535_v39 = vld [vmem:[#allocation5 + $0xe8] ss:$16 sps:$4 sm:$0xff]  }
 0x279   :  { %8047 = vmatpush2.bf16.msra.mxu0 %v12502_v31  ;;  %v14037_v31 = vpack.c.bf16 %v134_v24, %v134_v24 }
 0x27a   :  { %8088 = vmatpush2.bf16.msra.mxu1 %v12505_v46  ;;  %8048 = vmatprep.subr.bf16.mxu0 %v12510_v53  ;;  %v14039_v46 = vpack.c.bf16 %v136_v25, %v136_v25  ;;  %v12540_v53 = vld [vmem:[#allocation5 + $0x24c4] ss:$16 sps:$4 sm:$0xff]  }
 0x27b   :  { %8089 = vmatprep.subr.bf16.mxu1 %v12513_v54  ;;  %v12543_v54 = vld [vmem:[#allocation5 + $0xcc] ss:$16 sps:$4 sm:$0xff]  }
 0x27d   :  { %8049 = vmatpush2.bf16.msra.mxu0 %v12508_v33  ;;  %v12538_v33 = vld [vmem:[#allocation5 + $0x24c0] ss:$16 sps:$4 sm:$0xff]  }
 0x27e   :  { %8090 = vmatpush2.bf16.msra.mxu1 %v12511_v56  ;;  %8050 = vmatprep.subr.bf16.mxu0 %v12516_v58  ;;  %v12541_v56 = vld [vmem:[#allocation5 + $0xc8] ss:$16 sps:$4 sm:$0xff]   ;;  %v14041_v58 = vpack.c.bf16 %v139_v28, %v139_v28  ;;  %v12552_v28 = vld [vmem:[#allocation5 + $0x2484] ss:$16 sps:$4 sm:$0xff]  }
 0x27f   :  { %8091 = vmatprep.subr.bf16.mxu1 %v12519_v41 }
 0x281   :  { %8051 = vmatpush2.bf16.msra.mxu0 %v12514_v61 }
 0x282   :  { %8092 = vmatpush2.bf16.msra.mxu1 %v12517_v63  ;;  %8052 = vmatprep.subr.bf16.mxu0 %v12522_v1 }
 0x283   :  { %8093 = vmatprep.subr.bf16.mxu1 %v12525_v4 }
 0x285   :  { %8053 = vmatpush2.bf16.msra.mxu0 %v12520_v6  ;;  %v12546_v6 = vld [vmem:[#allocation5 + $0x24a4] ss:$16 sps:$4 sm:$0xff]  }
 0x286   :  { %8094 = vmatpush2.bf16.msra.mxu1 %v12523_v11  ;;  %8054 = vmatprep.subr.bf16.mxu0 %v12528_v15  ;;  %v12549_v11 = vld [vmem:[#allocation5 + $0xac] ss:$16 sps:$4 sm:$0xff]  }
 0x287   :  { %8095 = vmatprep.subr.bf16.mxu1 %v12531_v16 }
 0x289   :  { %8055 = vmatpush2.bf16.msra.mxu0 %v12526_v23  ;;  %v12544_v23 = vld [vmem:[#allocation5 + $0x24a0] ss:$16 sps:$4 sm:$0xff]  }
 0x28a   :  { %8096 = vmatpush2.bf16.msra.mxu1 %v12529_v47  ;;  %8106 = vmatprep.subr.bf16.mxu0 %v12534_v26  ;;  %v12547_v47 = vld [vmem:[#allocation5 + $0xa8] ss:$16 sps:$4 sm:$0xff]  }
 0x28b   :  { %8147 = vmatprep.subr.bf16.mxu1 %v12537_v27 }
 0x28c   :  { %v7812_v41 = vpop.f32.mrf.mxu0  ;;  %8057 = vmatmul.mubr.bf16.vlgmr.msra.gmra.mxu0 %v14037_v31 }
 0x28d   :  { %v7853_v61 = vpop.f32.mrf.mxu1  ;;  %8098 = vmatmul.mubr.bf16.vlgmr.msra.gmra.mxu1 %v14039_v46  ;;  %v7813_v63 = vadd.f32 %v7812_v41, %v14030_v62  ;;  %8107 = vmatpush1.bf16.msra.mxu0 %v12532_v36  ;;  %v12555_v36 = vld [vmem:[#allocation5 + $0x8c] ss:$16 sps:$4 sm:$0xff]   ;;  %v12559_v41 = vld [vmem:[#allocation5 + $0x68] ss:$16 sps:$4 sm:$0xff]  }
 0x28e   :  { %8148 = vmatpush1.bf16.msra.mxu1 %v12535_v39  ;;  %v7814_v1 = vpop.f32.mrf.mxu0  ;;  %8108 = vmatprep.subr.bf16.mxu0 %v12540_v53  ;;  %v12553_v39 = vld [vmem:[#allocation5 + $0x88] ss:$16 sps:$4 sm:$0xff]   ;;  %v12558_v53 = vld [vmem:[#allocation5 + $0x2464] ss:$16 sps:$4 sm:$0xff]  }
 0x28f   :  { %v7855_v4 = vpop.f32.mrf.mxu1  ;;  %8149 = vmatprep.subr.bf16.mxu1 %v12543_v54  ;;  %v14046_v15 = vadd.f32 %v7853_v61, %v7813_v63  ;;  %v7815_v16 = vadd.f32 %v7814_v1, %v14035_v12  ;;  %11451 = vmatprep.mubr.msk.bf16.mxu0 %vm7348_vm0, %v14041_v58  ;;  %v12550_v12 = vld [vmem:[#allocation5 + $0x2480] ss:$16 sps:$4 sm:$0xff]   ;;  %v12565_v63 = vld [vmem:[#allocation5 + $0x48] ss:$16 sps:$4 sm:$0xff]   ;;  %v12570_v1 = vld [vmem:[#allocation5 + $0x2424] ss:$16 sps:$4 sm:$0xff]  }
 0x290   :  { %8179 = vmatprep.mubr.bf16.mxu1 %v13899_v49  ;;  %v7816_v62 = vpop.f32.mrf.mxu0  ;;  %v12561_v49 = vld [vmem:[#allocation5 + $0x6c] ss:$16 sps:$4 sm:$0xff]   ;;  %v12556_v54 = vld [vmem:[#allocation5 + $0x2460] ss:$16 sps:$4 sm:$0xff]  }
 0x291   :  { %v7857_v24 = vpop.f32.mrf.mxu1  ;;  %v14052_v25 = vadd.f32 %v7855_v4, %v7815_v16  ;;  %8109 = vmatpush1.bf16.msra.mxu0 %v12538_v33  ;;  %v12564_v33 = vld [vmem:[#allocation5 + $0x2444] ss:$16 sps:$4 sm:$0xff]   ;;  %v12562_v61 = vld [vmem:[#allocation5 + $0x2440] ss:$16 sps:$4 sm:$0xff]   ;;  %v12573_v4 = vld [vmem:[#allocation5 + $0x2c] ss:$16 sps:$4 sm:$0xff]  }
 0x292   :  { %8150 = vmatpush1.bf16.msra.mxu1 %v12541_v56  ;;  %v7817_v26 = vpop.f32.mrf.mxu0  ;;  %8110 = vmatprep.subr.bf16.mxu0 %v12546_v6  ;;  %v12567_v56 = vld [vmem:[#allocation5 + $0x4c] ss:$16 sps:$4 sm:$0xff]   ;;  %v12568_v6 = vld [vmem:[#allocation5 + $0x2420] ss:$16 sps:$4 sm:$0xff]  }
 0x293   :  { %v7858_v27 = vpop.f32.mrf.mxu1  ;;  %8151 = vmatprep.subr.bf16.mxu1 %v12549_v11  ;;  %v13839_v11 = vmov 65535   ;;  %v12579_v62 = vld [vmem:[#allocation5 + $0xc] ss:$16 sps:$4 sm:$0xff]   ;;  %v12582_v24 = vld [vmem:[#allocation5 + $0x2524] ss:$16 sps:$4 sm:$0x1f]  }
 0x294   :  { %v7354_v16 = vsel %vm7352_vm1, 4294967295, %v13839_v11  ;;  %v12574_v26 = vld [vmem:[#allocation5 + $0x2400] ss:$16 sps:$4 sm:$0xff]  }
 0x295   :  { %8111 = vmatpush1.bf16.msra.mxu0 %v12544_v23  ;;  %v12571_v23 = vld [vmem:[#allocation5 + $0x28] ss:$16 sps:$4 sm:$0xff]   ;;  %v14054_v27 = vsel %vm7353_vm2, %v7354_v16, 0  ;;  %v12600_v16 = vld [vmem:[#allocation5 + $0x18c] ss:$16 sps:$4 sm:$0xff]  }
 0x296   :  { %8152 = vmatpush1.bf16.msra.mxu1 %v12547_v47  ;;  %8112 = vmatprep.subr.bf16.mxu0 %v12552_v28  ;;  %v12576_v47 = vld [vmem:[#allocation5 + $0x2404] ss:$16 sps:$4 sm:$0xff]   ;;  %v12577_v28 = vld [vmem:[#allocation5 + $0x8] ss:$16 sps:$4 sm:$0xff]  }
 0x297   :  { %8153 = vmatprep.subr.bf16.mxu1 %v12555_v36  ;;  %v12580_v36 = vld [vmem:[#allocation5 + $0x2520] ss:$16 sps:$4 sm:$0x1f]  }
 0x299   :  { %8113 = vmatpush1.bf16.msra.mxu0 %v12550_v12  ;;  %v7360_v12 = vand.u32 %v12582_v24, %v14054_v27  ;;  %v12606_v24 = vld [vmem:[#allocation5 + $0x16c] ss:$16 sps:$4 sm:$0xff]  }
 0x29a   :  { %8154 = vmatpush1.bf16.msra.mxu1 %v12553_v39  ;;  %8114 = vmatprep.subr.bf16.mxu0 %v12558_v53  ;;  %v12585_v39 = vld [vmem:[#allocation5 + $0x1ec] ss:$16 sps:$4 sm:$0xff]   ;;  %v12583_v53 = vld [vmem:[#allocation5 + $0x1e8] ss:$16 sps:$4 sm:$0xff]  }
 0x29b   :  { %8155 = vmatprep.subr.bf16.mxu1 %v12561_v49  ;;  %v7357_v49 = vand.u32 %v12580_v36, %v14054_v27  ;;  %v12607_v36 = vld [vmem:[#allocation5 + $0x2a8] ss:$16 sps:$4 sm:$0xff]  }
 0x29d   :  { %8115 = vmatpush1.bf16.msra.mxu0 %v12556_v54  ;;  %v12588_v54 = vld [vmem:[#allocation5 + $0x2504] ss:$16 sps:$4 sm:$0xff]  }
 0x29e   :  { %8156 = vmatpush1.bf16.msra.mxu1 %v12559_v41  ;;  %8116 = vmatprep.subr.bf16.mxu0 %v12564_v33  ;;  %v12591_v41 = vld [vmem:[#allocation5 + $0x1cc] ss:$16 sps:$4 sm:$0xff]   ;;  %v12586_v33 = vld [vmem:[#allocation5 + $0x2500] ss:$16 sps:$4 sm:$0xff]  }
 0x29f   :  { %8157 = vmatprep.subr.bf16.mxu1 %v12567_v56  ;;  %v12589_v56 = vld [vmem:[#allocation5 + $0x1c8] ss:$16 sps:$4 sm:$0xff]  }
 0x2a1   :  { %8117 = vmatpush1.bf16.msra.mxu0 %v12562_v61  ;;  %v138_v61 = vld [vmem:[#allocation2 + $0x120] sm:$0xff] }
 0x2a2   :  { %8158 = vmatpush1.bf16.msra.mxu1 %v12565_v63  ;;  %8118 = vmatprep.subr.bf16.mxu0 %v12570_v1  ;;  %v12594_v63 = vld [vmem:[#allocation5 + $0x1ac] ss:$16 sps:$4 sm:$0xff]   ;;  %v14058_v11 = vpack.c.bf16 %v138_v61, %v138_v61 }
 0x2a3   :  { %8159 = vmatprep.subr.bf16.mxu1 %v12573_v4  ;;  %v12597_v1 = vld [vmem:[#allocation5 + $0x2ec] ss:$16 sps:$4 sm:$0xff]   ;;  %v12592_v4 = vld [vmem:[#allocation5 + $0x1a8] ss:$16 sps:$4 sm:$0xff]  }
 0x2a4   :  { %v12627_v61 = vld [vmem:[#allocation5 + $0x24c] ss:$16 sps:$4 sm:$0xff]  }
 0x2a5   :  { %8119 = vmatpush1.bf16.msra.mxu0 %v12568_v6  ;;  %v12595_v6 = vld [vmem:[#allocation5 + $0x2e8] ss:$16 sps:$4 sm:$0xff]  }
 0x2a6   :  { %8160 = vmatpush1.bf16.msra.mxu1 %v12571_v23  ;;  %8120 = vmatprep.subr.bf16.mxu0 %v12576_v47  ;;  %v12603_v23 = vld [vmem:[#allocation5 + $0x2cc] ss:$16 sps:$4 sm:$0xff]   ;;  %v12598_v47 = vld [vmem:[#allocation5 + $0x188] ss:$16 sps:$4 sm:$0xff]  }
 0x2a7   :  { %8161 = vmatprep.subr.bf16.mxu1 %v12579_v62  ;;  %v12601_v62 = vld [vmem:[#allocation5 + $0x2c8] ss:$16 sps:$4 sm:$0xff]  }
 0x2a9   :  { %8121 = vmatpush1.bf16.msra.mxu0 %v12574_v26  ;;  %v12609_v26 = vld [vmem:[#allocation5 + $0x2ac] ss:$16 sps:$4 sm:$0xff]  }
 0x2aa   :  { %8162 = vmatpush1.bf16.msra.mxu1 %v12577_v28  ;;  %8134 = vmatprep.subr.bf16.mxu0 %v7360_v12  ;;  %v12604_v28 = vld [vmem:[#allocation5 + $0x168] ss:$16 sps:$4 sm:$0xff]   ;;  %v12612_v12 = vld [vmem:[#allocation5 + $0x14c] ss:$16 sps:$4 sm:$0xff]  }
 0x2ab   :  { %8163 = vmatprep.subr.bf16.mxu1 %v12585_v39  ;;  %v12615_v39 = vld [vmem:[#allocation5 + $0x28c] ss:$16 sps:$4 sm:$0xff]  }
 0x2ad   :  { %8135 = vmatpush2.bf16.msra.mxu0 %v7357_v49  ;;  %v12613_v49 = vld [vmem:[#allocation5 + $0x288] ss:$16 sps:$4 sm:$0xff]  }
 0x2ae   :  { %8164 = vmatpush2.bf16.msra.mxu1 %v12583_v53  ;;  %8136 = vmatprep.subr.bf16.mxu0 %v12588_v54  ;;  %v12610_v53 = vld [vmem:[#allocation5 + $0x148] ss:$16 sps:$4 sm:$0xff]   ;;  %v12618_v54 = vld [vmem:[#allocation5 + $0x12c] ss:$16 sps:$4 sm:$0xff]  }
 0x2af   :  { %8165 = vmatprep.subr.bf16.mxu1 %v12591_v41  ;;  %v12621_v41 = vld [vmem:[#allocation5 + $0x26c] ss:$16 sps:$4 sm:$0xff]  }
 0x2b1   :  { %8137 = vmatpush2.bf16.msra.mxu0 %v12586_v33  ;;  %v12616_v33 = vld [vmem:[#allocation5 + $0x128] ss:$16 sps:$4 sm:$0xff]  }
 0x2b2   :  { %8166 = vmatpush2.bf16.msra.mxu1 %v12589_v56  ;;  %8188 = vmatprep.subr.bf16.mxu0 %v12597_v1  ;;  %v12624_v56 = vld [vmem:[#allocation5 + $0x10c] ss:$16 sps:$4 sm:$0xff]   ;;  %v12625_v1 = vld [vmem:[#allocation5 + $0x248] ss:$16 sps:$4 sm:$0xff]  }
 0x2b3   :  { %8167 = vmatprep.subr.bf16.mxu1 %v12594_v63  ;;  %v12622_v63 = vld [vmem:[#allocation5 + $0x108] ss:$16 sps:$4 sm:$0xff]  }
 0x2b4   :  { %8139 = vmatmul.mubr.bf16.vlgmr.msra.gmra.mxu0 %v14058_v11 }
 0x2b5   :  { %8189 = vmatpush1.bf16.msra.mxu0 %v12595_v6  ;;  %8220 = vmatprep.mubr.bf16.mxu0 %v13901_v52  ;;  %v12619_v52 = vld [vmem:[#allocation5 + $0x268] ss:$16 sps:$4 sm:$0xff]   ;;  %v12633_v6 = vld [vmem:[#allocation5 + $0x4ec] ss:$16 sps:$4 sm:$0xff]  }
 0x2b6   :  { %8168 = vmatpush2.bf16.msra.mxu1 %v12592_v4  ;;  %8190 = vmatprep.subr.bf16.mxu0 %v12603_v23  ;;  %v12630_v4 = vld [vmem:[#allocation5 + $0x22c] ss:$16 sps:$4 sm:$0xff]   ;;  %v12631_v23 = vld [vmem:[#allocation5 + $0x4e8] ss:$16 sps:$4 sm:$0xff]  }
 0x2b7   :  { %8169 = vmatprep.subr.bf16.mxu1 %v12600_v16  ;;  %v12628_v16 = vld [vmem:[#allocation5 + $0x228] ss:$16 sps:$4 sm:$0xff]  }
 0x2b9   :  { %8191 = vmatpush1.bf16.msra.mxu0 %v12601_v62  ;;  %v12639_v62 = vld [vmem:[#allocation5 + $0x4cc] ss:$16 sps:$4 sm:$0xff]  }
 0x2ba   :  { %8170 = vmatpush2.bf16.msra.mxu1 %v12598_v47  ;;  %8192 = vmatprep.subr.bf16.mxu0 %v12609_v26  ;;  %v12636_v47 = vld [vmem:[#allocation5 + $0x20c] ss:$16 sps:$4 sm:$0xff]   ;;  %v12637_v26 = vld [vmem:[#allocation5 + $0x4c8] ss:$16 sps:$4 sm:$0xff]  }
 0x2bb   :  { %8171 = vmatprep.subr.bf16.mxu1 %v12606_v24  ;;  %v12634_v24 = vld [vmem:[#allocation5 + $0x208] ss:$16 sps:$4 sm:$0xff]  }
 0x2bd   :  { %8193 = vmatpush1.bf16.msra.mxu0 %v12607_v36 }
 0x2be   :  { %8172 = vmatpush2.bf16.msra.mxu1 %v12604_v28  ;;  %8194 = vmatprep.subr.bf16.mxu0 %v12615_v39 }
 0x2bf   :  { %8173 = vmatprep.subr.bf16.mxu1 %v12612_v12 }
 0x2c1   :  { %8195 = vmatpush1.bf16.msra.mxu0 %v12613_v49  ;;  %v12642_v49 = vld [vmem:[#allocation5 + $0x3ec] ss:$16 sps:$4 sm:$0xff]  }
 0x2c2   :  { %8174 = vmatpush2.bf16.msra.mxu1 %v12610_v53  ;;  %8196 = vmatprep.subr.bf16.mxu0 %v12621_v41 }
 0x2c3   :  { %8175 = vmatprep.subr.bf16.mxu1 %v12618_v54  ;;  %v12645_v54 = vld [vmem:[#allocation5 + $0x4ac] ss:$16 sps:$4 sm:$0xff]  }
 0x2c5   :  { %8197 = vmatpush1.bf16.msra.mxu0 %v12619_v52  ;;  %v12640_v52 = vld [vmem:[#allocation5 + $0x3e8] ss:$16 sps:$4 sm:$0xff]  }
 0x2c6   :  { %8176 = vmatpush2.bf16.msra.mxu1 %v12616_v33  ;;  %8198 = vmatprep.subr.bf16.mxu0 %v12627_v61 }
 0x2c7   :  { %8177 = vmatprep.subr.bf16.mxu1 %v12624_v56  ;;  %v12643_v56 = vld [vmem:[#allocation5 + $0x4a8] ss:$16 sps:$4 sm:$0xff]  }
 0x2c9   :  { %8199 = vmatpush1.bf16.msra.mxu0 %v12625_v1 }
 0x2ca   :  { %8178 = vmatpush2.bf16.msra.mxu1 %v12622_v63  ;;  %8200 = vmatprep.subr.bf16.mxu0 %v12630_v4  ;;  %v12648_v4 = vld [vmem:[#allocation5 + $0x3cc] ss:$16 sps:$4 sm:$0xff]  }
 0x2cb   :  { %8229 = vmatprep.subr.bf16.mxu1 %v12633_v6  ;;  %v12651_v6 = vld [vmem:[#allocation5 + $0x48c] ss:$16 sps:$4 sm:$0xff]  }
 0x2cc   :  { %v7894_v28 = vpop.f32.mrf.mxu0 }
 0x2cd   :  { %v7935_v36 = vpop.f32.mrf.mxu1  ;;  %8180 = vmatmul.mubr.bf16.vlgmr.msra.gmra.mxu1 %v13905_v8  ;;  %v7895_v12 = vadd.f32 %v7894_v28, %v14046_v15  ;;  %8201 = vmatpush1.bf16.msra.mxu0 %v12628_v16  ;;  %v12646_v16 = vld [vmem:[#allocation5 + $0x3c8] ss:$16 sps:$4 sm:$0xff]  }
 0x2ce   :  { %8230 = vmatpush1.bf16.msra.mxu1 %v12631_v23  ;;  %v7896_v39 = vpop.f32.mrf.mxu0  ;;  %8202 = vmatprep.subr.bf16.mxu0 %v12636_v47  ;;  %v12654_v23 = vld [vmem:[#allocation5 + $0x3ac] ss:$16 sps:$4 sm:$0xff]   ;;  %v12652_v47 = vld [vmem:[#allocation5 + $0x3a8] ss:$16 sps:$4 sm:$0xff]  }
 0x2cf   :  { %v7937_v53 = vpop.f32.mrf.mxu1  ;;  %8231 = vmatprep.subr.bf16.mxu1 %v12639_v62  ;;  %v14064_v41 = vadd.f32 %v7935_v36, %v7895_v12  ;;  %v7897_v33 = vadd.f32 %v7896_v39, %v14052_v25  ;;  %8261 = vmatprep.mubr.bf16.mxu1 %v13911_v37  ;;  %v12649_v25 = vld [vmem:[#allocation5 + $0x488] ss:$16 sps:$4 sm:$0xff]   ;;  %v12657_v37 = vld [vmem:[#allocation5 + $0x46c] ss:$16 sps:$4 sm:$0xff]  }
 0x2d0   :  { %v7898_v61 = vpop.f32.mrf.mxu0  ;;  %v12655_v62 = vld [vmem:[#allocation5 + $0x468] ss:$16 sps:$4 sm:$0xff]   ;;  %v12666_v12 = vld [vmem:[#allocation5 + $0x36c] ss:$16 sps:$4 sm:$0xff]  }
 0x2d1   :  { %v7939_v8 = vpop.f32.mrf.mxu1  ;;  %v14068_v63 = vadd.f32 %v7937_v53, %v7897_v33  ;;  %8203 = vmatpush1.bf16.msra.mxu0 %v12634_v24  ;;  %v12660_v24 = vld [vmem:[#allocation5 + $0x38c] ss:$16 sps:$4 sm:$0xff]   ;;  %v12658_v28 = vld [vmem:[#allocation5 + $0x388] ss:$16 sps:$4 sm:$0xff]  }
 0x2d2   :  { %8232 = vmatpush1.bf16.msra.mxu1 %v12637_v26  ;;  %v7899_v15 = vpop.f32.mrf.mxu0  ;;  %8204 = vmatprep.subr.bf16.mxu0 %v12642_v49  ;;  %v12663_v26 = vld [vmem:[#allocation5 + $0x44c] ss:$16 sps:$4 sm:$0xff]   ;;  %v12661_v36 = vld [vmem:[#allocation5 + $0x448] ss:$16 sps:$4 sm:$0xff]  }
 0x2d3   :  { %v7940_v1 = vpop.f32.mrf.mxu1  ;;  %8233 = vmatprep.subr.bf16.mxu1 %v12645_v54  ;;  %v12669_v39 = vld [vmem:[#allocation5 + $0x42c] ss:$16 sps:$4 sm:$0xff]   ;;  %v12664_v53 = vld [vmem:[#allocation5 + $0x368] ss:$16 sps:$4 sm:$0xff]  }
 0x2d4   :  { %v12667_v49 = vld [vmem:[#allocation5 + $0x428] ss:$16 sps:$4 sm:$0xff]   ;;  %v12672_v54 = vld [vmem:[#allocation5 + $0x34c] ss:$16 sps:$4 sm:$0xff]  }
 0x2d5   :  { %8205 = vmatpush2.bf16.msra.mxu0 %v12640_v52  ;;  %v12675_v33 = vld [vmem:[#allocation5 + $0x40c] ss:$16 sps:$4 sm:$0xff]   ;;  %v12670_v52 = vld [vmem:[#allocation5 + $0x348] ss:$16 sps:$4 sm:$0xff]  }
 0x2d6   :  { %8234 = vmatpush1.bf16.msra.mxu1 %v12643_v56  ;;  %8206 = vmatprep.subr.bf16.mxu0 %v12648_v4  ;;  %v12673_v56 = vld [vmem:[#allocation5 + $0x408] ss:$16 sps:$4 sm:$0xff]   ;;  %v12678_v61 = vld [vmem:[#allocation5 + $0x32c] ss:$16 sps:$4 sm:$0xff]  }
 0x2d7   :  { %8235 = vmatprep.subr.bf16.mxu1 %v12651_v6  ;;  %v12681_v8 = vld [vmem:[#allocation5 + $0x5ec] ss:$16 sps:$4 sm:$0xff]   ;;  %v12676_v15 = vld [vmem:[#allocation5 + $0x328] ss:$16 sps:$4 sm:$0xff]  }
 0x2d8   :  { %v12679_v1 = vld [vmem:[#allocation5 + $0x5e8] ss:$16 sps:$4 sm:$0xff]   ;;  %v12684_v4 = vld [vmem:[#allocation5 + $0x30c] ss:$16 sps:$4 sm:$0xff]  }
 0x2d9   :  { %8207 = vmatpush2.bf16.msra.mxu0 %v12646_v16  ;;  %v12687_v6 = vld [vmem:[#allocation5 + $0x5cc] ss:$16 sps:$4 sm:$0xff]   ;;  %v12682_v16 = vld [vmem:[#allocation5 + $0x308] ss:$16 sps:$4 sm:$0xff]  }
 0x2da   :  { %8236 = vmatpush1.bf16.msra.mxu1 %v12649_v25  ;;  %8208 = vmatprep.subr.bf16.mxu0 %v12654_v23  ;;  %v12685_v25 = vld [vmem:[#allocation5 + $0x5c8] ss:$16 sps:$4 sm:$0xff]   ;;  %v12690_v23 = vld [vmem:[#allocation5 + $0x5ac] ss:$16 sps:$4 sm:$0xff]  }
 0x2db   :  { %8237 = vmatprep.subr.bf16.mxu1 %v12657_v37  ;;  %v12693_v37 = vld [vmem:[#allocation5 + $0x6ec] ss:$16 sps:$4 sm:$0xff]  }
 0x2dd   :  { %8209 = vmatpush2.bf16.msra.mxu0 %v12652_v47  ;;  %v12688_v47 = vld [vmem:[#allocation5 + $0x5a8] ss:$16 sps:$4 sm:$0xff]  }
 0x2de   :  { %8238 = vmatpush1.bf16.msra.mxu1 %v12655_v62  ;;  %8210 = vmatprep.subr.bf16.mxu0 %v12660_v24  ;;  %v12691_v62 = vld [vmem:[#allocation5 + $0x6e8] ss:$16 sps:$4 sm:$0xff]   ;;  %v12696_v24 = vld [vmem:[#allocation5 + $0x58c] ss:$16 sps:$4 sm:$0xff]  }
 0x2df   :  { %8239 = vmatprep.subr.bf16.mxu1 %v12663_v26  ;;  %v12699_v26 = vld [vmem:[#allocation5 + $0x6cc] ss:$16 sps:$4 sm:$0xff]  }
 0x2e1   :  { %8211 = vmatpush2.bf16.msra.mxu0 %v12658_v28  ;;  %v12694_v28 = vld [vmem:[#allocation5 + $0x588] ss:$16 sps:$4 sm:$0xff]  }
 0x2e2   :  { %8240 = vmatpush1.bf16.msra.mxu1 %v12661_v36  ;;  %8212 = vmatprep.subr.bf16.mxu0 %v12666_v12  ;;  %v12697_v36 = vld [vmem:[#allocation5 + $0x6c8] ss:$16 sps:$4 sm:$0xff]   ;;  %v12702_v12 = vld [vmem:[#allocation5 + $0x56c] ss:$16 sps:$4 sm:$0xff]  }
 0x2e3   :  { %8241 = vmatprep.subr.bf16.mxu1 %v12669_v39  ;;  %v12705_v39 = vld [vmem:[#allocation5 + $0x6ac] ss:$16 sps:$4 sm:$0xff]  }
 0x2e5   :  { %8213 = vmatpush2.bf16.msra.mxu0 %v12664_v53  ;;  %v12700_v53 = vld [vmem:[#allocation5 + $0x568] ss:$16 sps:$4 sm:$0xff]  }
 0x2e6   :  { %8242 = vmatpush1.bf16.msra.mxu1 %v12667_v49  ;;  %8214 = vmatprep.subr.bf16.mxu0 %v12672_v54  ;;  %v12703_v49 = vld [vmem:[#allocation5 + $0x6a8] ss:$16 sps:$4 sm:$0xff]   ;;  %v12708_v54 = vld [vmem:[#allocation5 + $0x54c] ss:$16 sps:$4 sm:$0xff]  }
 0x2e7   :  { %8243 = vmatprep.subr.bf16.mxu1 %v12675_v33  ;;  %v12711_v33 = vld [vmem:[#allocation5 + $0x68c] ss:$16 sps:$4 sm:$0xff]  }
 0x2e9   :  { %8215 = vmatpush2.bf16.msra.mxu0 %v12670_v52  ;;  %v12706_v52 = vld [vmem:[#allocation5 + $0x548] ss:$16 sps:$4 sm:$0xff]  }
 0x2ea   :  { %8244 = vmatpush1.bf16.msra.mxu1 %v12673_v56  ;;  %8216 = vmatprep.subr.bf16.mxu0 %v12678_v61  ;;  %v12714_v56 = vld [vmem:[#allocation5 + $0x52c] ss:$16 sps:$4 sm:$0xff]  }
 0x2eb   :  { %8245 = vmatprep.subr.bf16.mxu1 %v12681_v8  ;;  %v12717_v61 = vld [vmem:[#allocation5 + $0x66c] ss:$16 sps:$4 sm:$0xff]   ;;  %v12712_v8 = vld [vmem:[#allocation5 + $0x528] ss:$16 sps:$4 sm:$0xff]  }
 0x2ed   :  { %8217 = vmatpush2.bf16.msra.mxu0 %v12676_v15  ;;  %v12715_v15 = vld [vmem:[#allocation5 + $0x668] ss:$16 sps:$4 sm:$0xff]  }
 0x2ee   :  { %8246 = vmatpush2.bf16.msra.mxu1 %v12679_v1  ;;  %8218 = vmatprep.subr.bf16.mxu0 %v12684_v4  ;;  %v12723_v1 = vld [vmem:[#allocation5 + $0x64c] ss:$16 sps:$4 sm:$0xff]   ;;  %v12718_v4 = vld [vmem:[#allocation5 + $0x508] ss:$16 sps:$4 sm:$0xff]  }
 0x2ef   :  { %8247 = vmatprep.subr.bf16.mxu1 %v12687_v6  ;;  %v12721_v6 = vld [vmem:[#allocation5 + $0x648] ss:$16 sps:$4 sm:$0xff]  }
 0x2f1   :  { %8219 = vmatpush2.bf16.msra.mxu0 %v12682_v16  ;;  %v12726_v16 = vld [vmem:[#allocation5 + $0x62c] ss:$16 sps:$4 sm:$0xff]  }
 0x2f2   :  { %8248 = vmatpush2.bf16.msra.mxu1 %v12685_v25  ;;  %8270 = vmatprep.subr.bf16.mxu0 %v12693_v37  ;;  %v12729_v25 = vld [vmem:[#allocation5 + $0x8ec] ss:$16 sps:$4 sm:$0xff]   ;;  %v12727_v37 = vld [vmem:[#allocation5 + $0x8e8] ss:$16 sps:$4 sm:$0xff]  }
 0x2f3   :  { %8249 = vmatprep.subr.bf16.mxu1 %v12690_v23  ;;  %v12724_v23 = vld [vmem:[#allocation5 + $0x628] ss:$16 sps:$4 sm:$0xff]  }
 0x2f4   :  { %8221 = vmatmul.mubr.bf16.vlgmr.msra.gmra.mxu0 %v13907_v9  ;;  %v12709_v9 = vld [vmem:[#allocation5 + $0x688] ss:$16 sps:$4 sm:$0xff]  }
 0x2f5   :  { %8271 = vmatpush1.bf16.msra.mxu0 %v12691_v62  ;;  %8302 = vmatprep.mubr.bf16.mxu0 %v13913_v40  ;;  %v12720_v40 = vld [vmem:[#allocation5 + $0x50c] ss:$16 sps:$4 sm:$0xff]  }
 0x2f6   :  { %8250 = vmatpush2.bf16.msra.mxu1 %v12688_v47  ;;  %8272 = vmatprep.subr.bf16.mxu0 %v12699_v26  ;;  %v12732_v47 = vld [vmem:[#allocation5 + $0x60c] ss:$16 sps:$4 sm:$0xff]   ;;  %v12733_v26 = vld [vmem:[#allocation5 + $0x8c8] ss:$16 sps:$4 sm:$0xff]  }
 0x2f7   :  { %8251 = vmatprep.subr.bf16.mxu1 %v12696_v24  ;;  %v12735_v62 = vld [vmem:[#allocation5 + $0x8cc] ss:$16 sps:$4 sm:$0xff]   ;;  %v12730_v24 = vld [vmem:[#allocation5 + $0x608] ss:$16 sps:$4 sm:$0xff]  }
 0x2f9   :  { %8273 = vmatpush1.bf16.msra.mxu0 %v12697_v36 }
 0x2fa   :  { %8252 = vmatpush2.bf16.msra.mxu1 %v12694_v28  ;;  %8274 = vmatprep.subr.bf16.mxu0 %v12705_v39 }
 0x2fb   :  { %8253 = vmatprep.subr.bf16.mxu1 %v12702_v12 }
 0x2fd   :  { %8275 = vmatpush1.bf16.msra.mxu0 %v12703_v49  ;;  %v12738_v49 = vld [vmem:[#allocation5 + $0x7ec] ss:$16 sps:$4 sm:$0xff]  }
 0x2fe   :  { %8254 = vmatpush2.bf16.msra.mxu1 %v12700_v53  ;;  %8276 = vmatprep.subr.bf16.mxu0 %v12711_v33 }
 0x2ff   :  { %8255 = vmatprep.subr.bf16.mxu1 %v12708_v54  ;;  %v12741_v54 = vld [vmem:[#allocation5 + $0x8ac] ss:$16 sps:$4 sm:$0xff]  }
 0x301   :  { %8277 = vmatpush1.bf16.msra.mxu0 %v12709_v9  ;;  %v12736_v9 = vld [vmem:[#allocation5 + $0x7e8] ss:$16 sps:$4 sm:$0xff]  }
 0x302   :  { %8256 = vmatpush2.bf16.msra.mxu1 %v12706_v52  ;;  %8278 = vmatprep.subr.bf16.mxu0 %v12717_v61 }
 0x303   :  { %8257 = vmatprep.subr.bf16.mxu1 %v12714_v56  ;;  %v12739_v56 = vld [vmem:[#allocation5 + $0x8a8] ss:$16 sps:$4 sm:$0xff]  }
 0x305   :  { %8279 = vmatpush1.bf16.msra.mxu0 %v12715_v15 }
 0x306   :  { %8258 = vmatpush2.bf16.msra.mxu1 %v12712_v8  ;;  %8280 = vmatprep.subr.bf16.mxu0 %v12723_v1  ;;  %v12747_v1 = vld [vmem:[#allocation5 + $0x88c] ss:$16 sps:$4 sm:$0xff]  }
 0x307   :  { %8259 = vmatprep.subr.bf16.mxu1 %v12720_v40  ;;  %v12744_v40 = vld [vmem:[#allocation5 + $0x7cc] ss:$16 sps:$4 sm:$0xff]  }
 0x309   :  { %8281 = vmatpush1.bf16.msra.mxu0 %v12721_v6  ;;  %v12750_v6 = vld [vmem:[#allocation5 + $0x7ac] ss:$16 sps:$4 sm:$0xff]  }
 0x30a   :  { %8260 = vmatpush2.bf16.msra.mxu1 %v12718_v4  ;;  %8282 = vmatprep.subr.bf16.mxu0 %v12726_v16  ;;  %v12742_v4 = vld [vmem:[#allocation5 + $0x7c8] ss:$16 sps:$4 sm:$0xff]  }
 0x30b   :  { %8311 = vmatprep.subr.bf16.mxu1 %v12729_v25  ;;  %v12748_v16 = vld [vmem:[#allocation5 + $0x7a8] ss:$16 sps:$4 sm:$0xff]  }
 0x30c   :  { %v7976_v28 = vpop.f32.mrf.mxu0  ;;  %v12751_v25 = vld [vmem:[#allocation5 + $0x868] ss:$16 sps:$4 sm:$0xff]  }
 0x30d   :  { %v8017_v36 = vpop.f32.mrf.mxu1  ;;  %8262 = vmatmul.mubr.bf16.vlgmr.msra.gmra.mxu1 %v13917_v20  ;;  %v7977_v12 = vadd.f32 %v7976_v28, %v14064_v41  ;;  %8283 = vmatpush1.bf16.msra.mxu0 %v12724_v23  ;;  %v12756_v23 = vld [vmem:[#allocation5 + $0x78c] ss:$16 sps:$4 sm:$0xff]   ;;  %v12760_v28 = vld [vmem:[#allocation5 + $0x768] ss:$16 sps:$4 sm:$0xff]  }
 0x30e   :  { %8312 = vmatpush1.bf16.msra.mxu1 %v12727_v37  ;;  %v7978_v39 = vpop.f32.mrf.mxu0  ;;  %8284 = vmatprep.subr.bf16.mxu0 %v12732_v47  ;;  %v12759_v37 = vld [vmem:[#allocation5 + $0x84c] ss:$16 sps:$4 sm:$0xff]   ;;  %v12754_v47 = vld [vmem:[#allocation5 + $0x788] ss:$16 sps:$4 sm:$0xff]  }
 0x30f   :  { %v8019_v53 = vpop.f32.mrf.mxu1  ;;  %8313 = vmatprep.subr.bf16.mxu1 %v12735_v62  ;;  %v14074_v33 = vadd.f32 %v8017_v36, %v7977_v12  ;;  %v7979_v52 = vadd.f32 %v7978_v39, %v14068_v63  ;;  %8343 = vmatprep.mubr.bf16.mxu1 %v13923_v29  ;;  %v12745_v63 = vld [vmem:[#allocation5 + $0x888] ss:$16 sps:$4 sm:$0xff]   ;;  %v12753_v29 = vld [vmem:[#allocation5 + $0x86c] ss:$16 sps:$4 sm:$0xff]  }
 0x310   :  { %v7980_v61 = vpop.f32.mrf.mxu0  ;;  %v12757_v62 = vld [vmem:[#allocation5 + $0x848] ss:$16 sps:$4 sm:$0xff]   ;;  %v12768_v12 = vld [vmem:[#allocation5 + $0x74c] ss:$16 sps:$4 sm:$0xff]  }
 0x311   :  { %v8021_v20 = vpop.f32.mrf.mxu1  ;;  %v14078_v8 = vadd.f32 %v8019_v53, %v7979_v52  ;;  %8285 = vmatpush1.bf16.msra.mxu0 %v12730_v24  ;;  %v12762_v24 = vld [vmem:[#allocation5 + $0x76c] ss:$16 sps:$4 sm:$0xff]   ;;  %v12763_v36 = vld [vmem:[#allocation5 + $0x828] ss:$16 sps:$4 sm:$0xff]  }
 0x312   :  { %8314 = vmatpush1.bf16.msra.mxu1 %v12733_v26  ;;  %v7981_v41 = vpop.f32.mrf.mxu0  ;;  %8286 = vmatprep.subr.bf16.mxu0 %v12738_v49  ;;  %v12765_v26 = vld [vmem:[#allocation5 + $0x82c] ss:$16 sps:$4 sm:$0xff]   ;;  %v12766_v53 = vld [vmem:[#allocation5 + $0x748] ss:$16 sps:$4 sm:$0xff]  }
 0x313   :  { %v8022_v15 = vpop.f32.mrf.mxu1  ;;  %8315 = vmatprep.subr.bf16.mxu1 %v12741_v54  ;;  %v12771_v39 = vld [vmem:[#allocation5 + $0x80c] ss:$16 sps:$4 sm:$0xff]   ;;  %v12769_v49 = vld [vmem:[#allocation5 + $0x808] ss:$16 sps:$4 sm:$0xff]  }
 0x314   :  { %v12774_v54 = vld [vmem:[#allocation5 + $0x72c] ss:$16 sps:$4 sm:$0xff]   ;;  %v12778_v41 = vld [vmem:[#allocation5 + $0x708] ss:$16 sps:$4 sm:$0xff]  }
 0x315   :  { %8287 = vmatpush2.bf16.msra.mxu0 %v12736_v9  ;;  %v12777_v52 = vld [vmem:[#allocation5 + $0x9ec] ss:$16 sps:$4 sm:$0xff]   ;;  %v12772_v9 = vld [vmem:[#allocation5 + $0x728] ss:$16 sps:$4 sm:$0xff]  }
 0x316   :  { %8316 = vmatpush1.bf16.msra.mxu1 %v12739_v56  ;;  %8288 = vmatprep.subr.bf16.mxu0 %v12744_v40  ;;  %v12775_v56 = vld [vmem:[#allocation5 + $0x9e8] ss:$16 sps:$4 sm:$0xff]   ;;  %v12780_v61 = vld [vmem:[#allocation5 + $0x70c] ss:$16 sps:$4 sm:$0xff]  }
 0x317   :  { %8317 = vmatprep.subr.bf16.mxu1 %v12747_v1  ;;  %v12783_v20 = vld [vmem:[#allocation5 + $0x9cc] ss:$16 sps:$4 sm:$0xff]   ;;  %v12781_v15 = vld [vmem:[#allocation5 + $0x9c8] ss:$16 sps:$4 sm:$0xff]  }
 0x318   :  { %v12786_v40 = vld [vmem:[#allocation5 + $0x9ac] ss:$16 sps:$4 sm:$0xff]  }
 0x319   :  { %8289 = vmatpush2.bf16.msra.mxu0 %v12742_v4  ;;  %v12789_v1 = vld [vmem:[#allocation5 + $0xaec] ss:$16 sps:$4 sm:$0xff]   ;;  %v12784_v4 = vld [vmem:[#allocation5 + $0x9a8] ss:$16 sps:$4 sm:$0xff]  }
 0x31a   :  { %8318 = vmatpush1.bf16.msra.mxu1 %v12745_v63  ;;  %8290 = vmatprep.subr.bf16.mxu0 %v12750_v6  ;;  %v12787_v63 = vld [vmem:[#allocation5 + $0xae8] ss:$16 sps:$4 sm:$0xff]   ;;  %v12792_v6 = vld [vmem:[#allocation5 + $0x98c] ss:$16 sps:$4 sm:$0xff]  }
 0x31b   :  { %8319 = vmatprep.subr.bf16.mxu1 %v12753_v29  ;;  %v12795_v29 = vld [vmem:[#allocation5 + $0xacc] ss:$16 sps:$4 sm:$0xff]  }
 0x31d   :  { %8291 = vmatpush2.bf16.msra.mxu0 %v12748_v16  ;;  %v12790_v16 = vld [vmem:[#allocation5 + $0x988] ss:$16 sps:$4 sm:$0xff]  }
 0x31e   :  { %8320 = vmatpush1.bf16.msra.mxu1 %v12751_v25  ;;  %8292 = vmatprep.subr.bf16.mxu0 %v12756_v23  ;;  %v12793_v25 = vld [vmem:[#allocation5 + $0xac8] ss:$16 sps:$4 sm:$0xff]   ;;  %v12798_v23 = vld [vmem:[#allocation5 + $0x96c] ss:$16 sps:$4 sm:$0xff]  }
 0x31f   :  { %8321 = vmatprep.subr.bf16.mxu1 %v12759_v37  ;;  %v12801_v37 = vld [vmem:[#allocation5 + $0xaac] ss:$16 sps:$4 sm:$0xff]  }
 0x321   :  { %8293 = vmatpush2.bf16.msra.mxu0 %v12754_v47  ;;  %v12796_v47 = vld [vmem:[#allocation5 + $0x968] ss:$16 sps:$4 sm:$0xff]  }
 0x322   :  { %8322 = vmatpush1.bf16.msra.mxu1 %v12757_v62  ;;  %8294 = vmatprep.subr.bf16.mxu0 %v12762_v24  ;;  %v12799_v62 = vld [vmem:[#allocation5 + $0xaa8] ss:$16 sps:$4 sm:$0xff]   ;;  %v12804_v24 = vld [vmem:[#allocation5 + $0x94c] ss:$16 sps:$4 sm:$0xff]  }
 0x323   :  { %8323 = vmatprep.subr.bf16.mxu1 %v12765_v26  ;;  %v12807_v26 = vld [vmem:[#allocation5 + $0xa8c] ss:$16 sps:$4 sm:$0xff]  }
 0x325   :  { %8295 = vmatpush2.bf16.msra.mxu0 %v12760_v28  ;;  %v12802_v28 = vld [vmem:[#allocation5 + $0x948] ss:$16 sps:$4 sm:$0xff]  }
 0x326   :  { %8324 = vmatpush1.bf16.msra.mxu1 %v12763_v36  ;;  %8296 = vmatprep.subr.bf16.mxu0 %v12768_v12  ;;  %v12810_v36 = vld [vmem:[#allocation5 + $0x92c] ss:$16 sps:$4 sm:$0xff]  }
 0x327   :  { %8325 = vmatprep.subr.bf16.mxu1 %v12771_v39  ;;  %v12813_v12 = vld [vmem:[#allocation5 + $0xa6c] ss:$16 sps:$4 sm:$0xff]   ;;  %v12808_v39 = vld [vmem:[#allocation5 + $0x928] ss:$16 sps:$4 sm:$0xff]  }
 0x329   :  { %8297 = vmatpush2.bf16.msra.mxu0 %v12766_v53  ;;  %v12811_v53 = vld [vmem:[#allocation5 + $0xa68] ss:$16 sps:$4 sm:$0xff]  }
 0x32a   :  { %8326 = vmatpush1.bf16.msra.mxu1 %v12769_v49  ;;  %8298 = vmatprep.subr.bf16.mxu0 %v12774_v54  ;;  %v12819_v49 = vld [vmem:[#allocation5 + $0xa4c] ss:$16 sps:$4 sm:$0xff]   ;;  %v12814_v54 = vld [vmem:[#allocation5 + $0x908] ss:$16 sps:$4 sm:$0xff]  }
 0x32b   :  { %8327 = vmatprep.subr.bf16.mxu1 %v12777_v52  ;;  %v12817_v52 = vld [vmem:[#allocation5 + $0xa48] ss:$16 sps:$4 sm:$0xff]  }
 0x32d   :  { %8299 = vmatpush2.bf16.msra.mxu0 %v12772_v9  ;;  %v12822_v9 = vld [vmem:[#allocation5 + $0xa2c] ss:$16 sps:$4 sm:$0xff]  }
 0x32e   :  { %8328 = vmatpush2.bf16.msra.mxu1 %v12775_v56  ;;  %8300 = vmatprep.subr.bf16.mxu0 %v12780_v61  ;;  %v12825_v56 = vld [vmem:[#allocation5 + $0xcec] ss:$16 sps:$4 sm:$0xff]   ;;  %v12820_v61 = vld [vmem:[#allocation5 + $0xa28] ss:$16 sps:$4 sm:$0xff]  }
 0x32f   :  { %8329 = vmatprep.subr.bf16.mxu1 %v12783_v20  ;;  %v12823_v20 = vld [vmem:[#allocation5 + $0xce8] ss:$16 sps:$4 sm:$0xff]  }
 0x331   :  { %8301 = vmatpush2.bf16.msra.mxu0 %v12778_v41  ;;  %v12828_v41 = vld [vmem:[#allocation5 + $0xa0c] ss:$16 sps:$4 sm:$0xff]  }
 0x332   :  { %8330 = vmatpush2.bf16.msra.mxu1 %v12781_v15  ;;  %8352 = vmatprep.subr.bf16.mxu0 %v12789_v1  ;;  %v12831_v15 = vld [vmem:[#allocation5 + $0xccc] ss:$16 sps:$4 sm:$0xff]   ;;  %v12829_v1 = vld [vmem:[#allocation5 + $0xcc8] ss:$16 sps:$4 sm:$0xff]  }
 0x333   :  { %8331 = vmatprep.subr.bf16.mxu1 %v12786_v40  ;;  %v12826_v40 = vld [vmem:[#allocation5 + $0xa08] ss:$16 sps:$4 sm:$0xff]  }
 0x334   :  { %8303 = vmatmul.mubr.bf16.vlgmr.msra.gmra.mxu0 %v13919_v21  ;;  %v12805_v21 = vld [vmem:[#allocation5 + $0xa88] ss:$16 sps:$4 sm:$0xff]  }
 0x335   :  { %8353 = vmatpush1.bf16.msra.mxu0 %v12787_v63  ;;  %8384 = vmatprep.mubr.bf16.mxu0 %v13925_v32  ;;  %v12816_v32 = vld [vmem:[#allocation5 + $0x90c] ss:$16 sps:$4 sm:$0xff]  }
 0x336   :  { %8332 = vmatpush2.bf16.msra.mxu1 %v12784_v4  ;;  %8354 = vmatprep.subr.bf16.mxu0 %v12795_v29 }
 0x337   :  { %8333 = vmatprep.subr.bf16.mxu1 %v12792_v6 }
 0x339   :  { %8355 = vmatpush1.bf16.msra.mxu0 %v12793_v25  ;;  %v12834_v25 = vld [vmem:[#allocation5 + $0xbec] ss:$16 sps:$4 sm:$0xff]  }
 0x33a   :  { %8334 = vmatpush2.bf16.msra.mxu1 %v12790_v16  ;;  %8356 = vmatprep.subr.bf16.mxu0 %v12801_v37 }
 0x33b   :  { %8335 = vmatprep.subr.bf16.mxu1 %v12798_v23  ;;  %v12837_v23 = vld [vmem:[#allocation5 + $0xcac] ss:$16 sps:$4 sm:$0xff]  }
 0x33d   :  { %8357 = vmatpush1.bf16.msra.mxu0 %v12799_v62 }
 0x33e   :  { %8336 = vmatpush2.bf16.msra.mxu1 %v12796_v47  ;;  %8358 = vmatprep.subr.bf16.mxu0 %v12807_v26 }
 0x33f   :  { %8337 = vmatprep.subr.bf16.mxu1 %v12804_v24 }
 0x341   :  { %8359 = vmatpush1.bf16.msra.mxu0 %v12805_v21 }
 0x342   :  { %8338 = vmatpush2.bf16.msra.mxu1 %v12802_v28  ;;  %8360 = vmatprep.subr.bf16.mxu0 %v12813_v12  ;;  %v12843_v12 = vld [vmem:[#allocation5 + $0xc8c] ss:$16 sps:$4 sm:$0xff]  }
 0x343   :  { %8339 = vmatprep.subr.bf16.mxu1 %v12810_v36  ;;  %v12840_v36 = vld [vmem:[#allocation5 + $0xbcc] ss:$16 sps:$4 sm:$0xff]  }
 0x345   :  { %8361 = vmatpush1.bf16.msra.mxu0 %v12811_v53  ;;  %v12849_v53 = vld [vmem:[#allocation5 + $0xc6c] ss:$16 sps:$4 sm:$0xff]  }
 0x346   :  { %8340 = vmatpush2.bf16.msra.mxu1 %v12808_v39  ;;  %8362 = vmatprep.subr.bf16.mxu0 %v12819_v49  ;;  %v12838_v39 = vld [vmem:[#allocation5 + $0xbc8] ss:$16 sps:$4 sm:$0xff]  }
 0x347   :  { %8341 = vmatprep.subr.bf16.mxu1 %v12816_v32  ;;  %v12844_v32 = vld [vmem:[#allocation5 + $0xba8] ss:$16 sps:$4 sm:$0xff]  }
 0x348   :  { %v12847_v49 = vld [vmem:[#allocation5 + $0xc68] ss:$16 sps:$4 sm:$0xff]  }
 0x349   :  { %8363 = vmatpush1.bf16.msra.mxu0 %v12817_v52  ;;  %v12855_v52 = vld [vmem:[#allocation5 + $0xc4c] ss:$16 sps:$4 sm:$0xff]  }
 0x34a   :  { %8342 = vmatpush2.bf16.msra.mxu1 %v12814_v54  ;;  %8364 = vmatprep.subr.bf16.mxu0 %v12822_v9  ;;  %v12852_v54 = vld [vmem:[#allocation5 + $0xb8c] ss:$16 sps:$4 sm:$0xff]   ;;  %v12850_v9 = vld [vmem:[#allocation5 + $0xb88] ss:$16 sps:$4 sm:$0xff]  }
 0x34b   :  { %8393 = vmatprep.subr.bf16.mxu1 %v12825_v56  ;;  %v12853_v56 = vld [vmem:[#allocation5 + $0xc48] ss:$16 sps:$4 sm:$0xff]  }
 0x34c   :  { %v8058_v4 = vpop.f32.mrf.mxu0 }
 0x34d   :  { %v8099_v63 = vpop.f32.mrf.mxu1  ;;  %8344 = vmatmul.mubr.bf16.vlgmr.msra.gmra.mxu1 %v13929_v42  ;;  %v8059_v6 = vadd.f32 %v8058_v4, %v14074_v33  ;;  %8365 = vmatpush1.bf16.msra.mxu0 %v12820_v61  ;;  %v12832_v42 = vld [vmem:[#allocation5 + $0xbe8] ss:$16 sps:$4 sm:$0xff]   ;;  %v12858_v61 = vld [vmem:[#allocation5 + $0xb6c] ss:$16 sps:$4 sm:$0xff]  }
 0x34e   :  { %8394 = vmatpush1.bf16.msra.mxu1 %v12823_v20  ;;  %v8060_v29 = vpop.f32.mrf.mxu0  ;;  %8366 = vmatprep.subr.bf16.mxu0 %v12828_v41  ;;  %v12835_v33 = vld [vmem:[#allocation5 + $0xca8] ss:$16 sps:$4 sm:$0xff]   ;;  %v12861_v20 = vld [vmem:[#allocation5 + $0xc2c] ss:$16 sps:$4 sm:$0xff]  }
 0x34f   :  { %v8101_v16 = vpop.f32.mrf.mxu1  ;;  %8395 = vmatprep.subr.bf16.mxu1 %v12831_v15  ;;  %v14084_v37 = vadd.f32 %v8099_v63, %v8059_v6  ;;  %v8061_v47 = vadd.f32 %v8060_v29, %v14078_v8  ;;  %8425 = vmatprep.mubr.bf16.mxu1 %v13933_v48  ;;  %v12841_v8 = vld [vmem:[#allocation5 + $0xc88] ss:$16 sps:$4 sm:$0xff]   ;;  %v12846_v48 = vld [vmem:[#allocation5 + $0xbac] ss:$16 sps:$4 sm:$0xff]  }
 0x350   :  { %v8062_v62 = vpop.f32.mrf.mxu0  ;;  %v12856_v41 = vld [vmem:[#allocation5 + $0xb68] ss:$16 sps:$4 sm:$0xff]   ;;  %v12870_v6 = vld [vmem:[#allocation5 + $0xb2c] ss:$16 sps:$4 sm:$0xff]  }
 0x351   :  { %v8103_v24 = vpop.f32.mrf.mxu1  ;;  %v14088_v26 = vadd.f32 %v8101_v16, %v8061_v47  ;;  %8367 = vmatpush1.bf16.msra.mxu0 %v12826_v40  ;;  %v12859_v15 = vld [vmem:[#allocation5 + $0xc28] ss:$16 sps:$4 sm:$0xff]   ;;  %v12864_v40 = vld [vmem:[#allocation5 + $0xb4c] ss:$16 sps:$4 sm:$0xff]  }
 0x352   :  { %8396 = vmatpush1.bf16.msra.mxu1 %v12829_v1  ;;  %v8063_v28 = vpop.f32.mrf.mxu0  ;;  %8368 = vmatprep.subr.bf16.mxu0 %v12834_v25  ;;  %v12867_v1 = vld [vmem:[#allocation5 + $0xc0c] ss:$16 sps:$4 sm:$0xff]   ;;  %v12862_v4 = vld [vmem:[#allocation5 + $0xb48] ss:$16 sps:$4 sm:$0xff]  }
 0x353   :  { %v8104_v21 = vpop.f32.mrf.mxu1  ;;  %8397 = vmatprep.subr.bf16.mxu1 %v12837_v23  ;;  %v12865_v63 = vld [vmem:[#allocation5 + $0xc08] ss:$16 sps:$4 sm:$0xff]   ;;  %v12873_v29 = vld [vmem:[#allocation5 + $0xdec] ss:$16 sps:$4 sm:$0xff]  }
 0x354   :  { %v12868_v16 = vld [vmem:[#allocation5 + $0xb28] ss:$16 sps:$4 sm:$0xff]   ;;  %v12876_v23 = vld [vmem:[#allocation5 + $0xb0c] ss:$16 sps:$4 sm:$0xff]  }
 0x355   :  { %8369 = vmatpush2.bf16.msra.mxu0 %v12832_v42  ;;  %v12871_v25 = vld [vmem:[#allocation5 + $0xde8] ss:$16 sps:$4 sm:$0xff]   ;;  %v12879_v47 = vld [vmem:[#allocation5 + $0xdcc] ss:$16 sps:$4 sm:$0xff]  }
 0x356   :  { %8398 = vmatpush1.bf16.msra.mxu1 %v12835_v33  ;;  %8370 = vmatprep.subr.bf16.mxu0 %v12840_v36  ;;  %v12874_v62 = vld [vmem:[#allocation5 + $0xb08] ss:$16 sps:$4 sm:$0xff]   ;;  %v12882_v42 = vld [vmem:[#allocation5 + $0xdac] ss:$16 sps:$4 sm:$0xff]  }
 0x357   :  { %8399 = vmatprep.subr.bf16.mxu1 %v12843_v12  ;;  %v12877_v24 = vld [vmem:[#allocation5 + $0xdc8] ss:$16 sps:$4 sm:$0xff]   ;;  %v12885_v33 = vld [vmem:[#allocation5 + $0xeec] ss:$16 sps:$4 sm:$0xff]  }
 0x358   :  { %v12880_v28 = vld [vmem:[#allocation5 + $0xda8] ss:$16 sps:$4 sm:$0xff]   ;;  %v12888_v36 = vld [vmem:[#allocation5 + $0xd8c] ss:$16 sps:$4 sm:$0xff]  }
 0x359   :  { %8371 = vmatpush2.bf16.msra.mxu0 %v12838_v39  ;;  %v12883_v21 = vld [vmem:[#allocation5 + $0xee8] ss:$16 sps:$4 sm:$0xff]   ;;  %v12891_v12 = vld [vmem:[#allocation5 + $0xecc] ss:$16 sps:$4 sm:$0xff]  }
 0x35a   :  { %8400 = vmatpush1.bf16.msra.mxu1 %v12841_v8  ;;  %8372 = vmatprep.subr.bf16.mxu0 %v12846_v48  ;;  %v12886_v48 = vld [vmem:[#allocation5 + $0xd88] ss:$16 sps:$4 sm:$0xff]  }
 0x35b   :  { %8401 = vmatprep.subr.bf16.mxu1 %v12849_v53  ;;  %v12889_v53 = vld [vmem:[#allocation5 + $0xec8] ss:$16 sps:$4 sm:$0xff]  }
 0x35d   :  { %8373 = vmatpush2.bf16.msra.mxu0 %v12844_v32 }
 0x35e   :  { %8402 = vmatpush1.bf16.msra.mxu1 %v12847_v49  ;;  %8374 = vmatprep.subr.bf16.mxu0 %v12852_v54  ;;  %v12894_v49 = vld [vmem:[#allocation5 + $0xd6c] ss:$16 sps:$4 sm:$0xff]  }
 0x35f   :  { %8403 = vmatprep.subr.bf16.mxu1 %v12855_v52  ;;  %v12897_v54 = vld [vmem:[#allocation5 + $0xeac] ss:$16 sps:$4 sm:$0xff]  }
 0x361   :  { %8375 = vmatpush2.bf16.msra.mxu0 %v12850_v9 }
 0x362   :  { %8404 = vmatpush1.bf16.msra.mxu1 %v12853_v56  ;;  %8376 = vmatprep.subr.bf16.mxu0 %v12858_v61  ;;  %v12900_v61 = vld [vmem:[#allocation5 + $0xd4c] ss:$16 sps:$4 sm:$0xff]  }
 0x363   :  { %8405 = vmatprep.subr.bf16.mxu1 %v12861_v20  ;;  %v12903_v20 = vld [vmem:[#allocation5 + $0xe8c] ss:$16 sps:$4 sm:$0xff]  }
 0x365   :  { %8377 = vmatpush2.bf16.msra.mxu0 %v12856_v41  ;;  %v12898_v41 = vld [vmem:[#allocation5 + $0xd48] ss:$16 sps:$4 sm:$0xff]  }
 0x366   :  { %8406 = vmatpush1.bf16.msra.mxu1 %v12859_v15  ;;  %8378 = vmatprep.subr.bf16.mxu0 %v12864_v40  ;;  %v12901_v15 = vld [vmem:[#allocation5 + $0xe88] ss:$16 sps:$4 sm:$0xff]   ;;  %v12909_v40 = vld [vmem:[#allocation5 + $0xe6c] ss:$16 sps:$4 sm:$0xff]  }
 0x367   :  { %8407 = vmatprep.subr.bf16.mxu1 %v12867_v1  ;;  %v12907_v1 = vld [vmem:[#allocation5 + $0xe68] ss:$16 sps:$4 sm:$0xff]  }
 0x369   :  { %8379 = vmatpush2.bf16.msra.mxu0 %v12862_v4  ;;  %v12912_v4 = vld [vmem:[#allocation5 + $0xd0c] ss:$16 sps:$4 sm:$0xff]  }
 0x36a   :  { %8408 = vmatpush1.bf16.msra.mxu1 %v12865_v63  ;;  %8380 = vmatprep.subr.bf16.mxu0 %v12870_v6  ;;  %v12915_v63 = vld [vmem:[#allocation5 + $0xe4c] ss:$16 sps:$4 sm:$0xff]   ;;  %v12910_v6 = vld [vmem:[#allocation5 + $0xd08] ss:$16 sps:$4 sm:$0xff]  }
 0x36b   :  { %8409 = vmatprep.subr.bf16.mxu1 %v12873_v29  ;;  %v12913_v29 = vld [vmem:[#allocation5 + $0xe48] ss:$16 sps:$4 sm:$0xff]  }
 0x36d   :  { %8381 = vmatpush2.bf16.msra.mxu0 %v12868_v16  ;;  %v12918_v16 = vld [vmem:[#allocation5 + $0xe2c] ss:$16 sps:$4 sm:$0xff]  }
 0x36e   :  { %8410 = vmatpush2.bf16.msra.mxu1 %v12871_v25  ;;  %8382 = vmatprep.subr.bf16.mxu0 %v12876_v23  ;;  %v12921_v25 = vld [vmem:[#allocation5 + $0x10ec] ss:$16 sps:$4 sm:$0xff]   ;;  %v12916_v23 = vld [vmem:[#allocation5 + $0xe28] ss:$16 sps:$4 sm:$0xff]  }
 0x36f   :  { %8411 = vmatprep.subr.bf16.mxu1 %v12879_v47  ;;  %v12919_v47 = vld [vmem:[#allocation5 + $0x10e8] ss:$16 sps:$4 sm:$0xff]  }
 0x371   :  { %8383 = vmatpush2.bf16.msra.mxu0 %v12874_v62  ;;  %v12924_v62 = vld [vmem:[#allocation5 + $0xe0c] ss:$16 sps:$4 sm:$0xff]  }
 0x372   :  { %8412 = vmatpush2.bf16.msra.mxu1 %v12877_v24  ;;  %8434 = vmatprep.subr.bf16.mxu0 %v12885_v33  ;;  %v12927_v24 = vld [vmem:[#allocation5 + $0x10cc] ss:$16 sps:$4 sm:$0xff]   ;;  %v12922_v33 = vld [vmem:[#allocation5 + $0xe08] ss:$16 sps:$4 sm:$0xff]  }
 0x373   :  { %8413 = vmatprep.subr.bf16.mxu1 %v12882_v42 }
 0x374   :  { %v8140_v39 = vpop.f32.mrf.mxu0  ;;  %8385 = vmatmul.mubr.bf16.vlgmr.msra.gmra.mxu0 %v13931_v43  ;;  %v12892_v43 = vld [vmem:[#allocation5 + $0xd68] ss:$16 sps:$4 sm:$0xff]  }
 0x375   :  { %v14092_v8 = vadd.f32 %v8140_v39, %v14084_v37  ;;  %8435 = vmatpush1.bf16.msra.mxu0 %v12883_v21  ;;  %8466 = vmatprep.mubr.bf16.mxu0 %v13935_v50  ;;  %v12895_v37 = vld [vmem:[#allocation5 + $0xea8] ss:$16 sps:$4 sm:$0xff]  }
 0x376   :  { %8414 = vmatpush2.bf16.msra.mxu1 %v12880_v28  ;;  %v8142_v32 = vpop.f32.mrf.mxu0  ;;  %8436 = vmatprep.subr.bf16.mxu0 %v12891_v12  ;;  %v12904_v50 = vld [vmem:[#allocation5 + $0xd28] ss:$16 sps:$4 sm:$0xff]   ;;  %v12933_v12 = vld [vmem:[#allocation5 + $0x10ac] ss:$16 sps:$4 sm:$0xff]  }
 0x377   :  { %8415 = vmatprep.subr.bf16.mxu1 %v12888_v36  ;;  %v14095_v52 = vadd.f32 %v8142_v32, %v14088_v26  ;;  %v12906_v26 = vld [vmem:[#allocation5 + $0xd2c] ss:$16 sps:$4 sm:$0xff]   ;;  %v12925_v28 = vld [vmem:[#allocation5 + $0x10c8] ss:$16 sps:$4 sm:$0xff]  }
 0x378   :  { %v8144_v9 = vpop.f32.mrf.mxu0  ;;  %v12930_v36 = vld [vmem:[#allocation5 + $0xfec] ss:$16 sps:$4 sm:$0xff]  }
 0x379   :  { %8437 = vmatpush1.bf16.msra.mxu0 %v12889_v53  ;;  %v12931_v53 = vld [vmem:[#allocation5 + $0x10a8] ss:$16 sps:$4 sm:$0xff]  }
 0x37a   :  { %8416 = vmatpush2.bf16.msra.mxu1 %v12886_v48  ;;  %v8145_v56 = vpop.f32.mrf.mxu0  ;;  %8438 = vmatprep.subr.bf16.mxu0 %v12897_v54  ;;  %v12928_v48 = vld [vmem:[#allocation5 + $0xfe8] ss:$16 sps:$4 sm:$0xff]  }
 0x37b   :  { %8417 = vmatprep.subr.bf16.mxu1 %v12894_v49  ;;  %v12939_v49 = vld [vmem:[#allocation5 + $0x108c] ss:$16 sps:$4 sm:$0xff]   ;;  %v12934_v54 = vld [vmem:[#allocation5 + $0xfc8] ss:$16 sps:$4 sm:$0xff]  }
 0x37c   :  { %v12937_v9 = vld [vmem:[#allocation5 + $0x1088] ss:$16 sps:$4 sm:$0xff]  }
 0x37d   :  { %8439 = vmatpush1.bf16.msra.mxu0 %v12895_v37  ;;  %v12945_v37 = vld [vmem:[#allocation5 + $0x106c] ss:$16 sps:$4 sm:$0xff]   ;;  %v12943_v56 = vld [vmem:[#allocation5 + $0x1068] ss:$16 sps:$4 sm:$0xff]  }
 0x37e   :  { %8418 = vmatpush2.bf16.msra.mxu1 %v12892_v43  ;;  %8440 = vmatprep.subr.bf16.mxu0 %v12903_v20  ;;  %v12942_v43 = vld [vmem:[#allocation5 + $0xfac] ss:$16 sps:$4 sm:$0xff]  }
 0x37f   :  { %8419 = vmatprep.subr.bf16.mxu1 %v12900_v61  ;;  %v12948_v61 = vld [vmem:[#allocation5 + $0xf8c] ss:$16 sps:$4 sm:$0xff]  }
 0x380   :  { %v12951_v20 = vld [vmem:[#allocation5 + $0x104c] ss:$16 sps:$4 sm:$0xff]  }
 0x381   :  { %8441 = vmatpush1.bf16.msra.mxu0 %v12901_v15  ;;  %v12949_v15 = vld [vmem:[#allocation5 + $0x1048] ss:$16 sps:$4 sm:$0xff]  }
 0x382   :  { %8420 = vmatpush2.bf16.msra.mxu1 %v12898_v41  ;;  %8442 = vmatprep.subr.bf16.mxu0 %v12909_v40  ;;  %v12946_v41 = vld [vmem:[#allocation5 + $0xf88] ss:$16 sps:$4 sm:$0xff]   ;;  %v12957_v40 = vld [vmem:[#allocation5 + $0x102c] ss:$16 sps:$4 sm:$0xff]  }
 0x383   :  { %8421 = vmatprep.subr.bf16.mxu1 %v12906_v26  ;;  %v12954_v26 = vld [vmem:[#allocation5 + $0xf6c] ss:$16 sps:$4 sm:$0xff]  }
 0x385   :  { %8443 = vmatpush1.bf16.msra.mxu0 %v12907_v1  ;;  %v12955_v1 = vld [vmem:[#allocation5 + $0x1028] ss:$16 sps:$4 sm:$0xff]  }
 0x386   :  { %8422 = vmatpush2.bf16.msra.mxu1 %v12904_v50  ;;  %8444 = vmatprep.subr.bf16.mxu0 %v12915_v63  ;;  %v12952_v50 = vld [vmem:[#allocation5 + $0xf68] ss:$16 sps:$4 sm:$0xff]   ;;  %v12963_v63 = vld [vmem:[#allocation5 + $0x100c] ss:$16 sps:$4 sm:$0xff]  }
 0x387   :  { %8423 = vmatprep.subr.bf16.mxu1 %v12912_v4  ;;  %v12960_v4 = vld [vmem:[#allocation5 + $0xf4c] ss:$16 sps:$4 sm:$0xff]  }
 0x389   :  { %8445 = vmatpush1.bf16.msra.mxu0 %v12913_v29  ;;  %v12961_v29 = vld [vmem:[#allocation5 + $0x1008] ss:$16 sps:$4 sm:$0xff]  }
 0x38a   :  { %8424 = vmatpush2.bf16.msra.mxu1 %v12910_v6  ;;  %8446 = vmatprep.subr.bf16.mxu0 %v12918_v16  ;;  %v12958_v6 = vld [vmem:[#allocation5 + $0xf48] ss:$16 sps:$4 sm:$0xff]   ;;  %v12966_v16 = vld [vmem:[#allocation5 + $0xf2c] ss:$16 sps:$4 sm:$0xff]  }
 0x38b   :  { %8475 = vmatprep.subr.bf16.mxu1 %v12921_v25  ;;  %v12969_v25 = vld [vmem:[#allocation5 + $0x11ec] ss:$16 sps:$4 sm:$0xff]  }
 0x38d   :  { %v14098_v42 = vpop.f32.mrf.mxu1  ;;  %8426 = vmatmul.mubr.bf16.vlgmr.msra.gmra.mxu1 %v13945_v7  ;;  %8447 = vmatpush1.bf16.msra.mxu0 %v12916_v23  ;;  %v12936_v7 = vld [vmem:[#allocation5 + $0xfcc] ss:$16 sps:$4 sm:$0xff]   ;;  %v12964_v23 = vld [vmem:[#allocation5 + $0xf28] ss:$16 sps:$4 sm:$0xff]  }
 0x38e   :  { %8476 = vmatpush1.bf16.msra.mxu1 %v12919_v47  ;;  %8448 = vmatprep.subr.bf16.mxu0 %v12924_v62  ;;  %v12967_v47 = vld [vmem:[#allocation5 + $0x11e8] ss:$16 sps:$4 sm:$0xff]   ;;  %v12972_v62 = vld [vmem:[#allocation5 + $0xf0c] ss:$16 sps:$4 sm:$0xff]  }
 0x38f   :  { %v14101_v21 = vpop.f32.mrf.mxu1  ;;  %8477 = vmatprep.subr.bf16.mxu1 %v12927_v24  ;;  %8507 = vmatprep.mubr.bf16.mxu1 %v13953_v17  ;;  %v12940_v17 = vld [vmem:[#allocation5 + $0xfa8] ss:$16 sps:$4 sm:$0xff]   ;;  %v12975_v24 = vld [vmem:[#allocation5 + $0x11cc] ss:$16 sps:$4 sm:$0xff]  }
 0x391   :  { %v8185_v39 = vpop.f32.mrf.mxu1  ;;  %8449 = vmatpush1.bf16.msra.mxu0 %v12922_v33  ;;  %v1382_v33 = vsub.s32 2, %v13941_v57 }
 0x392   :  { %8478 = vmatpush1.bf16.msra.mxu1 %v12925_v28  ;;  %8450 = vmatprep.subr.bf16.mxu0 %v12930_v36  ;;  %v1386_v28 = vsub.s32 3, %v13941_v57  ;;  %v12970_v36 = vld [vmem:[#allocation5 + $0xf08] ss:$16 sps:$4 sm:$0xff]   ;;  %v12978_v39 = vld [vmem:[#allocation5 + $0x11ac] ss:$16 sps:$4 sm:$0xff]  }
 0x393   :  { %v8186_v32 = vpop.f32.mrf.mxu1  ;;  %8479 = vmatprep.subr.bf16.mxu1 %v12933_v12  ;;  %v12973_v12 = vld [vmem:[#allocation5 + $0x11c8] ss:$16 sps:$4 sm:$0xff]  }
 0x395   :  { %8451 = vmatpush2.bf16.msra.mxu0 %v12928_v48  ;;  %v12981_v48 = vld [vmem:[#allocation5 + $0x12ec] ss:$16 sps:$4 sm:$0xff]  }
 0x396   :  { %8480 = vmatpush1.bf16.msra.mxu1 %v12931_v53  ;;  %8452 = vmatprep.subr.bf16.mxu0 %v12936_v7  ;;  %v13680_v53 = vld [vmem:[#allocation7] sm:$0xf] }
 0x397   :  { %8481 = vmatprep.subr.bf16.mxu1 %v12939_v49  ;;  %v1383_v32 = vrot.slane %v13680_v53, %v1382_v33  ;;  %v1387_v7 = vrot.slane %v13680_v53, %v1386_v28  ;;  %v12976_v49 = vld [vmem:[#allocation5 + $0x11a8] ss:$16 sps:$4 sm:$0xff]  }
 0x398   :  { %v13015_v53 = vld [vmem:[#allocation5 + $0x14e8] ss:$16 sps:$4 sm:$0xff]  }
 0x399   :  { %8453 = vmatpush2.bf16.msra.mxu0 %v12934_v54  ;;  %v12979_v54 = vld [vmem:[#allocation5 + $0x12e8] ss:$16 sps:$4 sm:$0xff]  }
 0x39a   :  { %8482 = vmatpush1.bf16.msra.mxu1 %v12937_v9  ;;  %8454 = vmatprep.subr.bf16.mxu0 %v12942_v43  ;;  %v12984_v9 = vld [vmem:[#allocation5 + $0x118c] ss:$16 sps:$4 sm:$0xff]  }
 0x39b   :  { %8483 = vmatprep.subr.bf16.mxu1 %v12945_v37  ;;  %v12987_v43 = vld [vmem:[#allocation5 + $0x12cc] ss:$16 sps:$4 sm:$0xff]   ;;  %v8182_v37 = vadd.f32 %v14098_v42, %v1383_v32  ;;  %v12988_v42 = vld [vmem:[#allocation5 + $0x1168] ss:$16 sps:$4 sm:$0xff]  }
 0x39c   :  { %v13020_v32 = vld [vmem:[#allocation5 + $0x120c] ss:$16 sps:$4 sm:$0xff]  }
 0x39d   :  { %8455 = vmatpush2.bf16.msra.mxu0 %v12940_v17 }
 0x39e   :  { %8484 = vmatpush1.bf16.msra.mxu1 %v12943_v56  ;;  %8456 = vmatprep.subr.bf16.mxu0 %v12948_v61  ;;  %v8184_v56 = vadd.f32 %v14101_v21, %v1387_v7  ;;  %v12996_v21 = vld [vmem:[#allocation5 + $0x114c] ss:$16 sps:$4 sm:$0xff]  }
 0x39f   :  { %8485 = vmatprep.subr.bf16.mxu1 %v12951_v20  ;;  %v12982_v20 = vld [vmem:[#allocation5 + $0x1188] ss:$16 sps:$4 sm:$0xff]   ;;  %v13023_v7 = vld [vmem:[#allocation5 + $0x14cc] ss:$16 sps:$4 sm:$0xff]  }
 0x3a1   :  { %8457 = vmatpush2.bf16.msra.mxu0 %v12946_v41  ;;  %v12985_v41 = vld [vmem:[#allocation5 + $0x12c8] ss:$16 sps:$4 sm:$0xff]  }
 0x3a2   :  { %8486 = vmatpush1.bf16.msra.mxu1 %v12949_v15  ;;  %8458 = vmatprep.subr.bf16.mxu0 %v12954_v26  ;;  %v12990_v26 = vld [vmem:[#allocation5 + $0x116c] ss:$16 sps:$4 sm:$0xff]  }
 0x3a3   :  { %8487 = vmatprep.subr.bf16.mxu1 %v12957_v40  ;;  %v12993_v40 = vld [vmem:[#allocation5 + $0x12ac] ss:$16 sps:$4 sm:$0xff]  }
 0x3a5   :  { %8459 = vmatpush2.bf16.msra.mxu0 %v12952_v50 }
 0x3a6   :  { %8488 = vmatpush1.bf16.msra.mxu1 %v12955_v1  ;;  %8460 = vmatprep.subr.bf16.mxu0 %v12960_v4 }
 0x3a7   :  { %8489 = vmatprep.subr.bf16.mxu1 %v12963_v63  ;;  %v12999_v63 = vld [vmem:[#allocation5 + $0x128c] ss:$16 sps:$4 sm:$0xff]  }
 0x3a9   :  { %8461 = vmatpush2.bf16.msra.mxu0 %v12958_v6  ;;  %v12994_v6 = vld [vmem:[#allocation5 + $0x1148] ss:$16 sps:$4 sm:$0xff]  }
 0x3aa   :  { %8490 = vmatpush1.bf16.msra.mxu1 %v12961_v29  ;;  %8462 = vmatprep.subr.bf16.mxu0 %v12966_v16  ;;  %v12997_v29 = vld [vmem:[#allocation5 + $0x1288] ss:$16 sps:$4 sm:$0xff]   ;;  %v13002_v16 = vld [vmem:[#allocation5 + $0x112c] ss:$16 sps:$4 sm:$0xff]  }
 0x3ab   :  { %8491 = vmatprep.subr.bf16.mxu1 %v12969_v25  ;;  %v13005_v25 = vld [vmem:[#allocation5 + $0x126c] ss:$16 sps:$4 sm:$0xff]  }
 0x3ad   :  { %8463 = vmatpush2.bf16.msra.mxu0 %v12964_v23  ;;  %v13003_v23 = vld [vmem:[#allocation5 + $0x1268] ss:$16 sps:$4 sm:$0xff]  }
 0x3ae   :  { %8492 = vmatpush2.bf16.msra.mxu1 %v12967_v47  ;;  %8464 = vmatprep.subr.bf16.mxu0 %v12972_v62  ;;  %v13008_v47 = vld [vmem:[#allocation5 + $0x110c] ss:$16 sps:$4 sm:$0xff]  }
 0x3af   :  { %8493 = vmatprep.subr.bf16.mxu1 %v12975_v24  ;;  %v13011_v62 = vld [vmem:[#allocation5 + $0x124c] ss:$16 sps:$4 sm:$0xff]   ;;  %v13006_v24 = vld [vmem:[#allocation5 + $0x1108] ss:$16 sps:$4 sm:$0xff]  }
 0x3b1   :  { %8465 = vmatpush2.bf16.msra.mxu0 %v12970_v36  ;;  %v13009_v36 = vld [vmem:[#allocation5 + $0x1248] ss:$16 sps:$4 sm:$0xff]  }
 0x3b2   :  { %8494 = vmatpush2.bf16.msra.mxu1 %v12973_v12  ;;  %8516 = vmatprep.subr.bf16.mxu0 %v12981_v48  ;;  %v13014_v12 = vld [vmem:[#allocation5 + $0x122c] ss:$16 sps:$4 sm:$0xff]   ;;  %v13012_v48 = vld [vmem:[#allocation5 + $0x1228] ss:$16 sps:$4 sm:$0xff]  }
 0x3b3   :  { %8495 = vmatprep.subr.bf16.mxu1 %v12978_v39  ;;  %v13017_v39 = vld [vmem:[#allocation5 + $0x14ec] ss:$16 sps:$4 sm:$0xff]  }
 0x3b4   :  { %v8222_v17 = vpop.f32.mrf.mxu0  ;;  %8467 = vmatmul.mubr.bf16.vlgmr.msra.gmra.mxu0 %v13947_v10  ;;  %v12991_v10 = vld [vmem:[#allocation5 + $0x12a8] ss:$16 sps:$4 sm:$0xff]  }
 0x3b5   :  { %v8223_v61 = vadd.f32 %v8222_v17, %v8182_v37  ;;  %8517 = vmatpush1.bf16.msra.mxu0 %v12979_v54  ;;  %8548 = vmatprep.mubr.bf16.mxu0 %v13955_v18  ;;  %v13000_v18 = vld [vmem:[#allocation5 + $0x1128] ss:$16 sps:$4 sm:$0xff]   ;;  %v13026_v17 = vld [vmem:[#allocation5 + $0x13ec] ss:$16 sps:$4 sm:$0xff]  }
 0x3b6   :  { %8496 = vmatpush2.bf16.msra.mxu1 %v12976_v49  ;;  %v8224_v15 = vpop.f32.mrf.mxu0  ;;  %8518 = vmatprep.subr.bf16.mxu0 %v12987_v43  ;;  %v13021_v43 = vld [vmem:[#allocation5 + $0x14c8] ss:$16 sps:$4 sm:$0xff]  }
 0x3b7   :  { %8497 = vmatprep.subr.bf16.mxu1 %v12984_v9  ;;  %v8225_v50 = vadd.f32 %v8224_v15, %v8184_v56  ;;  %v13018_v9 = vld [vmem:[#allocation5 + $0x1208] ss:$16 sps:$4 sm:$0xff]   ;;  %v13029_v56 = vld [vmem:[#allocation5 + $0x14ac] ss:$16 sps:$4 sm:$0xff]  }
 0x3b8   :  { %v8226_v1 = vpop.f32.mrf.mxu0  ;;  %v13024_v15 = vld [vmem:[#allocation5 + $0x13e8] ss:$16 sps:$4 sm:$0xff]  }
 0x3b9   :  { %8519 = vmatpush1.bf16.msra.mxu0 %v12985_v41  ;;  %v13030_v1 = vld [vmem:[#allocation5 + $0x13c8] ss:$16 sps:$4 sm:$0xff]  }
 0x3ba   :  { %8498 = vmatpush2.bf16.msra.mxu1 %v12982_v20  ;;  %v8227_v4 = vpop.f32.mrf.mxu0  ;;  %8520 = vmatprep.subr.bf16.mxu0 %v12993_v40  ;;  %v13035_v40 = vld [vmem:[#allocation5 + $0x148c] ss:$16 sps:$4 sm:$0xff]  }
 0x3bb   :  { %8499 = vmatprep.subr.bf16.mxu1 %v12990_v26  ;;  %v13032_v26 = vld [vmem:[#allocation5 + $0x13cc] ss:$16 sps:$4 sm:$0xff]   ;;  %v13039_v4 = vld [vmem:[#allocation5 + $0x1468] ss:$16 sps:$4 sm:$0xff]  }
 0x3bd   :  { %8521 = vmatpush1.bf16.msra.mxu0 %v12991_v10  ;;  %v13041_v10 = vld [vmem:[#allocation5 + $0x146c] ss:$16 sps:$4 sm:$0xff]  }
 0x3be   :  { %8500 = vmatpush2.bf16.msra.mxu1 %v12988_v42  ;;  %8522 = vmatprep.subr.bf16.mxu0 %v12999_v63  ;;  %v13033_v42 = vld [vmem:[#allocation5 + $0x1488] ss:$16 sps:$4 sm:$0xff]   ;;  %v13047_v63 = vld [vmem:[#allocation5 + $0x144c] ss:$16 sps:$4 sm:$0xff]  }
 0x3bf   :  { %8501 = vmatprep.subr.bf16.mxu1 %v12996_v21  ;;  %v13044_v21 = vld [vmem:[#allocation5 + $0x138c] ss:$16 sps:$4 sm:$0xff]  }
 0x3c1   :  { %8523 = vmatpush1.bf16.msra.mxu0 %v12997_v29  ;;  %v13045_v29 = vld [vmem:[#allocation5 + $0x1448] ss:$16 sps:$4 sm:$0xff]  }
 0x3c2   :  { %8502 = vmatpush2.bf16.msra.mxu1 %v12994_v6  ;;  %8524 = vmatprep.subr.bf16.mxu0 %v13005_v25  ;;  %v13042_v6 = vld [vmem:[#allocation5 + $0x1388] ss:$16 sps:$4 sm:$0xff]   ;;  %v13053_v25 = vld [vmem:[#allocation5 + $0x142c] ss:$16 sps:$4 sm:$0xff]  }
 0x3c3   :  { %8503 = vmatprep.subr.bf16.mxu1 %v13002_v16  ;;  %v13050_v16 = vld [vmem:[#allocation5 + $0x136c] ss:$16 sps:$4 sm:$0xff]  }
 0x3c5   :  { %8525 = vmatpush1.bf16.msra.mxu0 %v13003_v23  ;;  %v13051_v23 = vld [vmem:[#allocation5 + $0x1428] ss:$16 sps:$4 sm:$0xff]  }
 0x3c6   :  { %8504 = vmatpush2.bf16.msra.mxu1 %v13000_v18  ;;  %8526 = vmatprep.subr.bf16.mxu0 %v13011_v62  ;;  %v13048_v18 = vld [vmem:[#allocation5 + $0x1368] ss:$16 sps:$4 sm:$0xff]   ;;  %v13059_v62 = vld [vmem:[#allocation5 + $0x140c] ss:$16 sps:$4 sm:$0xff]  }
 0x3c7   :  { %8505 = vmatprep.subr.bf16.mxu1 %v13008_v47  ;;  %v13056_v47 = vld [vmem:[#allocation5 + $0x134c] ss:$16 sps:$4 sm:$0xff]  }
 0x3c9   :  { %8527 = vmatpush1.bf16.msra.mxu0 %v13009_v36  ;;  %v13057_v36 = vld [vmem:[#allocation5 + $0x1408] ss:$16 sps:$4 sm:$0xff]  }
 0x3ca   :  { %8506 = vmatpush2.bf16.msra.mxu1 %v13006_v24  ;;  %8528 = vmatprep.subr.bf16.mxu0 %v13014_v12  ;;  %v13054_v24 = vld [vmem:[#allocation5 + $0x1348] ss:$16 sps:$4 sm:$0xff]   ;;  %v13062_v12 = vld [vmem:[#allocation5 + $0x132c] ss:$16 sps:$4 sm:$0xff]  }
 0x3cb   :  { %8557 = vmatprep.subr.bf16.mxu1 %v13017_v39  ;;  %v13065_v39 = vld [vmem:[#allocation5 + $0x15ec] ss:$16 sps:$4 sm:$0xff]  }
 0x3cd   :  { %v8263_v49 = vpop.f32.mrf.mxu1  ;;  %8508 = vmatmul.mubr.bf16.vlgmr.msra.gmra.mxu1 %v13965_v2  ;;  %8529 = vmatpush1.bf16.msra.mxu0 %v13012_v48  ;;  %v13027_v2 = vld [vmem:[#allocation5 + $0x14a8] ss:$16 sps:$4 sm:$0xff]  }
 0x3ce   :  { %v14115_v54 = vadd.f32 %v8263_v49, %v8223_v61  ;;  %8558 = vmatpush1.bf16.msra.mxu1 %v13015_v53  ;;  %8530 = vmatprep.subr.bf16.mxu0 %v13020_v32  ;;  %v13060_v48 = vld [vmem:[#allocation5 + $0x1328] ss:$16 sps:$4 sm:$0xff]   ;;  %v13068_v32 = vld [vmem:[#allocation5 + $0x130c] ss:$16 sps:$4 sm:$0xff]  }
 0x3cf   :  { %v8265_v37 = vpop.f32.mrf.mxu1  ;;  %8559 = vmatprep.subr.bf16.mxu1 %v13023_v7  ;;  %8589 = vmatprep.mubr.bf16.mxu1 %v13969_v19  ;;  %v13036_v19 = vld [vmem:[#allocation5 + $0x13a8] ss:$16 sps:$4 sm:$0xff]   ;;  %v13071_v7 = vld [vmem:[#allocation5 + $0x15cc] ss:$16 sps:$4 sm:$0xff]  }
 0x3d0   :  { %v14117_v20 = vadd.f32 %v8265_v37, %v8225_v50  ;;  %v13038_v50 = vld [vmem:[#allocation5 + $0x13ac] ss:$16 sps:$4 sm:$0xff]   ;;  %v13063_v53 = vld [vmem:[#allocation5 + $0x15e8] ss:$16 sps:$4 sm:$0xff]  }
 0x3d1   :  { %v8267_v41 = vpop.f32.mrf.mxu1  ;;  %8531 = vmatpush1.bf16.msra.mxu0 %v13018_v9  ;;  %v13066_v49 = vld [vmem:[#allocation5 + $0x1308] ss:$16 sps:$4 sm:$0xff]   ;;  %v13077_v37 = vld [vmem:[#allocation5 + $0x16ec] ss:$16 sps:$4 sm:$0xff]  }
 0x3d2   :  { %8560 = vmatpush1.bf16.msra.mxu1 %v13021_v43  ;;  %8532 = vmatprep.subr.bf16.mxu0 %v13026_v17  ;;  %v13069_v9 = vld [vmem:[#allocation5 + $0x15c8] ss:$16 sps:$4 sm:$0xff]   ;;  %v13074_v43 = vld [vmem:[#allocation5 + $0x15ac] ss:$16 sps:$4 sm:$0xff]  }
 0x3d3   :  { %v8268_v61 = vpop.f32.mrf.mxu1  ;;  %8561 = vmatprep.subr.bf16.mxu1 %v13029_v56  ;;  %v13072_v17 = vld [vmem:[#allocation5 + $0x15a8] ss:$16 sps:$4 sm:$0xff]   ;;  %v13080_v41 = vld [vmem:[#allocation5 + $0x158c] ss:$16 sps:$4 sm:$0xff]  }
 0x3d4   :  { %v13075_v56 = vld [vmem:[#allocation5 + $0x16e8] ss:$16 sps:$4 sm:$0xff]  }
 0x3d5   :  { %8533 = vmatpush2.bf16.msra.mxu0 %v13024_v15  ;;  %v13083_v15 = vld [vmem:[#allocation5 + $0x16cc] ss:$16 sps:$4 sm:$0xff]  }
 0x3d6   :  { %8562 = vmatpush1.bf16.msra.mxu1 %v13027_v2  ;;  %8534 = vmatprep.subr.bf16.mxu0 %v13032_v26  ;;  %v13078_v26 = vld [vmem:[#allocation5 + $0x1588] ss:$16 sps:$4 sm:$0xff]  }
 0x3d7   :  { %8563 = vmatprep.subr.bf16.mxu1 %v13035_v40  ;;  %v13081_v40 = vld [vmem:[#allocation5 + $0x16c8] ss:$16 sps:$4 sm:$0xff]  }
 0x3d9   :  { %8535 = vmatpush2.bf16.msra.mxu0 %v13030_v1 }
 0x3da   :  { %8564 = vmatpush1.bf16.msra.mxu1 %v13033_v42  ;;  %8536 = vmatprep.subr.bf16.mxu0 %v13038_v50  ;;  %v13086_v42 = vld [vmem:[#allocation5 + $0x156c] ss:$16 sps:$4 sm:$0xff]  }
 0x3db   :  { %8565 = vmatprep.subr.bf16.mxu1 %v13041_v10  ;;  %v13089_v50 = vld [vmem:[#allocation5 + $0x16ac] ss:$16 sps:$4 sm:$0xff]  }
 0x3dd   :  { %8537 = vmatpush2.bf16.msra.mxu0 %v13036_v19 }
 0x3de   :  { %8566 = vmatpush1.bf16.msra.mxu1 %v13039_v4  ;;  %8538 = vmatprep.subr.bf16.mxu0 %v13044_v21  ;;  %v13084_v4 = vld [vmem:[#allocation5 + $0x1568] ss:$16 sps:$4 sm:$0xff]  }
 0x3df   :  { %8567 = vmatprep.subr.bf16.mxu1 %v13047_v63  ;;  %v13095_v63 = vld [vmem:[#allocation5 + $0x168c] ss:$16 sps:$4 sm:$0xff]  }
 0x3e1   :  { %8539 = vmatpush2.bf16.msra.mxu0 %v13042_v6  ;;  %v13090_v6 = vld [vmem:[#allocation5 + $0x1548] ss:$16 sps:$4 sm:$0xff]  }
 0x3e2   :  { %8568 = vmatpush1.bf16.msra.mxu1 %v13045_v29  ;;  %8540 = vmatprep.subr.bf16.mxu0 %v13050_v16  ;;  %v13093_v29 = vld [vmem:[#allocation5 + $0x1688] ss:$16 sps:$4 sm:$0xff]   ;;  %v13098_v16 = vld [vmem:[#allocation5 + $0x152c] ss:$16 sps:$4 sm:$0xff]  }
 0x3e3   :  { %8569 = vmatprep.subr.bf16.mxu1 %v13053_v25  ;;  %v13099_v25 = vld [vmem:[#allocation5 + $0x1668] ss:$16 sps:$4 sm:$0xff]  }
 0x3e5   :  { %8541 = vmatpush2.bf16.msra.mxu0 %v13048_v18  ;;  %v13104_v18 = vld [vmem:[#allocation5 + $0x150c] ss:$16 sps:$4 sm:$0xff]  }
 0x3e6   :  { %8570 = vmatpush1.bf16.msra.mxu1 %v13051_v23  ;;  %8542 = vmatprep.subr.bf16.mxu0 %v13056_v47  ;;  %v13107_v23 = vld [vmem:[#allocation5 + $0x164c] ss:$16 sps:$4 sm:$0xff]   ;;  %v13102_v47 = vld [vmem:[#allocation5 + $0x1508] ss:$16 sps:$4 sm:$0xff]  }
 0x3e7   :  { %8571 = vmatprep.subr.bf16.mxu1 %v13059_v62  ;;  %v13105_v62 = vld [vmem:[#allocation5 + $0x1648] ss:$16 sps:$4 sm:$0xff]  }
 0x3e9   :  { %8543 = vmatpush2.bf16.msra.mxu0 %v13054_v24  ;;  %v13110_v24 = vld [vmem:[#allocation5 + $0x162c] ss:$16 sps:$4 sm:$0xff]  }
 0x3ea   :  { %8572 = vmatpush1.bf16.msra.mxu1 %v13057_v36  ;;  %8544 = vmatprep.subr.bf16.mxu0 %v13062_v12  ;;  %v13113_v36 = vld [vmem:[#allocation5 + $0x18ec] ss:$16 sps:$4 sm:$0xff]   ;;  %v13108_v12 = vld [vmem:[#allocation5 + $0x1628] ss:$16 sps:$4 sm:$0xff]  }
 0x3eb   :  { %8573 = vmatprep.subr.bf16.mxu1 %v13065_v39  ;;  %v13111_v39 = vld [vmem:[#allocation5 + $0x18e8] ss:$16 sps:$4 sm:$0xff]  }
 0x3ed   :  { %8545 = vmatpush2.bf16.msra.mxu0 %v13060_v48  ;;  %v13116_v48 = vld [vmem:[#allocation5 + $0x160c] ss:$16 sps:$4 sm:$0xff]  }
 0x3ee   :  { %8574 = vmatpush2.bf16.msra.mxu1 %v13063_v53  ;;  %8546 = vmatprep.subr.bf16.mxu0 %v13068_v32  ;;  %v13119_v53 = vld [vmem:[#allocation5 + $0x18cc] ss:$16 sps:$4 sm:$0xff]  }
 0x3ef   :  { %8575 = vmatprep.subr.bf16.mxu1 %v13071_v7 }
 0x3f1   :  { %8547 = vmatpush2.bf16.msra.mxu0 %v13066_v49  ;;  %v13114_v49 = vld [vmem:[#allocation5 + $0x1608] ss:$16 sps:$4 sm:$0xff]  }
 0x3f2   :  { %8576 = vmatpush2.bf16.msra.mxu1 %v13069_v9  ;;  %8598 = vmatprep.subr.bf16.mxu0 %v13077_v37  ;;  %v13117_v9 = vld [vmem:[#allocation5 + $0x18c8] ss:$16 sps:$4 sm:$0xff]   ;;  %v13122_v37 = vld [vmem:[#allocation5 + $0x17ec] ss:$16 sps:$4 sm:$0xff]  }
 0x3f3   :  { %8577 = vmatprep.subr.bf16.mxu1 %v13074_v43 }
 0x3f4   :  { %v8304_v2 = vpop.f32.mrf.mxu0  ;;  %8549 = vmatmul.mubr.bf16.vlgmr.msra.gmra.mxu0 %v13967_v3  ;;  %v13087_v3 = vld [vmem:[#allocation5 + $0x16a8] ss:$16 sps:$4 sm:$0xff]  }
 0x3f5   :  { %v8305_v61 = vadd.f32 %v8304_v2, %v14115_v54  ;;  %8599 = vmatpush1.bf16.msra.mxu0 %v13075_v56  ;;  %8630 = vmatprep.mubr.bf16.mxu0 %v13971_v22  ;;  %v13092_v54 = vld [vmem:[#allocation5 + $0x154c] ss:$16 sps:$4 sm:$0xff]   ;;  %v13096_v22 = vld [vmem:[#allocation5 + $0x1528] ss:$16 sps:$4 sm:$0xff]  }
 0x3f6   :  { %8578 = vmatpush2.bf16.msra.mxu1 %v13072_v17  ;;  %v8306_v1 = vpop.f32.mrf.mxu0  ;;  %8600 = vmatprep.subr.bf16.mxu0 %v13083_v15  ;;  %v13125_v17 = vld [vmem:[#allocation5 + $0x18ac] ss:$16 sps:$4 sm:$0xff]   ;;  %v13120_v15 = vld [vmem:[#allocation5 + $0x17e8] ss:$16 sps:$4 sm:$0xff]  }
 0x3f7   :  { %8579 = vmatprep.subr.bf16.mxu1 %v13080_v41  ;;  %v8307_v10 = vadd.f32 %v8306_v1, %v14117_v20  ;;  %v13101_v20 = vld [vmem:[#allocation5 + $0x166c] ss:$16 sps:$4 sm:$0xff]   ;;  %v13129_v1 = vld [vmem:[#allocation5 + $0x1888] ss:$16 sps:$4 sm:$0xff]  }
 0x3f8   :  { %v8308_v19 = vpop.f32.mrf.mxu0 }
 0x3f9   :  { %8601 = vmatpush1.bf16.msra.mxu0 %v13081_v40  ;;  %v13126_v40 = vld [vmem:[#allocation5 + $0x17c8] ss:$16 sps:$4 sm:$0xff]   ;;  %v13140_v19 = vld [vmem:[#allocation5 + $0x178c] ss:$16 sps:$4 sm:$0xff]  }
 0x3fa   :  { %8580 = vmatpush2.bf16.msra.mxu1 %v13078_v26  ;;  %v8309_v21 = vpop.f32.mrf.mxu0  ;;  %8602 = vmatprep.subr.bf16.mxu0 %v13089_v50  ;;  %v13131_v26 = vld [vmem:[#allocation5 + $0x188c] ss:$16 sps:$4 sm:$0xff]  }
 0x3fb   :  { %8581 = vmatprep.subr.bf16.mxu1 %v13086_v42  ;;  %v13134_v42 = vld [vmem:[#allocation5 + $0x17ac] ss:$16 sps:$4 sm:$0xff]   ;;  %v13141_v21 = vld [vmem:[#allocation5 + $0x1848] ss:$16 sps:$4 sm:$0xff]  }
 0x3fc   :  { %v13137_v50 = vld [vmem:[#allocation5 + $0x186c] ss:$16 sps:$4 sm:$0xff]  }
 0x3fd   :  { %8603 = vmatpush1.bf16.msra.mxu0 %v13087_v3  ;;  %v13138_v3 = vld [vmem:[#allocation5 + $0x1788] ss:$16 sps:$4 sm:$0xff]  }
 0x3fe   :  { %8582 = vmatpush2.bf16.msra.mxu1 %v13084_v4  ;;  %8604 = vmatprep.subr.bf16.mxu0 %v13095_v63  ;;  %v13143_v4 = vld [vmem:[#allocation5 + $0x184c] ss:$16 sps:$4 sm:$0xff]  }
 0x3ff   :  { %8583 = vmatprep.subr.bf16.mxu1 %v13092_v54  ;;  %v13146_v54 = vld [vmem:[#allocation5 + $0x176c] ss:$16 sps:$4 sm:$0xff]  }
 0x400   :  { %v13149_v63 = vld [vmem:[#allocation5 + $0x182c] ss:$16 sps:$4 sm:$0xff]  }
 0x401   :  { %8605 = vmatpush1.bf16.msra.mxu0 %v13093_v29  ;;  %v13147_v29 = vld [vmem:[#allocation5 + $0x1828] ss:$16 sps:$4 sm:$0xff]  }
 0x402   :  { %8584 = vmatpush2.bf16.msra.mxu1 %v13090_v6  ;;  %8606 = vmatprep.subr.bf16.mxu0 %v13101_v20  ;;  %v13144_v6 = vld [vmem:[#allocation5 + $0x1768] ss:$16 sps:$4 sm:$0xff]   ;;  %v13155_v20 = vld [vmem:[#allocation5 + $0x180c] ss:$16 sps:$4 sm:$0xff]  }
 0x403   :  { %8585 = vmatprep.subr.bf16.mxu1 %v13098_v16  ;;  %v13152_v16 = vld [vmem:[#allocation5 + $0x174c] ss:$16 sps:$4 sm:$0xff]  }
 0x405   :  { %8607 = vmatpush1.bf16.msra.mxu0 %v13099_v25  ;;  %v13153_v25 = vld [vmem:[#allocation5 + $0x1808] ss:$16 sps:$4 sm:$0xff]  }
 0x406   :  { %8586 = vmatpush2.bf16.msra.mxu1 %v13096_v22  ;;  %8608 = vmatprep.subr.bf16.mxu0 %v13107_v23  ;;  %v13150_v22 = vld [vmem:[#allocation5 + $0x1748] ss:$16 sps:$4 sm:$0xff]   ;;  %v13161_v23 = vld [vmem:[#allocation5 + $0x19ec] ss:$16 sps:$4 sm:$0xff]  }
 0x407   :  { %8587 = vmatprep.subr.bf16.mxu1 %v13104_v18  ;;  %v13158_v18 = vld [vmem:[#allocation5 + $0x172c] ss:$16 sps:$4 sm:$0xff]  }
 0x409   :  { %8609 = vmatpush1.bf16.msra.mxu0 %v13105_v62  ;;  %v13159_v62 = vld [vmem:[#allocation5 + $0x19e8] ss:$16 sps:$4 sm:$0xff]  }
 0x40a   :  { %8588 = vmatpush2.bf16.msra.mxu1 %v13102_v47  ;;  %8610 = vmatprep.subr.bf16.mxu0 %v13110_v24  ;;  %v13156_v47 = vld [vmem:[#allocation5 + $0x1728] ss:$16 sps:$4 sm:$0xff]   ;;  %v13164_v24 = vld [vmem:[#allocation5 + $0x170c] ss:$16 sps:$4 sm:$0xff]  }
 0x40b   :  { %8639 = vmatprep.subr.bf16.mxu1 %v13113_v36  ;;  %v13167_v36 = vld [vmem:[#allocation5 + $0x19cc] ss:$16 sps:$4 sm:$0xff]  }
 0x40d   :  { %v8345_v32 = vpop.f32.mrf.mxu1  ;;  %8590 = vmatmul.mubr.bf16.vlgmr.msra.gmra.mxu1 %v13983_v13  ;;  %8611 = vmatpush1.bf16.msra.mxu0 %v13108_v12  ;;  %v13123_v13 = vld [vmem:[#allocation5 + $0x18a8] ss:$16 sps:$4 sm:$0xff]  }
 0x40e   :  { %v14125_v7 = vadd.f32 %v8345_v32, %v8305_v61  ;;  %8640 = vmatpush1.bf16.msra.mxu1 %v13111_v39  ;;  %8612 = vmatprep.subr.bf16.mxu0 %v13116_v48  ;;  %v13128_v61 = vld [vmem:[#allocation5 + $0x17cc] ss:$16 sps:$4 sm:$0xff]   ;;  %v13162_v12 = vld [vmem:[#allocation5 + $0x1708] ss:$16 sps:$4 sm:$0xff]  }
 0x40f   :  { %v8347_v43 = vpop.f32.mrf.mxu1  ;;  %8641 = vmatprep.subr.bf16.mxu1 %v13119_v53  ;;  %8671 = vmatprep.mubr.bf16.mxu1 %v13987_v30  ;;  %v13132_v30 = vld [vmem:[#allocation5 + $0x17a8] ss:$16 sps:$4 sm:$0xff]   ;;  %v13170_v48 = vld [vmem:[#allocation5 + $0x19ac] ss:$16 sps:$4 sm:$0xff]  }
 0x410   :  { %v14127_v56 = vadd.f32 %v8347_v43, %v8307_v10  ;;  %v13135_v10 = vld [vmem:[#allocation5 + $0x1868] ss:$16 sps:$4 sm:$0xff]   ;;  %v13173_v53 = vld [vmem:[#allocation5 + $0x1aec] ss:$16 sps:$4 sm:$0xff]  }
 0x411   :  { %v8349_v41 = vpop.f32.mrf.mxu1  ;;  %8613 = vmatpush1.bf16.msra.mxu0 %v13114_v49  ;;  %v13165_v39 = vld [vmem:[#allocation5 + $0x19c8] ss:$16 sps:$4 sm:$0xff]   ;;  %v13179_v43 = vld [vmem:[#allocation5 + $0x1acc] ss:$16 sps:$4 sm:$0xff]  }
 0x412   :  { %8642 = vmatpush1.bf16.msra.mxu1 %v13117_v9  ;;  %8614 = vmatprep.subr.bf16.mxu0 %v13122_v37  ;;  %v13168_v32 = vld [vmem:[#allocation5 + $0x19a8] ss:$16 sps:$4 sm:$0xff]   ;;  %v13176_v9 = vld [vmem:[#allocation5 + $0x198c] ss:$16 sps:$4 sm:$0xff]  }
 0x413   :  { %v8350_v2 = vpop.f32.mrf.mxu1  ;;  %8643 = vmatprep.subr.bf16.mxu1 %v13125_v17  ;;  %v13171_v49 = vld [vmem:[#allocation5 + $0x1ae8] ss:$16 sps:$4 sm:$0xff]  }
 0x414   :  { %v13174_v41 = vld [vmem:[#allocation5 + $0x1988] ss:$16 sps:$4 sm:$0xff]   ;;  %v13182_v2 = vld [vmem:[#allocation5 + $0x196c] ss:$16 sps:$4 sm:$0xff]  }
 0x415   :  { %8615 = vmatpush2.bf16.msra.mxu0 %v13120_v15  ;;  %v13177_v15 = vld [vmem:[#allocation5 + $0x1ac8] ss:$16 sps:$4 sm:$0xff]  }
 0x416   :  { %8644 = vmatpush1.bf16.msra.mxu1 %v13123_v13  ;;  %8616 = vmatprep.subr.bf16.mxu0 %v13128_v61  ;;  %v13185_v61 = vld [vmem:[#allocation5 + $0x1aac] ss:$16 sps:$4 sm:$0xff]  }
 0x417   :  { %8645 = vmatprep.subr.bf16.mxu1 %v13131_v26 }
 0x419   :  { %8617 = vmatpush2.bf16.msra.mxu0 %v13126_v40 }
 0x41a   :  { %8646 = vmatpush1.bf16.msra.mxu1 %v13129_v1  ;;  %8618 = vmatprep.subr.bf16.mxu0 %v13134_v42  ;;  %v13180_v1 = vld [vmem:[#allocation5 + $0x1968] ss:$16 sps:$4 sm:$0xff]  }
 0x41b   :  { %8647 = vmatprep.subr.bf16.mxu1 %v13137_v50  ;;  %v13191_v50 = vld [vmem:[#allocation5 + $0x1a8c] ss:$16 sps:$4 sm:$0xff]  }
 0x41d   :  { %8619 = vmatpush2.bf16.msra.mxu0 %v13132_v30  ;;  %v13186_v30 = vld [vmem:[#allocation5 + $0x1948] ss:$16 sps:$4 sm:$0xff]  }
 0x41e   :  { %8648 = vmatpush1.bf16.msra.mxu1 %v13135_v10  ;;  %8620 = vmatprep.subr.bf16.mxu0 %v13140_v19  ;;  %v13189_v10 = vld [vmem:[#allocation5 + $0x1a88] ss:$16 sps:$4 sm:$0xff]   ;;  %v13194_v19 = vld [vmem:[#allocation5 + $0x192c] ss:$16 sps:$4 sm:$0xff]  }
 0x41f   :  { %8649 = vmatprep.subr.bf16.mxu1 %v13143_v4  ;;  %v13195_v4 = vld [vmem:[#allocation5 + $0x1a68] ss:$16 sps:$4 sm:$0xff]  }
 0x421   :  { %8621 = vmatpush2.bf16.msra.mxu0 %v13138_v3  ;;  %v13200_v3 = vld [vmem:[#allocation5 + $0x190c] ss:$16 sps:$4 sm:$0xff]  }
 0x422   :  { %8650 = vmatpush1.bf16.msra.mxu1 %v13141_v21  ;;  %8622 = vmatprep.subr.bf16.mxu0 %v13146_v54  ;;  %v13203_v21 = vld [vmem:[#allocation5 + $0x1a4c] ss:$16 sps:$4 sm:$0xff]   ;;  %v13198_v54 = vld [vmem:[#allocation5 + $0x1908] ss:$16 sps:$4 sm:$0xff]  }
 0x423   :  { %8651 = vmatprep.subr.bf16.mxu1 %v13149_v63  ;;  %v13201_v63 = vld [vmem:[#allocation5 + $0x1a48] ss:$16 sps:$4 sm:$0xff]  }
 0x425   :  { %8623 = vmatpush2.bf16.msra.mxu0 %v13144_v6  ;;  %v13206_v6 = vld [vmem:[#allocation5 + $0x1a2c] ss:$16 sps:$4 sm:$0xff]  }
 0x426   :  { %8652 = vmatpush1.bf16.msra.mxu1 %v13147_v29  ;;  %8624 = vmatprep.subr.bf16.mxu0 %v13152_v16  ;;  %v13209_v29 = vld [vmem:[#allocation5 + $0x1cec] ss:$16 sps:$4 sm:$0xff]   ;;  %v13204_v16 = vld [vmem:[#allocation5 + $0x1a28] ss:$16 sps:$4 sm:$0xff]  }
 0x427   :  { %8653 = vmatprep.subr.bf16.mxu1 %v13155_v20  ;;  %v13207_v20 = vld [vmem:[#allocation5 + $0x1ce8] ss:$16 sps:$4 sm:$0xff]  }
 0x429   :  { %8625 = vmatpush2.bf16.msra.mxu0 %v13150_v22  ;;  %v13212_v22 = vld [vmem:[#allocation5 + $0x1a0c] ss:$16 sps:$4 sm:$0xff]  }
 0x42a   :  { %8654 = vmatpush1.bf16.msra.mxu1 %v13153_v25  ;;  %8626 = vmatprep.subr.bf16.mxu0 %v13158_v18  ;;  %v13215_v25 = vld [vmem:[#allocation5 + $0x1ccc] ss:$16 sps:$4 sm:$0xff]  }
 0x42b   :  { %8655 = vmatprep.subr.bf16.mxu1 %v13161_v23 }
 0x42d   :  { %8627 = vmatpush2.bf16.msra.mxu0 %v13156_v47  ;;  %v13210_v47 = vld [vmem:[#allocation5 + $0x1a08] ss:$16 sps:$4 sm:$0xff]  }
 0x42e   :  { %8656 = vmatpush2.bf16.msra.mxu1 %v13159_v62  ;;  %8628 = vmatprep.subr.bf16.mxu0 %v13164_v24  ;;  %v13213_v62 = vld [vmem:[#allocation5 + $0x1cc8] ss:$16 sps:$4 sm:$0xff]  }
 0x42f   :  { %8657 = vmatprep.subr.bf16.mxu1 %v13167_v36  ;;  %v13218_v36 = vld [vmem:[#allocation5 + $0x1bec] ss:$16 sps:$4 sm:$0xff]  }
 0x431   :  { %8629 = vmatpush2.bf16.msra.mxu0 %v13162_v12  ;;  %v13221_v12 = vld [vmem:[#allocation5 + $0x1cac] ss:$16 sps:$4 sm:$0xff]  }
 0x432   :  { %8658 = vmatpush2.bf16.msra.mxu1 %v13165_v39  ;;  %8680 = vmatprep.subr.bf16.mxu0 %v13173_v53  ;;  %v13216_v53 = vld [vmem:[#allocation5 + $0x1be8] ss:$16 sps:$4 sm:$0xff]  }
 0x433   :  { %8659 = vmatprep.subr.bf16.mxu1 %v13170_v48 }
 0x434   :  { %v8386_v37 = vpop.f32.mrf.mxu0  ;;  %8631 = vmatmul.mubr.bf16.vlgmr.msra.gmra.mxu0 %v13985_v14  ;;  %v13183_v14 = vld [vmem:[#allocation5 + $0x1aa8] ss:$16 sps:$4 sm:$0xff]  }
 0x435   :  { %v8387_v17 = vadd.f32 %v8386_v37, %v14125_v7  ;;  %8681 = vmatpush1.bf16.msra.mxu0 %v13171_v49  ;;  %8712 = vmatprep.mubr.bf16.mxu0 %v13989_v34  ;;  %v13188_v7 = vld [vmem:[#allocation5 + $0x194c] ss:$16 sps:$4 sm:$0xff]   ;;  %v13192_v34 = vld [vmem:[#allocation5 + $0x1928] ss:$16 sps:$4 sm:$0xff]  }
 0x436   :  { %8660 = vmatpush2.bf16.msra.mxu1 %v13168_v32  ;;  %v8388_v13 = vpop.f32.mrf.mxu0  ;;  %8682 = vmatprep.subr.bf16.mxu0 %v13179_v43  ;;  %v13224_v49 = vld [vmem:[#allocation5 + $0x1bcc] ss:$16 sps:$4 sm:$0xff]   ;;  %v13222_v43 = vld [vmem:[#allocation5 + $0x1bc8] ss:$16 sps:$4 sm:$0xff]  }
 0x437   :  { %8661 = vmatprep.subr.bf16.mxu1 %v13176_v9  ;;  %v8389_v26 = vadd.f32 %v8388_v13, %v14127_v56  ;;  %v13197_v56 = vld [vmem:[#allocation5 + $0x1a6c] ss:$16 sps:$4 sm:$0xff]   ;;  %v13225_v37 = vld [vmem:[#allocation5 + $0x1c88] ss:$16 sps:$4 sm:$0xff]  }
 0x438   :  { %v8390_v40 = vpop.f32.mrf.mxu0  ;;  %v13227_v9 = vld [vmem:[#allocation5 + $0x1c8c] ss:$16 sps:$4 sm:$0xff]  }
 0x439   :  { %8683 = vmatpush1.bf16.msra.mxu0 %v13177_v15  ;;  %v13231_v15 = vld [vmem:[#allocation5 + $0x1c68] ss:$16 sps:$4 sm:$0xff]   ;;  %v13236_v13 = vld [vmem:[#allocation5 + $0x1b8c] ss:$16 sps:$4 sm:$0xff]  }
 0x43a   :  { %8662 = vmatpush2.bf16.msra.mxu1 %v13174_v41  ;;  %v8391_v42 = vpop.f32.mrf.mxu0  ;;  %8684 = vmatprep.subr.bf16.mxu0 %v13185_v61  ;;  %v13233_v41 = vld [vmem:[#allocation5 + $0x1c6c] ss:$16 sps:$4 sm:$0xff]   ;;  %v13234_v61 = vld [vmem:[#allocation5 + $0x1b88] ss:$16 sps:$4 sm:$0xff]  }
 0x43b   :  { %8663 = vmatprep.subr.bf16.mxu1 %v13182_v2  ;;  %v13239_v2 = vld [vmem:[#allocation5 + $0x1c4c] ss:$16 sps:$4 sm:$0xff]   ;;  %v13243_v42 = vld [vmem:[#allocation5 + $0x1c28] ss:$16 sps:$4 sm:$0xff]  }
 0x43c   :  { %v13242_v40 = vld [vmem:[#allocation5 + $0x1b6c] ss:$16 sps:$4 sm:$0xff]  }
 0x43d   :  { %8685 = vmatpush1.bf16.msra.mxu0 %v13183_v14  ;;  %v13240_v14 = vld [vmem:[#allocation5 + $0x1b68] ss:$16 sps:$4 sm:$0xff]  }
 0x43e   :  { %8664 = vmatpush2.bf16.msra.mxu1 %v13180_v1  ;;  %8686 = vmatprep.subr.bf16.mxu0 %v13191_v50  ;;  %v13245_v1 = vld [vmem:[#allocation5 + $0x1c2c] ss:$16 sps:$4 sm:$0xff]  }
 0x43f   :  { %8665 = vmatprep.subr.bf16.mxu1 %v13188_v7  ;;  %v13248_v7 = vld [vmem:[#allocation5 + $0x1b4c] ss:$16 sps:$4 sm:$0xff]  }
 0x440   :  { %v13251_v50 = vld [vmem:[#allocation5 + $0x1c0c] ss:$16 sps:$4 sm:$0xff]  }
 0x441   :  { %8687 = vmatpush1.bf16.msra.mxu0 %v13189_v10  ;;  %v13249_v10 = vld [vmem:[#allocation5 + $0x1c08] ss:$16 sps:$4 sm:$0xff]  }
 0x442   :  { %8666 = vmatpush2.bf16.msra.mxu1 %v13186_v30  ;;  %8688 = vmatprep.subr.bf16.mxu0 %v13197_v56  ;;  %v13246_v30 = vld [vmem:[#allocation5 + $0x1b48] ss:$16 sps:$4 sm:$0xff]   ;;  %v13257_v56 = vld [vmem:[#allocation5 + $0x1dec] ss:$16 sps:$4 sm:$0xff]  }
 0x443   :  { %8667 = vmatprep.subr.bf16.mxu1 %v13194_v19  ;;  %v13254_v19 = vld [vmem:[#allocation5 + $0x1b2c] ss:$16 sps:$4 sm:$0xff]  }
 0x445   :  { %8689 = vmatpush1.bf16.msra.mxu0 %v13195_v4  ;;  %v13255_v4 = vld [vmem:[#allocation5 + $0x1de8] ss:$16 sps:$4 sm:$0xff]  }
 0x446   :  { %8668 = vmatpush2.bf16.msra.mxu1 %v13192_v34  ;;  %8690 = vmatprep.subr.bf16.mxu0 %v13203_v21  ;;  %v13252_v34 = vld [vmem:[#allocation5 + $0x1b28] ss:$16 sps:$4 sm:$0xff]   ;;  %v13263_v21 = vld [vmem:[#allocation5 + $0x1dcc] ss:$16 sps:$4 sm:$0xff]  }
 0x447   :  { %8669 = vmatprep.subr.bf16.mxu1 %v13200_v3  ;;  %v13260_v3 = vld [vmem:[#allocation5 + $0x1b0c] ss:$16 sps:$4 sm:$0xff]  }
 0x449   :  { %8691 = vmatpush1.bf16.msra.mxu0 %v13201_v63  ;;  %v13261_v63 = vld [vmem:[#allocation5 + $0x1dc8] ss:$16 sps:$4 sm:$0xff]  }
 0x44a   :  { %8670 = vmatpush2.bf16.msra.mxu1 %v13198_v54  ;;  %8692 = vmatprep.subr.bf16.mxu0 %v13206_v6  ;;  %v13258_v54 = vld [vmem:[#allocation5 + $0x1b08] ss:$16 sps:$4 sm:$0xff]   ;;  %v13266_v6 = vld [vmem:[#allocation5 + $0x1dac] ss:$16 sps:$4 sm:$0xff]  }
 0x44b   :  { %8721 = vmatprep.subr.bf16.mxu1 %v13209_v29  ;;  %v13269_v29 = vld [vmem:[#allocation5 + $0x1eec] ss:$16 sps:$4 sm:$0xff]  }
 0x44d   :  { %v8427_v18 = vpop.f32.mrf.mxu1  ;;  %8672 = vmatmul.mubr.bf16.vlgmr.msra.gmra.mxu1 %v14001_v44  ;;  %8693 = vmatpush1.bf16.msra.mxu0 %v13204_v16  ;;  %v13219_v44 = vld [vmem:[#allocation5 + $0x1ca8] ss:$16 sps:$4 sm:$0xff]  }
 0x44e   :  { %v14135_v23 = vadd.f32 %v8427_v18, %v8387_v17  ;;  %8722 = vmatpush1.bf16.msra.mxu1 %v13207_v20  ;;  %8694 = vmatprep.subr.bf16.mxu0 %v13212_v22  ;;  %v13230_v17 = vld [vmem:[#allocation5 + $0x1bac] ss:$16 sps:$4 sm:$0xff]   ;;  %v13264_v16 = vld [vmem:[#allocation5 + $0x1da8] ss:$16 sps:$4 sm:$0xff]  }
 0x44f   :  { %v8429_v24 = vpop.f32.mrf.mxu1  ;;  %8723 = vmatprep.subr.bf16.mxu1 %v13215_v25  ;;  %8753 = vmatprep.mubr.bf16.mxu1 %v14005_v59  ;;  %v13228_v59 = vld [vmem:[#allocation5 + $0x1ba8] ss:$16 sps:$4 sm:$0xff]   ;;  %v13272_v22 = vld [vmem:[#allocation5 + $0x1d8c] ss:$16 sps:$4 sm:$0xff]  }
 0x450   :  { %v14137_v39 = vadd.f32 %v8429_v24, %v8389_v26  ;;  %v13237_v26 = vld [vmem:[#allocation5 + $0x1c48] ss:$16 sps:$4 sm:$0xff]   ;;  %v13275_v25 = vld [vmem:[#allocation5 + $0x1ecc] ss:$16 sps:$4 sm:$0xff]  }
 0x451   :  { %v8431_v48 = vpop.f32.mrf.mxu1  ;;  %8695 = vmatpush1.bf16.msra.mxu0 %v13210_v47  ;;  %v13267_v20 = vld [vmem:[#allocation5 + $0x1ee8] ss:$16 sps:$4 sm:$0xff]  }
 0x452   :  { %8724 = vmatpush1.bf16.msra.mxu1 %v13213_v62  ;;  %8696 = vmatprep.subr.bf16.mxu0 %v13218_v36  ;;  %v13270_v62 = vld [vmem:[#allocation5 + $0x1d88] ss:$16 sps:$4 sm:$0xff]   ;;  %v13281_v48 = vld [vmem:[#allocation5 + $0x1eac] ss:$16 sps:$4 sm:$0xff]  }
 0x453   :  { %v8432_v32 = vpop.f32.mrf.mxu1  ;;  %8725 = vmatprep.subr.bf16.mxu1 %v13221_v12  ;;  %v13273_v24 = vld [vmem:[#allocation5 + $0x1ec8] ss:$16 sps:$4 sm:$0xff]   ;;  %v13278_v12 = vld [vmem:[#allocation5 + $0x1d6c] ss:$16 sps:$4 sm:$0xff]  }
 0x454   :  { %v13276_v32 = vld [vmem:[#allocation5 + $0x1d68] ss:$16 sps:$4 sm:$0xff]  }
 0x455   :  { %8697 = vmatpush2.bf16.msra.mxu0 %v13216_v53 }
 0x456   :  { %8726 = vmatpush1.bf16.msra.mxu1 %v13219_v44  ;;  %8698 = vmatprep.subr.bf16.mxu0 %v13224_v49 }
 0x457   :  { %8727 = vmatprep.subr.bf16.mxu1 %v13227_v9  ;;  %v13287_v9 = vld [vmem:[#allocation5 + $0x1e8c] ss:$16 sps:$4 sm:$0xff]  }
 0x459   :  { %8699 = vmatpush2.bf16.msra.mxu0 %v13222_v43  ;;  %v13282_v43 = vld [vmem:[#allocation5 + $0x1d48] ss:$16 sps:$4 sm:$0xff]  }
 0x45a   :  { %8728 = vmatpush1.bf16.msra.mxu1 %v13225_v37  ;;  %8700 = vmatprep.subr.bf16.mxu0 %v13230_v17  ;;  %v13285_v37 = vld [vmem:[#allocation5 + $0x1e88] ss:$16 sps:$4 sm:$0xff]   ;;  %v13290_v17 = vld [vmem:[#allocation5 + $0x1d2c] ss:$16 sps:$4 sm:$0xff]  }
 0x45b   :  { %8729 = vmatprep.subr.bf16.mxu1 %v13233_v41  ;;  %v13291_v41 = vld [vmem:[#allocation5 + $0x1e68] ss:$16 sps:$4 sm:$0xff]  }
 0x45d   :  { %8701 = vmatpush2.bf16.msra.mxu0 %v13228_v59  ;;  %v13296_v59 = vld [vmem:[#allocation5 + $0x1d0c] ss:$16 sps:$4 sm:$0xff]  }
 0x45e   :  { %8730 = vmatpush1.bf16.msra.mxu1 %v13231_v15  ;;  %8702 = vmatprep.subr.bf16.mxu0 %v13236_v13  ;;  %v13299_v15 = vld [vmem:[#allocation5 + $0x1e4c] ss:$16 sps:$4 sm:$0xff]   ;;  %v13294_v13 = vld [vmem:[#allocation5 + $0x1d08] ss:$16 sps:$4 sm:$0xff]  }
 0x45f   :  { %8731 = vmatprep.subr.bf16.mxu1 %v13239_v2  ;;  %v13297_v2 = vld [vmem:[#allocation5 + $0x1e48] ss:$16 sps:$4 sm:$0xff]  }
 0x461   :  { %8703 = vmatpush2.bf16.msra.mxu0 %v13234_v61  ;;  %v13302_v61 = vld [vmem:[#allocation5 + $0x1e2c] ss:$16 sps:$4 sm:$0xff]  }
 0x462   :  { %8732 = vmatpush1.bf16.msra.mxu1 %v13237_v26  ;;  %8704 = vmatprep.subr.bf16.mxu0 %v13242_v40  ;;  %v13305_v26 = vld [vmem:[#allocation5 + $0x20ec] ss:$16 sps:$4 sm:$0xff]   ;;  %v13300_v40 = vld [vmem:[#allocation5 + $0x1e28] ss:$16 sps:$4 sm:$0xff]  }
 0x463   :  { %8733 = vmatprep.subr.bf16.mxu1 %v13245_v1  ;;  %v13303_v1 = vld [vmem:[#allocation5 + $0x20e8] ss:$16 sps:$4 sm:$0xff]  }
 0x465   :  { %8705 = vmatpush2.bf16.msra.mxu0 %v13240_v14  ;;  %v13308_v14 = vld [vmem:[#allocation5 + $0x1e0c] ss:$16 sps:$4 sm:$0xff]  }
 0x466   :  { %8734 = vmatpush1.bf16.msra.mxu1 %v13243_v42  ;;  %8706 = vmatprep.subr.bf16.mxu0 %v13248_v7  ;;  %v13311_v42 = vld [vmem:[#allocation5 + $0x20cc] ss:$16 sps:$4 sm:$0xff]  }
 0x467   :  { %8735 = vmatprep.subr.bf16.mxu1 %v13251_v50 }
 0x469   :  { %8707 = vmatpush2.bf16.msra.mxu0 %v13246_v30  ;;  %v13306_v30 = vld [vmem:[#allocation5 + $0x1e08] ss:$16 sps:$4 sm:$0xff]  }
 0x46a   :  { %8736 = vmatpush1.bf16.msra.mxu1 %v13249_v10  ;;  %8708 = vmatprep.subr.bf16.mxu0 %v13254_v19  ;;  %v13309_v10 = vld [vmem:[#allocation5 + $0x20c8] ss:$16 sps:$4 sm:$0xff]  }
 0x46b   :  { %8737 = vmatprep.subr.bf16.mxu1 %v13257_v56  ;;  %v13314_v56 = vld [vmem:[#allocation5 + $0x1fec] ss:$16 sps:$4 sm:$0xff]  }
 0x46d   :  { %8709 = vmatpush2.bf16.msra.mxu0 %v13252_v34  ;;  %v13317_v34 = vld [vmem:[#allocation5 + $0x20ac] ss:$16 sps:$4 sm:$0xff]  }
 0x46e   :  { %8738 = vmatpush2.bf16.msra.mxu1 %v13255_v4  ;;  %8710 = vmatprep.subr.bf16.mxu0 %v13260_v3 }
 0x46f   :  { %8739 = vmatprep.subr.bf16.mxu1 %v13263_v21  ;;  %v13312_v21 = vld [vmem:[#allocation5 + $0x1fe8] ss:$16 sps:$4 sm:$0xff]  }
 0x471   :  { %8711 = vmatpush2.bf16.msra.mxu0 %v13258_v54 }
 0x472   :  { %8740 = vmatpush2.bf16.msra.mxu1 %v13261_v63  ;;  %8762 = vmatprep.subr.bf16.mxu0 %v13269_v29  ;;  %v13320_v63 = vld [vmem:[#allocation5 + $0x1fcc] ss:$16 sps:$4 sm:$0xff]   ;;  %v13318_v29 = vld [vmem:[#allocation5 + $0x1fc8] ss:$16 sps:$4 sm:$0xff]  }
 0x473   :  { %8741 = vmatprep.subr.bf16.mxu1 %v13266_v6  ;;  %v13323_v6 = vld [vmem:[#allocation5 + $0x208c] ss:$16 sps:$4 sm:$0xff]  }
 0x474   :  { %v8468_v18 = vpop.f32.mrf.mxu0  ;;  %8713 = vmatmul.mubr.bf16.vlgmr.msra.gmra.mxu0 %v14003_v45  ;;  %v13279_v45 = vld [vmem:[#allocation5 + $0x1ea8] ss:$16 sps:$4 sm:$0xff]  }
 0x475   :  { %v8469_v47 = vadd.f32 %v8468_v18, %v14135_v23  ;;  %8763 = vmatpush1.bf16.msra.mxu0 %v13267_v20  ;;  %8794 = vmatprep.mubr.bf16.mxu0 %v14007_v60  ;;  %v13284_v23 = vld [vmem:[#allocation5 + $0x1d4c] ss:$16 sps:$4 sm:$0xff]   ;;  %v13288_v60 = vld [vmem:[#allocation5 + $0x1d28] ss:$16 sps:$4 sm:$0xff]  }
 0x476   :  { %8742 = vmatpush2.bf16.msra.mxu1 %v13264_v16  ;;  %v8470_v36 = vpop.f32.mrf.mxu0  ;;  %8764 = vmatprep.subr.bf16.mxu0 %v13275_v25  ;;  %v13321_v16 = vld [vmem:[#allocation5 + $0x2088] ss:$16 sps:$4 sm:$0xff]   ;;  %v13326_v20 = vld [vmem:[#allocation5 + $0x1fac] ss:$16 sps:$4 sm:$0xff]  }
 0x477   :  { %8743 = vmatprep.subr.bf16.mxu1 %v13272_v22  ;;  %v8471_v53 = vadd.f32 %v8470_v36, %v14137_v39  ;;  %v13293_v39 = vld [vmem:[#allocation5 + $0x1e6c] ss:$16 sps:$4 sm:$0xff]   ;;  %v13327_v25 = vld [vmem:[#allocation5 + $0x2068] ss:$16 sps:$4 sm:$0xff]  }
 0x478   :  { %v8472_v44 = vpop.f32.mrf.mxu0  ;;  %v13329_v22 = vld [vmem:[#allocation5 + $0x206c] ss:$16 sps:$4 sm:$0xff]  }
 0x479   :  { %8765 = vmatpush1.bf16.msra.mxu0 %v13273_v24  ;;  %v13332_v18 = vld [vmem:[#allocation5 + $0x1f8c] ss:$16 sps:$4 sm:$0xff]   ;;  %v13333_v24 = vld [vmem:[#allocation5 + $0x2048] ss:$16 sps:$4 sm:$0xff]  }
 0x47a   :  { %8744 = vmatpush2.bf16.msra.mxu1 %v13270_v62  ;;  %v8473_v49 = vpop.f32.mrf.mxu0  ;;  %8766 = vmatprep.subr.bf16.mxu0 %v13281_v48  ;;  %v13330_v62 = vld [vmem:[#allocation5 + $0x1f88] ss:$16 sps:$4 sm:$0xff]   ;;  %v13338_v36 = vld [vmem:[#allocation5 + $0x1f6c] ss:$16 sps:$4 sm:$0xff]  }
 0x47b   :  { %8745 = vmatprep.subr.bf16.mxu1 %v13278_v12  ;;  %v13341_v12 = vld [vmem:[#allocation5 + $0x202c] ss:$16 sps:$4 sm:$0xff]   ;;  %v13336_v48 = vld [vmem:[#allocation5 + $0x1f68] ss:$16 sps:$4 sm:$0xff]  }
 0x47c   :  { %v13344_v44 = vld [vmem:[#allocation5 + $0x1f4c] ss:$16 sps:$4 sm:$0xff]   ;;  %v13345_v49 = vld [vmem:[#allocation5 + $0x2008] ss:$16 sps:$4 sm:$0xff]  }
 0x47d   :  { %8767 = vmatpush1.bf16.msra.mxu0 %v13279_v45  ;;  %v13342_v45 = vld [vmem:[#allocation5 + $0x1f48] ss:$16 sps:$4 sm:$0xff]  }
 0x47e   :  { %8746 = vmatpush2.bf16.msra.mxu1 %v13276_v32  ;;  %8768 = vmatprep.subr.bf16.mxu0 %v13287_v9  ;;  %v13347_v32 = vld [vmem:[#allocation5 + $0x200c] ss:$16 sps:$4 sm:$0xff]  }
 0x47f   :  { %8747 = vmatprep.subr.bf16.mxu1 %v13284_v23  ;;  %v13350_v23 = vld [vmem:[#allocation5 + $0x1f2c] ss:$16 sps:$4 sm:$0xff]  }
 0x480   :  { %v13353_v9 = vld [vmem:[#allocation5 + $0x21ec] ss:$16 sps:$4 sm:$0xff]  }
 0x481   :  { %8769 = vmatpush1.bf16.msra.mxu0 %v13285_v37  ;;  %v13351_v37 = vld [vmem:[#allocation5 + $0x21e8] ss:$16 sps:$4 sm:$0xff]  }
 0x482   :  { %8748 = vmatpush2.bf16.msra.mxu1 %v13282_v43  ;;  %8770 = vmatprep.subr.bf16.mxu0 %v13293_v39  ;;  %v13348_v43 = vld [vmem:[#allocation5 + $0x1f28] ss:$16 sps:$4 sm:$0xff]   ;;  %v13359_v39 = vld [vmem:[#allocation5 + $0x21cc] ss:$16 sps:$4 sm:$0xff]  }
 0x483   :  { %8749 = vmatprep.subr.bf16.mxu1 %v13290_v17  ;;  %v13356_v17 = vld [vmem:[#allocation5 + $0x1f0c] ss:$16 sps:$4 sm:$0xff]  }
 0x485   :  { %8771 = vmatpush1.bf16.msra.mxu0 %v13291_v41  ;;  %v13357_v41 = vld [vmem:[#allocation5 + $0x21c8] ss:$16 sps:$4 sm:$0xff]  }
 0x486   :  { %8750 = vmatpush2.bf16.msra.mxu1 %v13288_v60  ;;  %8772 = vmatprep.subr.bf16.mxu0 %v13299_v15  ;;  %v13354_v60 = vld [vmem:[#allocation5 + $0x1f08] ss:$16 sps:$4 sm:$0xff]   ;;  %v13365_v15 = vld [vmem:[#allocation5 + $0x22ec] ss:$16 sps:$4 sm:$0xff]  }
 0x487   :  { %8751 = vmatprep.subr.bf16.mxu1 %v13296_v59  ;;  %v13362_v59 = vld [vmem:[#allocation5 + $0x21ac] ss:$16 sps:$4 sm:$0xff]  }
 0x489   :  { %8773 = vmatpush1.bf16.msra.mxu0 %v13297_v2  ;;  %v13363_v2 = vld [vmem:[#allocation5 + $0x22e8] ss:$16 sps:$4 sm:$0xff]  }
 0x48a   :  { %8752 = vmatpush2.bf16.msra.mxu1 %v13294_v13  ;;  %8774 = vmatprep.subr.bf16.mxu0 %v13302_v61  ;;  %v13360_v13 = vld [vmem:[#allocation5 + $0x21a8] ss:$16 sps:$4 sm:$0xff]   ;;  %v13368_v61 = vld [vmem:[#allocation5 + $0x218c] ss:$16 sps:$4 sm:$0xff]  }
 0x48b   :  { %8803 = vmatprep.subr.bf16.mxu1 %v13305_v26  ;;  %v13371_v26 = vld [vmem:[#allocation5 + $0x22cc] ss:$16 sps:$4 sm:$0xff]  }
 0x48d   :  { %v8509_v7 = vpop.f32.mrf.mxu1  ;;  %8754 = vmatmul.mubr.bf16.vlgmr.msra.gmra.mxu1 %v14019_v55  ;;  %8775 = vmatpush1.bf16.msra.mxu0 %v13300_v40  ;;  %v13315_v55 = vld [vmem:[#allocation5 + $0x20a8] ss:$16 sps:$4 sm:$0xff]  }
 0x48e   :  { %v14145_v50 = vadd.f32 %v8509_v7, %v8469_v47  ;;  %8804 = vmatpush1.bf16.msra.mxu1 %v13303_v1  ;;  %8776 = vmatprep.subr.bf16.mxu0 %v13308_v14  ;;  %v13335_v47 = vld [vmem:[#allocation5 + $0x204c] ss:$16 sps:$4 sm:$0xff]   ;;  %v13366_v14 = vld [vmem:[#allocation5 + $0x2188] ss:$16 sps:$4 sm:$0xff]  }
 0x48f   :  { %v8511_v19 = vpop.f32.mrf.mxu1  ;;  %8805 = vmatprep.subr.bf16.mxu1 %v13311_v42  ;;  %8835 = vmatprep.mubr.bf16.mxu1 %v14023_v38  ;;  %v13324_v38 = vld [vmem:[#allocation5 + $0x1fa8] ss:$16 sps:$4 sm:$0xff]  }
 0x490   :  { %v14147_v4 = vadd.f32 %v8511_v19, %v8471_v53  ;;  %v13339_v53 = vld [vmem:[#allocation5 + $0x2028] ss:$16 sps:$4 sm:$0xff]  }
 0x491   :  { %v8513_v3 = vpop.f32.mrf.mxu1  ;;  %8777 = vmatpush1.bf16.msra.mxu0 %v13306_v30  ;;  %v13369_v42 = vld [vmem:[#allocation5 + $0x22c8] ss:$16 sps:$4 sm:$0xff]   ;;  %v13374_v30 = vld [vmem:[#allocation5 + $0x216c] ss:$16 sps:$4 sm:$0xff]  }
 0x492   :  { %8806 = vmatpush1.bf16.msra.mxu1 %v13309_v10  ;;  %8778 = vmatprep.subr.bf16.mxu0 %v13314_v56  ;;  %v13377_v10 = vld [vmem:[#allocation5 + $0x22ac] ss:$16 sps:$4 sm:$0xff]  }
 0x493   :  { %v8514_v54 = vpop.f32.mrf.mxu1  ;;  %8807 = vmatprep.subr.bf16.mxu1 %v13317_v34  ;;  %v13372_v34 = vld [vmem:[#allocation5 + $0x2168] ss:$16 sps:$4 sm:$0xff]  }
 0x494   :  { %v13381_v54 = vld [vmem:[#allocation5 + $0x2288] ss:$16 sps:$4 sm:$0xff]  }
 0x495   :  { %8779 = vmatpush2.bf16.msra.mxu0 %v13312_v21  ;;  %v13383_v21 = vld [vmem:[#allocation5 + $0x228c] ss:$16 sps:$4 sm:$0xff]  }
 0x496   :  { %8808 = vmatpush1.bf16.msra.mxu1 %v13315_v55  ;;  %8780 = vmatprep.subr.bf16.mxu0 %v13320_v63  ;;  %v13378_v55 = vld [vmem:[#allocation5 + $0x2148] ss:$16 sps:$4 sm:$0xff]   ;;  %v13386_v63 = vld [vmem:[#allocation5 + $0x212c] ss:$16 sps:$4 sm:$0xff]  }
 0x497   :  { %8809 = vmatprep.subr.bf16.mxu1 %v13323_v6  ;;  %v13387_v6 = vld [vmem:[#allocation5 + $0x2268] ss:$16 sps:$4 sm:$0xff]  }
 0x499   :  { %8781 = vmatpush2.bf16.msra.mxu0 %v13318_v29  ;;  %v13392_v29 = vld [vmem:[#allocation5 + $0x210c] ss:$16 sps:$4 sm:$0xff]  }
 0x49a   :  { %8810 = vmatpush1.bf16.msra.mxu1 %v13321_v16  ;;  %8782 = vmatprep.subr.bf16.mxu0 %v13326_v20  ;;  %v13395_v16 = vld [vmem:[#allocation5 + $0x224c] ss:$16 sps:$4 sm:$0xff]   ;;  %v13390_v20 = vld [vmem:[#allocation5 + $0x2108] ss:$16 sps:$4 sm:$0xff]  }
 0x49b   :  { %8811 = vmatprep.subr.bf16.mxu1 %v13329_v22  ;;  %v13393_v22 = vld [vmem:[#allocation5 + $0x2248] ss:$16 sps:$4 sm:$0xff]  }
 0x49d   :  { %8783 = vmatpush2.bf16.msra.mxu0 %v13324_v38  ;;  %v13398_v38 = vld [vmem:[#allocation5 + $0x222c] ss:$16 sps:$4 sm:$0xff]  }
 0x49e   :  { %8812 = vmatpush1.bf16.msra.mxu1 %v13327_v25  ;;  %8784 = vmatprep.subr.bf16.mxu0 %v13332_v18  ;;  %v13401_v25 = vld [vmem:[#allocation5 + $0x24ec] ss:$16 sps:$4 sm:$0xff]   ;;  %v13396_v18 = vld [vmem:[#allocation5 + $0x2228] ss:$16 sps:$4 sm:$0xff]  }
 0x49f   :  { %8813 = vmatprep.subr.bf16.mxu1 %v13335_v47  ;;  %v13399_v47 = vld [vmem:[#allocation5 + $0x24e8] ss:$16 sps:$4 sm:$0xff]  }
 0x4a1   :  { %8785 = vmatpush2.bf16.msra.mxu0 %v13330_v62  ;;  %v13404_v62 = vld [vmem:[#allocation5 + $0x220c] ss:$16 sps:$4 sm:$0xff]  }
 0x4a2   :  { %8814 = vmatpush1.bf16.msra.mxu1 %v13333_v24  ;;  %8786 = vmatprep.subr.bf16.mxu0 %v13338_v36  ;;  %v13407_v24 = vld [vmem:[#allocation5 + $0x24cc] ss:$16 sps:$4 sm:$0xff]  }
 0x4a3   :  { %8815 = vmatprep.subr.bf16.mxu1 %v13341_v12 }
 0x4a5   :  { %8787 = vmatpush2.bf16.msra.mxu0 %v13336_v48  ;;  %v13402_v48 = vld [vmem:[#allocation5 + $0x2208] ss:$16 sps:$4 sm:$0xff]  }
 0x4a6   :  { %8816 = vmatpush1.bf16.msra.mxu1 %v13339_v53  ;;  %8788 = vmatprep.subr.bf16.mxu0 %v13344_v44  ;;  %v13405_v53 = vld [vmem:[#allocation5 + $0x24c8] ss:$16 sps:$4 sm:$0xff]  }
 0x4a7   :  { %8817 = vmatprep.subr.bf16.mxu1 %v13347_v32  ;;  %v13410_v32 = vld [vmem:[#allocation5 + $0x23ec] ss:$16 sps:$4 sm:$0xff]  }
 0x4a9   :  { %8789 = vmatpush2.bf16.msra.mxu0 %v13342_v45  ;;  %v13413_v45 = vld [vmem:[#allocation5 + $0x24ac] ss:$16 sps:$4 sm:$0xff]  }
 0x4aa   :  { %8818 = vmatpush1.bf16.msra.mxu1 %v13345_v49  ;;  %8790 = vmatprep.subr.bf16.mxu0 %v13350_v23 }
 0x4ab   :  { %8819 = vmatprep.subr.bf16.mxu1 %v13353_v9  ;;  %v13411_v9 = vld [vmem:[#allocation5 + $0x24a8] ss:$16 sps:$4 sm:$0xff]  }
 0x4ad   :  { %8791 = vmatpush2.bf16.msra.mxu0 %v13348_v43 }
 0x4ae   :  { %8820 = vmatpush2.bf16.msra.mxu1 %v13351_v37  ;;  %8792 = vmatprep.subr.bf16.mxu0 %v13356_v17  ;;  %v13416_v37 = vld [vmem:[#allocation5 + $0x23cc] ss:$16 sps:$4 sm:$0xff]  }
 0x4af   :  { %8821 = vmatprep.subr.bf16.mxu1 %v13359_v39  ;;  %v13419_v17 = vld [vmem:[#allocation5 + $0x248c] ss:$16 sps:$4 sm:$0xff]   ;;  %v13414_v39 = vld [vmem:[#allocation5 + $0x23c8] ss:$16 sps:$4 sm:$0xff]  }
 0x4b1   :  { %8793 = vmatpush2.bf16.msra.mxu0 %v13354_v60  ;;  %v13417_v60 = vld [vmem:[#allocation5 + $0x2488] ss:$16 sps:$4 sm:$0xff]  }
 0x4b2   :  { %8822 = vmatpush2.bf16.msra.mxu1 %v13357_v41  ;;  %8844 = vmatprep.subr.bf16.mxu0 %v13365_v15  ;;  %v13422_v41 = vld [vmem:[#allocation5 + $0x23ac] ss:$16 sps:$4 sm:$0xff]   ;;  %v13423_v15 = vld [vmem:[#allocation5 + $0x2468] ss:$16 sps:$4 sm:$0xff]  }
 0x4b3   :  { %8823 = vmatprep.subr.bf16.mxu1 %v13362_v59  ;;  %v13425_v59 = vld [vmem:[#allocation5 + $0x246c] ss:$16 sps:$4 sm:$0xff]  }
 0x4b4   :  { %v8550_v40 = vpop.f32.mrf.mxu0  ;;  %8795 = vmatmul.mubr.bf16.vlgmr.msra.gmra.mxu0 %v14021_v35  ;;  %v13375_v35 = vld [vmem:[#allocation5 + $0x22a8] ss:$16 sps:$4 sm:$0xff]  }
 0x4b5   :  { %v8551_v1 = vadd.f32 %v8550_v40, %v14145_v50  ;;  %8845 = vmatpush1.bf16.msra.mxu0 %v13363_v2  ;;  %8876 = vmatprep.mubr.bf16.mxu0 %v14025_v51  ;;  %v13380_v50 = vld [vmem:[#allocation5 + $0x214c] ss:$16 sps:$4 sm:$0xff]   ;;  %v13384_v51 = vld [vmem:[#allocation5 + $0x2128] ss:$16 sps:$4 sm:$0xff]  }
 0x4b6   :  { %8824 = vmatpush2.bf16.msra.mxu1 %v13360_v13  ;;  %v8552_v7 = vpop.f32.mrf.mxu0  ;;  %8846 = vmatprep.subr.bf16.mxu0 %v13371_v26  ;;  %v13428_v13 = vld [vmem:[#allocation5 + $0x238c] ss:$16 sps:$4 sm:$0xff]   ;;  %v13429_v26 = vld [vmem:[#allocation5 + $0x2448] ss:$16 sps:$4 sm:$0xff]  }
 0x4b7   :  { %8825 = vmatprep.subr.bf16.mxu1 %v13368_v61  ;;  %v8553_v19 = vadd.f32 %v8552_v7, %v14147_v4  ;;  %v13389_v4 = vld [vmem:[#allocation5 + $0x226c] ss:$16 sps:$4 sm:$0xff]   ;;  %v13426_v61 = vld [vmem:[#allocation5 + $0x2388] ss:$16 sps:$4 sm:$0xff]  }
 0x4b8   :  { %v8554_v56 = vpop.f32.mrf.mxu0  ;;  %v13431_v2 = vld [vmem:[#allocation5 + $0x244c] ss:$16 sps:$4 sm:$0xff]  }
 0x4b9   :  { %8847 = vmatpush1.bf16.msra.mxu0 %v13369_v42  ;;  %v13434_v40 = vld [vmem:[#allocation5 + $0x236c] ss:$16 sps:$4 sm:$0xff]   ;;  %v13435_v42 = vld [vmem:[#allocation5 + $0x2428] ss:$16 sps:$4 sm:$0xff]  }
 0x4ba   :  { %8826 = vmatpush2.bf16.msra.mxu1 %v13366_v14  ;;  %v8555_v3 = vpop.f32.mrf.mxu0  ;;  %8848 = vmatprep.subr.bf16.mxu0 %v13377_v10  ;;  %v13432_v14 = vld [vmem:[#allocation5 + $0x2368] ss:$16 sps:$4 sm:$0xff]   ;;  %v13440_v7 = vld [vmem:[#allocation5 + $0x234c] ss:$16 sps:$4 sm:$0xff]  }
 0x4bb   :  { %8827 = vmatprep.subr.bf16.mxu1 %v13374_v30  ;;  %v13443_v30 = vld [vmem:[#allocation5 + $0x240c] ss:$16 sps:$4 sm:$0xff]   ;;  %v13441_v56 = vld [vmem:[#allocation5 + $0x2408] ss:$16 sps:$4 sm:$0xff]  }
 0x4bc   :  { %v13449_v10 = vld [vmem:[#allocation5 + $0x252c] ss:$16 sps:$4 sm:$0x1f]  }
 0x4bd   :  { %8849 = vmatpush1.bf16.msra.mxu0 %v13375_v35  ;;  %v13446_v35 = vld [vmem:[#allocation5 + $0x232c] ss:$16 sps:$4 sm:$0xff]   ;;  %v7366_v3 = vand.u32 %v13449_v10, %v14054_v27  ;;  %v13570_v10 = vld [vmem:[#allocation8 + $0x220] ss:$16 sps:$4 sm:$0xff]  }
 0x4be   :  { %8828 = vmatpush2.bf16.msra.mxu1 %v13372_v34  ;;  %8850 = vmatprep.subr.bf16.mxu0 %v13383_v21  ;;  %v13447_v34 = vld [vmem:[#allocation5 + $0x2528] ss:$16 sps:$4 sm:$0x1f]  }
 0x4bf   :  { %8829 = vmatprep.subr.bf16.mxu1 %v13380_v50  ;;  %v13444_v50 = vld [vmem:[#allocation5 + $0x2328] ss:$16 sps:$4 sm:$0xff]   ;;  %v7363_v21 = vand.u32 %v13447_v34, %v14054_v27 }
 0x4c0   :  { %v13488_v34 = vld [vmem:[#allocation8 + $0x1a4] ss:$16 sps:$4 sm:$0xff]  }
 0x4c1   :  { %8851 = vmatpush1.bf16.msra.mxu0 %v13381_v54  ;;  %v13455_v54 = vld [vmem:[#allocation5 + $0x250c] ss:$16 sps:$4 sm:$0xff]  }
 0x4c2   :  { %8830 = vmatpush2.bf16.msra.mxu1 %v13378_v55  ;;  %8852 = vmatprep.subr.bf16.mxu0 %v13389_v4  ;;  %v13452_v55 = vld [vmem:[#allocation5 + $0x230c] ss:$16 sps:$4 sm:$0xff]   ;;  %v13453_v4 = vld [vmem:[#allocation5 + $0x2508] ss:$16 sps:$4 sm:$0xff]  }
 0x4c3   :  { %8831 = vmatprep.subr.bf16.mxu1 %v13386_v63  ;;  %v13450_v63 = vld [vmem:[#allocation5 + $0x2308] ss:$16 sps:$4 sm:$0xff]  }
 0x4c5   :  { %8853 = vmatpush1.bf16.msra.mxu0 %v13387_v6  ;;  %v8927_v6 = vmax.f32 %v14095_v52, 0.0  ;;  %v13464_v52 = vld [vmem:[#allocation8 + $0xa4] ss:$16 sps:$4 sm:$0xff]  }
 0x4c6   :  { %8832 = vmatpush2.bf16.msra.mxu1 %v13384_v51  ;;  %8854 = vmatprep.subr.bf16.mxu0 %v13395_v16  ;;  %v13458_v51 = vld [vmem:[#allocation8 + $0xe4] ss:$16 sps:$4 sm:$0xff]  }
 0x4c7   :  { %8833 = vmatprep.subr.bf16.mxu1 %v13392_v29  ;;  %v13456_v29 = vld [vmem:[#allocation8 + $0xe0] ss:$16 sps:$4 sm:$0xff]   ;;  %v13461_v16 = vld [vmem:[#allocation8 + $0xc4] ss:$16 sps:$4 sm:$0xff]  }
 0x4c9   :  { %8855 = vmatpush1.bf16.msra.mxu0 %v13393_v22 }
 0x4ca   :  { %8834 = vmatpush2.bf16.msra.mxu1 %v13390_v20  ;;  %8856 = vmatprep.subr.bf16.mxu0 %v13398_v38  ;;  %v14164_v20 = vpack.c.bf16 %v8927_v6, %v8927_v6  ;;  %v13459_v38 = vld [vmem:[#allocation8 + $0xc0] ss:$16 sps:$4 sm:$0xff]  }
 0x4cb   :  { %8885 = vmatprep.subr.bf16.mxu1 %v13401_v25  ;;  %v13492_v6 = vld [vmem:[#allocation8 + $0x160] ss:$16 sps:$4 sm:$0xff]  }
 0x4cd   :  { %v8591_v36 = vpop.f32.mrf.mxu1  ;;  %8836 = vmatmul.mubr.bf16.vlgmr.msra.gmra.mxu1 %v14037_v31  ;;  %8857 = vmatpush1.bf16.msra.mxu0 %v13396_v18  ;;  %v13408_v31 = vld [vmem:[#allocation5 + $0x23e8] ss:$16 sps:$4 sm:$0xff]  }
 0x4ce   :  { %v14155_v12 = vadd.f32 %v8591_v36, %v8551_v1  ;;  %8886 = vmatpush1.bf16.msra.mxu1 %v13399_v47  ;;  %8858 = vmatprep.subr.bf16.mxu0 %v13404_v62  ;;  %v13437_v1 = vld [vmem:[#allocation5 + $0x242c] ss:$16 sps:$4 sm:$0xff]   ;;  %v13462_v62 = vld [vmem:[#allocation8 + $0xa0] ss:$16 sps:$4 sm:$0xff]   ;;  %v13467_v36 = vld [vmem:[#allocation8 + $0x84] ss:$16 sps:$4 sm:$0xff]  }
 0x4cf   :  { %v8593_v44 = vpop.f32.mrf.mxu1  ;;  %8887 = vmatprep.subr.bf16.mxu1 %v13407_v24  ;;  %11452 = vmatprep.mubr.msk.bf16.mxu1 %vm7348_vm0, %v14041_v58  ;;  %v13420_v58 = vld [vmem:[#allocation5 + $0x23a8] ss:$16 sps:$4 sm:$0xff]  }
 0x4d0   :  { %v14157_v49 = vadd.f32 %v8593_v44, %v8553_v19  ;;  %v13438_v19 = vld [vmem:[#allocation5 + $0x2348] ss:$16 sps:$4 sm:$0xff]  }
 0x4d1   :  { %v8595_v23 = vpop.f32.mrf.mxu1  ;;  %8859 = vmatpush1.bf16.msra.mxu0 %v13402_v48  ;;  %v13554_v48 = vld [vmem:[#allocation8 + $0x2e4] ss:$16 sps:$4 sm:$0xff]  }
 0x4d2   :  { %8888 = vmatpush1.bf16.msra.mxu1 %v13405_v53  ;;  %8860 = vmatprep.subr.bf16.mxu0 %v13410_v32  ;;  %v13555_v53 = vld [vmem:[#allocation8 + $0x2c0] ss:$16 sps:$4 sm:$0xff]   ;;  %v13470_v44 = vld [vmem:[#allocation8 + $0x64] ss:$16 sps:$4 sm:$0xff]  }
 0x4d3   :  { %v8596_v43 = vpop.f32.mrf.mxu1  ;;  %8889 = vmatprep.subr.bf16.mxu1 %v13413_v45  ;;  %v13560_v32 = vld [vmem:[#allocation8 + $0x2a4] ss:$16 sps:$4 sm:$0xff]   ;;  %v13468_v45 = vld [vmem:[#allocation8 + $0x60] ss:$16 sps:$4 sm:$0xff]  }
 0x4d4   :  { %v13473_v23 = vld [vmem:[#allocation8 + $0x44] ss:$16 sps:$4 sm:$0xff]   ;;  %v13561_v43 = vld [vmem:[#allocation8 + $0x280] ss:$16 sps:$4 sm:$0xff]  }
 0x4d5   :  { %8861 = vmatpush2.bf16.msra.mxu0 %v13408_v31  ;;  %v13563_v31 = vld [vmem:[#allocation8 + $0x284] ss:$16 sps:$4 sm:$0xff]  }
 0x4d6   :  { %8890 = vmatpush1.bf16.msra.mxu1 %v13411_v9  ;;  %8862 = vmatprep.subr.bf16.mxu0 %v13416_v37  ;;  %v13471_v9 = vld [vmem:[#allocation8 + $0x40] ss:$16 sps:$4 sm:$0xff]   ;;  %v13476_v37 = vld [vmem:[#allocation8 + $0x24] ss:$16 sps:$4 sm:$0xff]  }
 0x4d7   :  { %8891 = vmatprep.subr.bf16.mxu1 %v13419_v17  ;;  %v13474_v17 = vld [vmem:[#allocation8 + $0x20] ss:$16 sps:$4 sm:$0xff]  }
 0x4d9   :  { %8863 = vmatpush2.bf16.msra.mxu0 %v13414_v39  ;;  %v13479_v39 = vld [vmem:[#allocation8 + $0x4] ss:$16 sps:$4 sm:$0xff]  }
 0x4da   :  { %8892 = vmatpush1.bf16.msra.mxu1 %v13417_v60  ;;  %8864 = vmatprep.subr.bf16.mxu0 %v13422_v41 }
 0x4db   :  { %8893 = vmatprep.subr.bf16.mxu1 %v13425_v59  ;;  %v13477_v59 = vld [vmem:[#allocation8] ss:$16 sps:$4 sm:$0xff]  }
 0x4dd   :  { %8865 = vmatpush2.bf16.msra.mxu0 %v13420_v58  ;;  %v13566_v58 = vld [vmem:[#allocation8 + $0x264] ss:$16 sps:$4 sm:$0xff]  }
 0x4de   :  { %8894 = vmatpush1.bf16.msra.mxu1 %v13423_v15  ;;  %8866 = vmatprep.subr.bf16.mxu0 %v13428_v13  ;;  %v13482_v13 = vld [vmem:[#allocation8 + $0x1e4] ss:$16 sps:$4 sm:$0xff]  }
 0x4df   :  { %8895 = vmatprep.subr.bf16.mxu1 %v13431_v2  ;;  %v13564_v2 = vld [vmem:[#allocation8 + $0x260] ss:$16 sps:$4 sm:$0xff]  }
 0x4e1   :  { %8867 = vmatpush2.bf16.msra.mxu0 %v13426_v61 }
 0x4e2   :  { %8896 = vmatpush1.bf16.msra.mxu1 %v13429_v26  ;;  %8868 = vmatprep.subr.bf16.mxu0 %v13434_v40  ;;  %v13480_v40 = vld [vmem:[#allocation8 + $0x1e0] ss:$16 sps:$4 sm:$0xff]  }
 0x4e3   :  { %8897 = vmatprep.subr.bf16.mxu1 %v13437_v1  ;;  %v13569_v1 = vld [vmem:[#allocation8 + $0x244] ss:$16 sps:$4 sm:$0xff]  }
 0x4e5   :  { %8869 = vmatpush2.bf16.msra.mxu0 %v13432_v14 }
 0x4e6   :  { %8898 = vmatpush1.bf16.msra.mxu1 %v13435_v42  ;;  %8870 = vmatprep.subr.bf16.mxu0 %v13440_v7  ;;  %v13485_v42 = vld [vmem:[#allocation8 + $0x1c4] ss:$16 sps:$4 sm:$0xff]   ;;  %v13567_v7 = vld [vmem:[#allocation8 + $0x240] ss:$16 sps:$4 sm:$0xff]  }
 0x4e7   :  { %8899 = vmatprep.subr.bf16.mxu1 %v13443_v30  ;;  %v13572_v30 = vld [vmem:[#allocation8 + $0x224] ss:$16 sps:$4 sm:$0xff]  }
 0x4e9   :  { %8871 = vmatpush2.bf16.msra.mxu0 %v13438_v19  ;;  %v13483_v19 = vld [vmem:[#allocation8 + $0x1c0] ss:$16 sps:$4 sm:$0xff]  }
 0x4ea   :  { %8900 = vmatpush1.bf16.msra.mxu1 %v13441_v56  ;;  %8872 = vmatprep.subr.bf16.mxu0 %v13446_v35  ;;  %v13575_v56 = vld [vmem:[#allocation8 + $0x204] ss:$16 sps:$4 sm:$0xff]   ;;  %v13573_v35 = vld [vmem:[#allocation8 + $0x200] ss:$16 sps:$4 sm:$0xff]  }
 0x4eb   :  { %8913 = vmatprep.subr.bf16.mxu1 %v7366_v3  ;;  %v13486_v3 = vld [vmem:[#allocation8 + $0x1a0] ss:$16 sps:$4 sm:$0xff]  }
 0x4ed   :  { %8873 = vmatpush2.bf16.msra.mxu0 %v13444_v50  ;;  %v13578_v50 = vld [vmem:[#allocation8 + $0x3e4] ss:$16 sps:$4 sm:$0xff]  }
 0x4ee   :  { %8914 = vmatpush2.bf16.msra.mxu1 %v7363_v21  ;;  %8874 = vmatprep.subr.bf16.mxu0 %v13452_v55  ;;  %v13491_v21 = vld [vmem:[#allocation8 + $0x184] ss:$16 sps:$4 sm:$0xff]   ;;  %v13576_v55 = vld [vmem:[#allocation8 + $0x3e0] ss:$16 sps:$4 sm:$0xff]  }
 0x4ef   :  { %8915 = vmatprep.subr.bf16.mxu1 %v13455_v54  ;;  %v13489_v54 = vld [vmem:[#allocation8 + $0x180] ss:$16 sps:$4 sm:$0xff]  }
 0x4f1   :  { %8875 = vmatpush2.bf16.msra.mxu0 %v13450_v63  ;;  %v13581_v63 = vld [vmem:[#allocation8 + $0x3c4] ss:$16 sps:$4 sm:$0xff]  }
 0x4f2   :  { %8916 = vmatpush2.bf16.msra.mxu1 %v13453_v4  ;;  %9724 = vmatprep.subr.bf16.mxu0 %v13458_v51  ;;  %v13494_v4 = vld [vmem:[#allocation8 + $0x164] ss:$16 sps:$4 sm:$0xff]   ;;  %v13579_v51 = vld [vmem:[#allocation8 + $0x3c0] ss:$16 sps:$4 sm:$0xff]  }
 0x4f3   :  { %9765 = vmatprep.subr.bf16.mxu1 %v13554_v48  ;;  %v8926_v48 = vmax.f32 %v14092_v8, 0.0  ;;  %v13507_v8 = vld [vmem:[#allocation8 + $0xc8] ss:$16 sps:$4 sm:$0xff]  }
 0x4f4   :  { %v8632_v27 = vpop.f32.mrf.mxu0  ;;  %8877 = vmatmul.mubr.bf16.vlgmr.msra.gmra.mxu0 %v14039_v46  ;;  %v13552_v46 = vld [vmem:[#allocation8 + $0x2e0] ss:$16 sps:$4 sm:$0xff]  }
 0x4f5   :  { %8918 = vmatmul.mubr.bf16.vlgmr.msra.gmra.mxu1 %v14058_v11  ;;  %v8633_v22 = vadd.f32 %v8632_v27, %v14155_v12  ;;  %9725 = vmatpush1.bf16.msra.mxu0 %v13456_v29  ;;  %v13557_v11 = vld [vmem:[#allocation8 + $0x2c4] ss:$16 sps:$4 sm:$0xff]   ;;  %v13465_v12 = vld [vmem:[#allocation8 + $0x80] ss:$16 sps:$4 sm:$0xff]  }
 0x4f6   :  { %9756 = vmatprep.mubr.bf16.mxu0 %v14164_v20  ;;  %v8634_v25 = vpop.f32.mrf.mxu0  ;;  %9726 = vmatprep.subr.bf16.mxu0 %v13461_v16  ;;  %v13584_v29 = vld [vmem:[#allocation8 + $0x3a4] ss:$16 sps:$4 sm:$0xff]   ;;  %v13582_v27 = vld [vmem:[#allocation8 + $0x3a0] ss:$16 sps:$4 sm:$0xff]  }
 0x4f7   :  { %v8635_v18 = vadd.f32 %v8634_v25, %v14157_v49  ;;  %9766 = vmatpush1.bf16.msra.mxu1 %v13552_v46  ;;  %v13558_v49 = vld [vmem:[#allocation8 + $0x2a0] ss:$16 sps:$4 sm:$0xff]   ;;  %v13497_v16 = vld [vmem:[#allocation8 + $0x144] ss:$16 sps:$4 sm:$0xff]  }
 0x4f8   :  { %v8636_v47 = vpop.f32.mrf.mxu0  ;;  %9767 = vmatprep.subr.bf16.mxu1 %v13557_v11  ;;  %v13500_v25 = vld [vmem:[#allocation8 + $0x124] ss:$16 sps:$4 sm:$0xff]   ;;  %v13506_v11 = vld [vmem:[#allocation8 + $0xec] ss:$16 sps:$4 sm:$0xff]  }
 0x4f9   :  { %9727 = vmatpush1.bf16.msra.mxu0 %v13459_v38  ;;  %v13587_v38 = vld [vmem:[#allocation8 + $0x384] ss:$16 sps:$4 sm:$0xff]  }
 0x4fa   :  { %v8637_v24 = vpop.f32.mrf.mxu0  ;;  %9728 = vmatprep.subr.bf16.mxu0 %v13464_v52  ;;  %v13585_v52 = vld [vmem:[#allocation8 + $0x380] ss:$16 sps:$4 sm:$0xff]   ;;  %v13590_v47 = vld [vmem:[#allocation8 + $0x364] ss:$16 sps:$4 sm:$0xff]  }
 0x4fb   :  { %9768 = vmatpush1.bf16.msra.mxu1 %v13555_v53  ;;  %v13588_v24 = vld [vmem:[#allocation8 + $0x360] ss:$16 sps:$4 sm:$0xff]   ;;  %v13593_v46 = vld [vmem:[#allocation8 + $0x344] ss:$16 sps:$4 sm:$0xff]   ;;  %v13504_v53 = vld [vmem:[#allocation8 + $0xe8] ss:$16 sps:$4 sm:$0xff]  }
 0x4fc   :  { %9769 = vmatprep.subr.bf16.mxu1 %v13560_v32  ;;  %v13509_v32 = vld [vmem:[#allocation8 + $0xcc] ss:$16 sps:$4 sm:$0xff]  }
 0x4fd   :  { %9729 = vmatpush1.bf16.msra.mxu0 %v13462_v62  ;;  %v13503_v62 = vld [vmem:[#allocation8 + $0x104] ss:$16 sps:$4 sm:$0xff]  }
 0x4fe   :  { %9730 = vmatprep.subr.bf16.mxu0 %v13467_v36  ;;  %v13501_v36 = vld [vmem:[#allocation8 + $0x100] ss:$16 sps:$4 sm:$0xff]  }
 0x4ff   :  { %9770 = vmatpush1.bf16.msra.mxu1 %v13558_v49 }
 0x500   :  { %9771 = vmatprep.subr.bf16.mxu1 %v13563_v31 }
 0x501   :  { %9731 = vmatpush1.bf16.msra.mxu0 %v13465_v12  ;;  %v13591_v12 = vld [vmem:[#allocation8 + $0x340] ss:$16 sps:$4 sm:$0xff]  }
 0x502   :  { %9732 = vmatprep.subr.bf16.mxu0 %v13470_v44  ;;  %v14176_v44 = vpack.c.bf16 %v8926_v48, %v8926_v48 }
 0x503   :  { %9772 = vmatpush1.bf16.msra.mxu1 %v13561_v43  ;;  %v13594_v43 = vld [vmem:[#allocation8 + $0x320] ss:$16 sps:$4 sm:$0xff]  }
 0x504   :  { %9773 = vmatprep.subr.bf16.mxu1 %v13566_v58  ;;  %v13597_v58 = vld [vmem:[#allocation8 + $0x300] ss:$16 sps:$4 sm:$0xff]  }
 0x505   :  { %9733 = vmatpush1.bf16.msra.mxu0 %v13468_v45 }
 0x506   :  { %9734 = vmatprep.subr.bf16.mxu0 %v13473_v23  ;;  %v13596_v23 = vld [vmem:[#allocation8 + $0x324] ss:$16 sps:$4 sm:$0xff]  }
 0x507   :  { %9774 = vmatpush1.bf16.msra.mxu1 %v13564_v2  ;;  %v13516_v2 = vld [vmem:[#allocation8 + $0x68] ss:$16 sps:$4 sm:$0xff]  }
 0x508   :  { %9775 = vmatprep.subr.bf16.mxu1 %v13569_v1  ;;  %v13522_v1 = vld [vmem:[#allocation8 + $0x28] ss:$16 sps:$4 sm:$0xff]  }
 0x509   :  { %9735 = vmatpush1.bf16.msra.mxu0 %v13471_v9  ;;  %v13512_v9 = vld [vmem:[#allocation8 + $0xac] ss:$16 sps:$4 sm:$0xff]  }
 0x50a   :  { %9736 = vmatprep.subr.bf16.mxu0 %v13476_v37 }
 0x50b   :  { %9776 = vmatpush1.bf16.msra.mxu1 %v13567_v7 }
 0x50c   :  { %9777 = vmatprep.subr.bf16.mxu1 %v13572_v30  ;;  %v13525_v30 = vld [vmem:[#allocation8 + $0x8] ss:$16 sps:$4 sm:$0xff]  }
 0x50d   :  { %v8673_v60 = vpop.f32.mrf.mxu1  ;;  %9737 = vmatpush1.bf16.msra.mxu0 %v13474_v17 }
 0x50e   :  { %v14171_v41 = vadd.f32 %v8673_v60, %v8633_v22  ;;  %9738 = vmatprep.subr.bf16.mxu0 %v13479_v39  ;;  %v13495_v22 = vld [vmem:[#allocation8 + $0x140] ss:$16 sps:$4 sm:$0xff]   ;;  %v13510_v39 = vld [vmem:[#allocation8 + $0xa8] ss:$16 sps:$4 sm:$0xff]   ;;  %v13599_v60 = vld [vmem:[#allocation8 + $0x304] ss:$16 sps:$4 sm:$0xff]  }
 0x50f   :  { %v8675_v15 = vpop.f32.mrf.mxu1  ;;  %9778 = vmatpush1.bf16.msra.mxu1 %v13570_v10 }
 0x510   :  { %v14173_v61 = vadd.f32 %v8675_v15, %v8635_v18  ;;  %9779 = vmatprep.subr.bf16.mxu1 %v13575_v56  ;;  %v13498_v18 = vld [vmem:[#allocation8 + $0x120] ss:$16 sps:$4 sm:$0xff]   ;;  %v13602_v15 = vld [vmem:[#allocation8 + $0x2ec] ss:$16 sps:$4 sm:$0xff]  }
 0x511   :  { %v8677_v26 = vpop.f32.mrf.mxu1  ;;  %9739 = vmatpush1.bf16.msra.mxu0 %v13477_v59 }
 0x512   :  { %9740 = vmatprep.subr.bf16.mxu0 %v13482_v13  ;;  %v13518_v13 = vld [vmem:[#allocation8 + $0x6c] ss:$16 sps:$4 sm:$0xff]   ;;  %v13519_v26 = vld [vmem:[#allocation8 + $0x48] ss:$16 sps:$4 sm:$0xff]  }
 0x513   :  { %v8678_v14 = vpop.f32.mrf.mxu1  ;;  %9780 = vmatpush1.bf16.msra.mxu1 %v13573_v35  ;;  %v13528_v35 = vld [vmem:[#allocation8 + $0x1e8] ss:$16 sps:$4 sm:$0xff]  }
 0x514   :  { %9781 = vmatprep.subr.bf16.mxu1 %v13578_v50  ;;  %v13527_v14 = vld [vmem:[#allocation8 + $0xc] ss:$16 sps:$4 sm:$0xff]  }
 0x515   :  { %9741 = vmatpush2.bf16.msra.mxu0 %v13480_v40  ;;  %v13524_v40 = vld [vmem:[#allocation8 + $0x2c] ss:$16 sps:$4 sm:$0xff]  }
 0x516   :  { %9742 = vmatprep.subr.bf16.mxu0 %v13485_v42  ;;  %v13533_v50 = vld [vmem:[#allocation8 + $0x1cc] ss:$16 sps:$4 sm:$0xff]  }
 0x517   :  { %9782 = vmatpush2.bf16.msra.mxu1 %v13576_v55  ;;  %v13536_v55 = vld [vmem:[#allocation8 + $0x1ac] ss:$16 sps:$4 sm:$0xff]  }
 0x518   :  { %9783 = vmatprep.subr.bf16.mxu1 %v13581_v63  ;;  %v13539_v63 = vld [vmem:[#allocation8 + $0x18c] ss:$16 sps:$4 sm:$0xff]  }
 0x519   :  { %9743 = vmatpush2.bf16.msra.mxu0 %v13483_v19  ;;  %v13530_v19 = vld [vmem:[#allocation8 + $0x1ec] ss:$16 sps:$4 sm:$0xff]  }
 0x51a   :  { %9744 = vmatprep.subr.bf16.mxu0 %v13488_v34 }
 0x51b   :  { %9784 = vmatpush2.bf16.msra.mxu1 %v13579_v51  ;;  %v13542_v51 = vld [vmem:[#allocation8 + $0x16c] ss:$16 sps:$4 sm:$0xff]  }
 0x51c   :  { %9785 = vmatprep.subr.bf16.mxu1 %v13584_v29  ;;  %v13545_v29 = vld [vmem:[#allocation8 + $0x14c] ss:$16 sps:$4 sm:$0xff]  }
 0x51d   :  { %9745 = vmatpush2.bf16.msra.mxu0 %v13486_v3 }
 0x51e   :  { %9746 = vmatprep.subr.bf16.mxu0 %v13491_v21  ;;  %v13531_v21 = vld [vmem:[#allocation8 + $0x1c8] ss:$16 sps:$4 sm:$0xff]  }
 0x51f   :  { %9786 = vmatpush2.bf16.msra.mxu1 %v13582_v27  ;;  %v13548_v27 = vld [vmem:[#allocation8 + $0x12c] ss:$16 sps:$4 sm:$0xff]  }
 0x520   :  { %9787 = vmatprep.subr.bf16.mxu1 %v13587_v38  ;;  %v13551_v38 = vld [vmem:[#allocation8 + $0x10c] ss:$16 sps:$4 sm:$0xff]  }
 0x521   :  { %9747 = vmatpush2.bf16.msra.mxu0 %v13489_v54  ;;  %v13534_v54 = vld [vmem:[#allocation8 + $0x1a8] ss:$16 sps:$4 sm:$0xff]  }
 0x522   :  { %9748 = vmatprep.subr.bf16.mxu0 %v13494_v4  ;;  %v13537_v4 = vld [vmem:[#allocation8 + $0x188] ss:$16 sps:$4 sm:$0xff]  }
 0x523   :  { %9788 = vmatpush2.bf16.msra.mxu1 %v13585_v52 }
 0x524   :  { %9789 = vmatprep.subr.bf16.mxu1 %v13590_v47 }
 0x525   :  { %9749 = vmatpush2.bf16.msra.mxu0 %v13492_v6  ;;  %v13540_v6 = vld [vmem:[#allocation8 + $0x168] ss:$16 sps:$4 sm:$0xff]  }
 0x526   :  { %9750 = vmatprep.subr.bf16.mxu0 %v13497_v16  ;;  %v13543_v16 = vld [vmem:[#allocation8 + $0x148] ss:$16 sps:$4 sm:$0xff]  }
 0x527   :  { %9790 = vmatpush2.bf16.msra.mxu1 %v13588_v24 }
 0x528   :  { %9791 = vmatprep.subr.bf16.mxu1 %v13593_v46 }
 0x529   :  { %9751 = vmatpush2.bf16.msra.mxu0 %v13495_v22  ;;  %v13546_v22 = vld [vmem:[#allocation8 + $0x128] ss:$16 sps:$4 sm:$0xff]  }
 0x52a   :  { %9752 = vmatprep.subr.bf16.mxu0 %v13500_v25  ;;  %v13549_v25 = vld [vmem:[#allocation8 + $0x108] ss:$16 sps:$4 sm:$0xff]  }
 0x52b   :  { %9792 = vmatpush2.bf16.msra.mxu1 %v13591_v12 }
 0x52c   :  { %9793 = vmatprep.subr.bf16.mxu1 %v13596_v23 }
 0x52d   :  { %9753 = vmatpush2.bf16.msra.mxu0 %v13498_v18 }
 0x52e   :  { %9754 = vmatprep.subr.bf16.mxu0 %v13503_v62 }
 0x52f   :  { %9794 = vmatpush2.bf16.msra.mxu1 %v13594_v43 }
 0x530   :  { %9795 = vmatprep.subr.bf16.mxu1 %v13599_v60 }
 0x531   :  { %9755 = vmatpush2.bf16.msra.mxu0 %v13501_v36 }
 0x532   :  { %9806 = vmatprep.subr.bf16.mxu0 %v13506_v11 }
 0x533   :  { %9796 = vmatpush2.bf16.msra.mxu1 %v13597_v58  ;;  %v13649_v58 = vld [vmem:[%s14299_s5 + $0x38] sm:$0xff]  }
 0x534   :  { %v8714_v45 = vpop.f32.mrf.mxu0  ;;  %9757 = vmatmul.mubr.bf16.vlgmr.msra.gmra.mxu0 %v14176_v44  ;;  %9847 = vmatprep.subr.bf16.mxu1 %v13602_v15 }
 0x535   :  { %v8715_v49 = vadd.f32 %v8714_v45, %v14171_v41  ;;  %9807 = vmatpush1.bf16.msra.mxu0 %v13504_v53  ;;  %9838 = vmatprep.mubr.bf16.mxu0 %v14164_v20  ;;  %v13515_v41 = vld [vmem:[#allocation8 + $0x8c] ss:$16 sps:$4 sm:$0xff]   ;;  %v13513_v20 = vld [vmem:[#allocation8 + $0x88] ss:$16 sps:$4 sm:$0xff]  }
 0x536   :  { %v8716_v31 = vpop.f32.mrf.mxu0  ;;  %9808 = vmatprep.subr.bf16.mxu0 %v13509_v32 }
 0x537   :  { %v8717_v37 = vadd.f32 %v8716_v31, %v14173_v61  ;;  %v13521_v61 = vld [vmem:[#allocation8 + $0x4c] ss:$16 sps:$4 sm:$0xff]  }
 0x538   :  { %v8718_v17 = vpop.f32.mrf.mxu0 }
 0x539   :  { %9809 = vmatpush1.bf16.msra.mxu0 %v13507_v8 }
 0x53a   :  { %v8719_v59 = vpop.f32.mrf.mxu0  ;;  %9810 = vmatprep.subr.bf16.mxu0 %v13512_v9 }
 0x53d   :  { %9811 = vmatpush1.bf16.msra.mxu0 %v13510_v39 }
 0x53e   :  { %9812 = vmatprep.subr.bf16.mxu0 %v13515_v41  ;;  %v13648_v41 = vld [vmem:[%s14299_s5 + $0x78] sm:$0xff]  }
 0x541   :  { %9813 = vmatpush1.bf16.msra.mxu0 %v13513_v20  ;;  %v13650_v20 = vld [vmem:[%s14299_s5 + $0x70] sm:$0xff]  }
 0x542   :  { %9814 = vmatprep.subr.bf16.mxu0 %v13518_v13 }
 0x545   :  { %9815 = vmatpush1.bf16.msra.mxu0 %v13516_v2  ;;  %v13600_v2 = vld [vmem:[#allocation8 + $0x2e8] ss:$16 sps:$4 sm:$0xff]  }
 0x546   :  { %9816 = vmatprep.subr.bf16.mxu0 %v13521_v61 }
 0x549   :  { %9817 = vmatpush1.bf16.msra.mxu0 %v13519_v26  ;;  %v13605_v26 = vld [vmem:[#allocation8 + $0x2cc] ss:$16 sps:$4 sm:$0xff]  }
 0x54a   :  { %9818 = vmatprep.subr.bf16.mxu0 %v13524_v40  ;;  %v13651_v40 = vld [vmem:[%s14299_s5 + $0x30] sm:$0xff]  }
 0x54d   :  { %v8755_v42 = vpop.f32.mrf.mxu1  ;;  %9819 = vmatpush1.bf16.msra.mxu0 %v13522_v1  ;;  %v13652_v1 = vld [vmem:[%s14299_s5 + $0x68] sm:$0xff]  }
 0x54e   :  { %v8756_v7 = vadd.f32 %v8755_v42, %v8715_v49  ;;  %9820 = vmatprep.subr.bf16.mxu0 %v13527_v14  ;;  %v13603_v14 = vld [vmem:[#allocation8 + $0x2c8] ss:$16 sps:$4 sm:$0xff]   ;;  %v13608_v42 = vld [vmem:[#allocation8 + $0x2ac] ss:$16 sps:$4 sm:$0xff]  }
 0x54f   :  { %v8757_v10 = vpop.f32.mrf.mxu1 }
 0x550   :  { %v8758_v56 = vadd.f32 %v8757_v10, %v8717_v37  ;;  %v13606_v10 = vld [vmem:[#allocation8 + $0x2a8] ss:$16 sps:$4 sm:$0xff]  }
 0x551   :  { %v8759_v34 = vpop.f32.mrf.mxu1  ;;  %9821 = vmatpush1.bf16.msra.mxu0 %v13525_v30  ;;  %v13654_v30 = vld [vmem:[%s14299_s5 + $0x60] sm:$0xff]  }
 0x552   :  { %9822 = vmatprep.subr.bf16.mxu0 %v13530_v19  ;;  %v13611_v19 = vld [vmem:[#allocation8 + $0x28c] ss:$16 sps:$4 sm:$0xff]   ;;  %v13656_v34 = vld [vmem:[%s14299_s5 + $0x58] sm:$0xff]  }
 0x553   :  { %v8760_v3 = vpop.f32.mrf.mxu1 }
 0x554   :  { %v13614_v3 = vld [vmem:[#allocation8 + $0x26c] ss:$16 sps:$4 sm:$0xff]  }
 0x555   :  { %9823 = vmatpush2.bf16.msra.mxu0 %v13528_v35  ;;  %v13609_v35 = vld [vmem:[#allocation8 + $0x288] ss:$16 sps:$4 sm:$0xff]  }
 0x556   :  { %9824 = vmatprep.subr.bf16.mxu0 %v13533_v50  ;;  %v13657_v50 = vld [vmem:[%s14299_s5 + $0x18] sm:$0xff]  }
 0x559   :  { %9825 = vmatpush2.bf16.msra.mxu0 %v13531_v21  ;;  %v13658_v21 = vld [vmem:[%s14299_s5 + $0x50] sm:$0xff]  }
 0x55a   :  { %9826 = vmatprep.subr.bf16.mxu0 %v13536_v55  ;;  %v13612_v55 = vld [vmem:[#allocation8 + $0x268] ss:$16 sps:$4 sm:$0xff]  }
 0x55d   :  { %9827 = vmatpush2.bf16.msra.mxu0 %v13534_v54  ;;  %v13617_v54 = vld [vmem:[#allocation8 + $0x24c] ss:$16 sps:$4 sm:$0xff]  }
 0x55e   :  { %9828 = vmatprep.subr.bf16.mxu0 %v13539_v63  ;;  %v13659_v63 = vld [vmem:[%s14299_s5 + $0x10] sm:$0xff]  }
 0x561   :  { %9829 = vmatpush2.bf16.msra.mxu0 %v13537_v4  ;;  %v13615_v4 = vld [vmem:[#allocation8 + $0x248] ss:$16 sps:$4 sm:$0xff]  }
 0x562   :  { %9830 = vmatprep.subr.bf16.mxu0 %v13542_v51  ;;  %v13620_v51 = vld [vmem:[#allocation8 + $0x22c] ss:$16 sps:$4 sm:$0xff]  }
 0x565   :  { %9831 = vmatpush2.bf16.msra.mxu0 %v13540_v6  ;;  %v13618_v6 = vld [vmem:[#allocation8 + $0x228] ss:$16 sps:$4 sm:$0xff]  }
 0x566   :  { %9832 = vmatprep.subr.bf16.mxu0 %v13545_v29  ;;  %v13623_v29 = vld [vmem:[#allocation8 + $0x20c] ss:$16 sps:$4 sm:$0xff]  }
 0x569   :  { %9833 = vmatpush2.bf16.msra.mxu0 %v13543_v16  ;;  %v13621_v16 = vld [vmem:[#allocation8 + $0x208] ss:$16 sps:$4 sm:$0xff]  }
 0x56a   :  { %9834 = vmatprep.subr.bf16.mxu0 %v13548_v27  ;;  %v13626_v27 = vld [vmem:[#allocation8 + $0x3ec] ss:$16 sps:$4 sm:$0xff]  }
 0x56d   :  { %9835 = vmatpush2.bf16.msra.mxu0 %v13546_v22  ;;  %v13624_v22 = vld [vmem:[#allocation8 + $0x3e8] ss:$16 sps:$4 sm:$0xff]  }
 0x56e   :  { %9836 = vmatprep.subr.bf16.mxu0 %v13551_v38  ;;  %v13629_v38 = vld [vmem:[#allocation8 + $0x3cc] ss:$16 sps:$4 sm:$0xff]  }
 0x571   :  { %9837 = vmatpush2.bf16.msra.mxu0 %v13549_v25  ;;  %v13627_v25 = vld [vmem:[#allocation8 + $0x3c8] ss:$16 sps:$4 sm:$0xff]  }
 0x572   :  { %11614 = vmatprep.subr.bf16.mxu0 %v13648_v41  ;;  %v13669_v41 = vld [vmem:[%s14299_s5 + $0xa8] sm:$0xff]  }
 0x574   :  { %v8796_v52 = vpop.f32.mrf.mxu0  ;;  %9839 = vmatmul.mubr.bf16.vlgmr.msra.gmra.mxu0 %v14176_v44 }
 0x575   :  { %v8797_v11 = vadd.f32 %v8796_v52, %v8756_v7  ;;  %11615 = vmatpush3.bf16.msra.mxu0 %v13649_v58  ;;  %v13653_v7 = vld [vmem:[%s14299_s5 + $0x28] sm:$0xff]   ;;  %v13632_v52 = vld [vmem:[#allocation8 + $0x3ac] ss:$16 sps:$4 sm:$0xff]  }
 0x576   :  { %v8798_v18 = vpop.f32.mrf.mxu0  ;;  %11616 = vmatprep.subr.bf16.mxu0 %v13650_v20  ;;  %v13670_v58 = vld [vmem:[%s14299_s5 + $0xe0] sm:$0xff]  }
 0x577   :  { %v8799_v12 = vadd.f32 %v8798_v18, %v8758_v56  ;;  %v13655_v56 = vld [vmem:[%s14299_s5 + $0x20] sm:$0xff]   ;;  %v13630_v18 = vld [vmem:[#allocation8 + $0x3a8] ss:$16 sps:$4 sm:$0xff]  }
 0x578   :  { %v8800_v47 = vpop.f32.mrf.mxu0  ;;  %v13671_v20 = vld [vmem:[%s14299_s5 + $0xa0] sm:$0xff]  }
 0x579   :  { %11617 = vmatpush3.bf16.msra.mxu0 %v13651_v40  ;;  %v13635_v47 = vld [vmem:[#allocation8 + $0x38c] ss:$16 sps:$4 sm:$0xff]  }
 0x57a   :  { %v8801_v62 = vpop.f32.mrf.mxu0  ;;  %11618 = vmatprep.subr.bf16.mxu0 %v13652_v1 }
 0x57b   :  { %v13633_v62 = vld [vmem:[#allocation8 + $0x388] ss:$16 sps:$4 sm:$0xff]  }
 0x57d   :  { %11619 = vmatpush3.bf16.msra.mxu0 %v13653_v7  ;;  %v13677_v7 = vld [vmem:[%s14299_s5 + $0x88] sm:$0xff]  }
 0x57e   :  { %11620 = vmatprep.subr.bf16.mxu0 %v13654_v30  ;;  %v13678_v30 = vld [vmem:[%s14299_s5 + $0xc0] sm:$0xff]  }
 0x581   :  { %11621 = vmatpush3.bf16.msra.mxu0 %v13655_v56 }
 0x582   :  { %11622 = vmatprep.subr.bf16.mxu0 %v13656_v34 }
 0x585   :  { %11623 = vmatpush3.bf16.msra.mxu0 %v13657_v50 }
 0x586   :  { %11624 = vmatprep.subr.bf16.mxu0 %v13658_v21 }
 0x589   :  { %11625 = vmatpush3.bf16.msra.mxu0 %v13659_v63 }
 0x58d   :  { %v8837_v24 = vpop.f32.mrf.mxu1 }
 0x58e   :  { %v8838_v53 = vadd.f32 %v8837_v24, %v8797_v11  ;;  %v13638_v24 = vld [vmem:[#allocation8 + $0x36c] ss:$16 sps:$4 sm:$0xff]  }
 0x58f   :  { %v8839_v36 = vpop.f32.mrf.mxu1  ;;  %v13644_v11 = vld [vmem:[#allocation8 + $0x32c] ss:$16 sps:$4 sm:$0xff]  }
 0x590   :  { %v8840_v49 = vadd.f32 %v8839_v36, %v8799_v12  ;;  %v13636_v36 = vld [vmem:[#allocation8 + $0x368] ss:$16 sps:$4 sm:$0xff]  }
 0x591   :  { %v8841_v46 = vpop.f32.mrf.mxu1 }
 0x592   :  { %v13641_v46 = vld [vmem:[#allocation8 + $0x34c] ss:$16 sps:$4 sm:$0xff]  }
 0x593   :  { %v8842_v48 = vpop.f32.mrf.mxu1 }
 0x594   :  { %v13639_v48 = vld [vmem:[#allocation8 + $0x348] ss:$16 sps:$4 sm:$0xff]  }
 0x5b4   :  { %v8878_v32 = vpop.f32.mrf.mxu0 }
 0x5b5   :  { %v8919_v45 = vpop.f32.mrf.mxu1  ;;  %v8879_v8 = vadd.f32 %v8878_v32, %v8838_v53  ;;  %v13642_v53 = vld [vmem:[#allocation8 + $0x328] ss:$16 sps:$4 sm:$0xff]  }
 0x5b6   :  { %v8880_v23 = vpop.f32.mrf.mxu0 }
 0x5b7   :  { %v8921_v31 = vpop.f32.mrf.mxu1  ;;  %v8920_v9 = vadd.f32 %v8919_v45, %v8879_v8  ;;  %v8881_v43 = vadd.f32 %v8880_v23, %v8840_v49  ;;  %v13647_v45 = vld [vmem:[#allocation8 + $0x30c] ss:$16 sps:$4 sm:$0xff]   ;;  %v13645_v8 = vld [vmem:[#allocation8 + $0x308] ss:$16 sps:$4 sm:$0xff]  }
 0x5b8   :  { %v8882_v37 = vpop.f32.mrf.mxu0 }
 0x5b9   :  { %v8923_v44 = vpop.f32.mrf.mxu1  ;;  %v8922_v17 = vadd.f32 %v8921_v31, %v8881_v43  ;;  %v8928_v39 = vmax.f32 %v8920_v9, 0.0  ;;  %v13660_v31 = vld [vmem:[%s14299_s5 + $0x48] sm:$0xff]   ;;  %v13662_v43 = vld [vmem:[%s14299_s5 + $0x40] sm:$0xff]  }
 0x5ba   :  { %v8883_v60 = vpop.f32.mrf.mxu0  ;;  %v13661_v9 = vld [vmem:[%s14299_s5 + $0x8] sm:$0xff]   ;;  %11626 = vmatprep.subr.bf16.mxu0 %v13660_v31  ;;  %v13663_v37 = vld [vmem:[%s14299_s5] sm:$0xff]   ;;  %v13664_v44 = vld [vmem:[%s14299_s5 + $0xf8] sm:$0xff]  }
 0x5bb   :  { %v8924_v59 = vpop.f32.mrf.mxu1  ;;  %v8929_v15 = vmax.f32 %v8922_v17, 0.0  ;;  %v14192_v61 = vpack.c.bf16 %v8928_v39, %v8928_v39  ;;  %11627 = vmatpush3.bf16.msra.mxu0 %v13661_v9  ;;  %v13665_v17 = vld [vmem:[%s14299_s5 + $0xb8] sm:$0xff]   ;;  %v13666_v39 = vld [vmem:[%s14299_s5 + $0xf0] sm:$0xff]  }
 0x5bc   :  { %11628 = vmatprep.subr.bf16.mxu0 %v13662_v43  ;;  %v13667_v60 = vld [vmem:[%s14299_s5 + $0xb0] sm:$0xff]   ;;  %v13668_v59 = vld [vmem:[%s14299_s5 + $0xe8] sm:$0xff]  }
 0x5bd   :  { %v8933_v13 = vpack.c.bf16 %v8929_v15, %v8929_v15  ;;  %v13672_v15 = vld [vmem:[%s14299_s5 + $0xd8] sm:$0xff]  }
 0x5bf   :  { %9797 = vmatprep.mubr.bf16.mxu1 %v8933_v13  ;;  %11629 = vmatpush3.bf16.msra.mxu0 %v13663_v37 }
 0x5c0   :  { %9798 = vmatmul.mubr.bf16.vlgmr.msra.gmra.mxu1 %v14192_v61 }
 0x5c1   :  { %9848 = vmatpush1.bf16.msra.mxu1 %v13600_v2  ;;  %9879 = vmatprep.mubr.bf16.mxu1 %v8933_v13  ;;  %v13673_v13 = vld [vmem:[%s14299_s5 + $0x98] sm:$0xff]   ;;  %v13674_v2 = vld [vmem:[%s14299_s5 + $0xd0] sm:$0xff]  }
 0x5c2   :  { %9849 = vmatprep.subr.bf16.mxu1 %v13605_v26 }
 0x5c5   :  { %9850 = vmatpush1.bf16.msra.mxu1 %v13603_v14 }
 0x5c6   :  { %9851 = vmatprep.subr.bf16.mxu1 %v13608_v42  ;;  %v13676_v42 = vld [vmem:[%s14299_s5 + $0xc8] sm:$0xff]  }
 0x5c9   :  { %9852 = vmatpush1.bf16.msra.mxu1 %v13606_v10  ;;  %v13679_v10 = vld [vmem:[%s14299_s5 + $0x80] sm:$0xff]  }
 0x5ca   :  { %9853 = vmatprep.subr.bf16.mxu1 %v13611_v19  ;;  %v9062_v19 = vld [vmem:[#allocation10] sm:$0xf] }
 0x5cb   :  { %v9067_v56 = vrot.slane %v9062_v19, %v1374_v0  ;;  %v9071_v34 = vrot.slane %v9062_v19, %v1378_v5  ;;  %v9075_v0 = vrot.slane %v9062_v19, %v1382_v33  ;;  %v9079_v5 = vrot.slane %v9062_v19, %v1386_v28  ;;  %v11581_v28 = vld [vmem:[#allocation11] ss:$0 sm:$0xff] }
 0x5cd   :  { %9854 = vmatpush1.bf16.msra.mxu1 %v13609_v35 }
 0x5ce   :  { %9855 = vmatprep.subr.bf16.mxu1 %v13614_v3 }
 0x5d1   :  { %9856 = vmatpush1.bf16.msra.mxu1 %v13612_v55 }
 0x5d2   :  { %9857 = vmatprep.subr.bf16.mxu1 %v13617_v54 }
 0x5d5   :  { %9858 = vmatpush1.bf16.msra.mxu1 %v13615_v4 }
 0x5d6   :  { %9859 = vmatprep.subr.bf16.mxu1 %v13620_v51 }
 0x5d9   :  { %9860 = vmatpush1.bf16.msra.mxu1 %v13618_v6 }
 0x5da   :  { %9861 = vmatprep.subr.bf16.mxu1 %v13623_v29 }
 0x5dd   :  { %9862 = vmatpush1.bf16.msra.mxu1 %v13621_v16 }
 0x5de   :  { %9863 = vmatprep.subr.bf16.mxu1 %v13626_v27 }
 0x5e1   :  { %9864 = vmatpush2.bf16.msra.mxu1 %v13624_v22 }
 0x5e2   :  { %9865 = vmatprep.subr.bf16.mxu1 %v13629_v38 }
 0x5e5   :  { %9866 = vmatpush2.bf16.msra.mxu1 %v13627_v25 }
 0x5e6   :  { %9867 = vmatprep.subr.bf16.mxu1 %v13632_v52 }
 0x5e9   :  { %9868 = vmatpush2.bf16.msra.mxu1 %v13630_v18 }
 0x5ea   :  { %9869 = vmatprep.subr.bf16.mxu1 %v13635_v47 }
 0x5ed   :  { %9870 = vmatpush2.bf16.msra.mxu1 %v13633_v62 }
 0x5ee   :  { %9871 = vmatprep.subr.bf16.mxu1 %v13638_v24 }
 0x5f1   :  { %9872 = vmatpush2.bf16.msra.mxu1 %v13636_v36 }
 0x5f2   :  { %9873 = vmatprep.subr.bf16.mxu1 %v13641_v46 }
 0x5f4   :  { %v9758_v12 = vpop.f32.mrf.mxu0 }
 0x5f5   :  { %9874 = vmatpush2.bf16.msra.mxu1 %v13639_v48  ;;  %v9759_v35 = vadd.f32 %v9758_v12, %v9067_v56 }
 0x5f6   :  { %v9760_v32 = vpop.f32.mrf.mxu0  ;;  %9875 = vmatprep.subr.bf16.mxu1 %v13644_v11 }
 0x5f7   :  { %v9761_v50 = vadd.f32 %v9760_v32, %v9071_v34 }
 0x5f8   :  { %v9762_v49 = vpop.f32.mrf.mxu0 }
 0x5f9   :  { %9876 = vmatpush2.bf16.msra.mxu1 %v13642_v53 }
 0x5fa   :  { %v9763_v23 = vpop.f32.mrf.mxu0  ;;  %9877 = vmatprep.subr.bf16.mxu1 %v13647_v45 }
 0x5fd   :  { %9878 = vmatpush2.bf16.msra.mxu1 %v13645_v8 }
 0x5fe   :  { %11636 = vmatprep.subr.bf16.mxu1 %v13664_v44 }
 0x600   :  { %9880 = vmatmul.mubr.bf16.vlgmr.msra.gmra.mxu1 %v14192_v61  ;;  %v13675_v61 = vld [vmem:[%s14299_s5 + $0x90] sm:$0xff]   ;;  %s13840_s5 = smov [#allocation13]  }
 0x601   :  { %11637 = vmatpush3.bf16.msra.mxu1 %v13665_v17  ;;  %s10247_s11 = sshll.u32 %s13840_s5, 4  ;;  %s10248_s11 = int_to_ptr.vmem [resolvable:$true] %s10247_s11 }
 0x602   :  { %11638 = vmatprep.subr.bf16.mxu1 %v13666_v39  ;;  %s13801_s12 = scalar_lea.vmem %s10248_s11, 128  ;;  %p13806_p3 = scmp.lt.s32.totalorder %s10248_s11, %s10248_s11 }
 0x603   :  { %p13802_p2 = scmp.ne.s32.totalorder %s10248_s11, %s13801_s12  ;;  %p13807_p4 = scmp.lt.s32.totalorder %s13801_s12, %s13801_s12 }
 0x605   :  { %11639 = vmatpush3.bf16.msra.mxu1 %v13667_v60  ;;  %p13808_p5 = por %p13807_p4, %p13806_p3 }
 0x606   :  { %11640 = vmatprep.subr.bf16.mxu1 %v13668_v59 }
 0x607   :  { %p13809_p6 = pnand %p13808_p5, %p13802_p2 }
 0x609   :  { %11641 = vmatpush3.bf16.msra.mxu1 %v13669_v41 }
 0x60a   :  { %11642 = vmatprep.subr.bf16.mxu1 %v13670_v58 }
 0x60d   :  { %11643 = vmatpush3.bf16.msra.mxu1 %v13671_v20 }
 0x60e   :  { %11644 = vmatprep.subr.bf16.mxu1 %v13672_v15 }
 0x611   :  { %11645 = vmatpush3.bf16.msra.mxu1 %v13673_v13 }
 0x612   :  { %11646 = vmatprep.subr.bf16.mxu1 %v13674_v2 }
 0x615   :  { %11647 = vmatpush3.bf16.msra.mxu1 %v13675_v61 }
 0x616   :  { %11648 = vmatprep.subr.bf16.mxu1 %v13676_v42 }
 0x619   :  { %11649 = vmatpush3.bf16.msra.mxu1 %v13677_v7 }
 0x61a   :  { %11650 = vmatprep.subr.bf16.mxu1 %v13678_v30 }
 0x61d   :  { %11651 = vmatpush3.bf16.msra.mxu1 %v13679_v10 }
 0x634   :  { %v9840_v26 = vpop.f32.mrf.mxu0 }
 0x635   :  { %v9841_v27 = vadd.f32 %v9840_v26, %v9075_v0 }
 0x636   :  { %v9842_v40 = vpop.f32.mrf.mxu0 }
 0x637   :  { %v9843_v38 = vadd.f32 %v9842_v40, %v9079_v5 }
 0x638   :  { %v9844_v1 = vpop.f32.mrf.mxu0 }
 0x63a   :  { %v9845_v14 = vpop.f32.mrf.mxu0 }
 0x680   :  { %v9799_v3 = vpop.f32.mrf.mxu1 }
 0x681   :  { %v9800_v21 = vadd.f32 %v9799_v3, %v9759_v35 }
 0x682   :  { %v9801_v55 = vpop.f32.mrf.mxu1 }
 0x683   :  { %v9802_v54 = vadd.f32 %v9801_v55, %v9761_v50  ;;  %v9888_v63 = vmax.f32 %v9800_v21, 0.0 }
 0x684   :  { %v9803_v4 = vpop.f32.mrf.mxu1 }
 0x685   :  { %v9889_v51 = vmax.f32 %v9802_v54, 0.0  ;;  %v9892_v16 = vpack.c.bf16 %v9888_v63, %v9888_v63 }
 0x686   :  { %v9804_v6 = vpop.f32.mrf.mxu1 }
 0x687   :  { %v9893_v29 = vpack.c.bf16 %v9889_v51, %v9889_v51 }
 0x689   :  { %10191 = vmatprep.mubr.bf16.mxu0 %v9893_v29 }
 0x68a   :  { %10192 = vmatmul.mubr.bf16.vlgmr.msra.gmra.mxu0 %v9892_v16 }
 0x6c0   :  { %v9881_v22 = vpop.f32.mrf.mxu1 }
 0x6c1   :  { %v9882_v25 = vadd.f32 %v9881_v22, %v9841_v27 }
 0x6c2   :  { %v9883_v52 = vpop.f32.mrf.mxu1 }
 0x6c3   :  { %v9884_v18 = vadd.f32 %v9883_v52, %v9843_v38  ;;  %v9890_v47 = vmax.f32 %v9882_v25, 0.0 }
 0x6c4   :  { %v9885_v62 = vpop.f32.mrf.mxu1 }
 0x6c5   :  { %v9891_v24 = vmax.f32 %v9884_v18, 0.0  ;;  %v9894_v48 = vpack.c.bf16 %v9890_v47, %v9890_v47 }
 0x6c6   :  { %v9886_v36 = vpop.f32.mrf.mxu1 }
 0x6c7   :  { %v9895_v46 = vpack.c.bf16 %v9891_v24, %v9891_v24 }
 0x6c9   :  { %10231 = vmatprep.mubr.bf16.mxu1 %v9895_v46 }
 0x6ca   :  { %10232 = vmatmul.mubr.bf16.vlgmr.msra.gmra.mxu1 %v9894_v48 }
 0x74a   :  { %v11630_v11 = vpop.f32.mrf.mxu0 }
 0x74c   :  { %v11631_v12 = vpop.f32.mrf.mxu0 }
 0x74d   :  { %v11632_v57 = vadd.f32 %v11631_v12, %v11630_v11 }
 0x74e   :  { %v11633_v33 = vpop.f32.mrf.mxu0 }
 0x74f   :  { %v10194_v49 = vadd.f32 %v11632_v57, %v11581_v28 }
 0x750   :  { %v11634_v53 = vpop.f32.mrf.mxu0 }
 0x78a   :  { %v11652_v32 = vpop.f32.mrf.mxu1 }
 0x78c   :  { %v11653_v45 = vpop.f32.mrf.mxu1 }
 0x78d   :  { %v11654_v8 = vadd.f32 %v11653_v45, %v11652_v32 }
 0x78e   :  { %v11655_v23 = vpop.f32.mrf.mxu1 }
 0x78f   :  { %v10234_v31 = vadd.f32 %v11654_v8, %v10194_v49 }
 0x790   :  { %v11656_v9 = vpop.f32.mrf.mxu1 }
 0x791   :  { %10240 = vst.msk [vmem:[#allocation13] sm:$0xff] %vm10239_vm3, %v10234_v31 }
 0x792   :  { %13812 = shalt.err (!%p13809_p6)
}
 0x793   :  { %10250 = dma.vmem_to_hbm [thread:$0]  %s10248_s11, 128, %s14301_s7, [#allocation4]  }
 0x794   :  { %13829 = dma.done.wait [#allocation4], 128  }
 0x795   :  { %13830 = vsyncadd [#allocation4], 4294967168 }
 0x796   :  { %10254 = vsyncpa [#allocation3], 1 }
 0x797   :  { %10255 = vsyncpa [#allocation6], 1 }
 0x798   :  { %10256 = vsyncpa [#allocation9], 1 }
 0x799   :  { %10257 = vsyncpa [#allocation12], 1 }
 0x79a   :  { %10258 = vsyncpa [#allocation4], 1 }

</bundles_post_ra>
